<compile_context>
chip_gen: v5e
topology: v5e:2x2
jax: 0.10.0
libtpu: 0.0.40
codegen_flags: <defaults>
</compile_context>

<pallas_src>
import functools

import jax
import jax.numpy as jnp
from jax.experimental import pallas as pl
from jax.experimental.pallas import tpu as pltpu


def _round_up(x, m):
    return (x + m - 1) // m * m


# ------------------ fused (im2col-matmul) + BN + residual + act --------------

def _make_mm_bn_act_kernel(act: str, has_residual: bool):
    def kernel(*refs):
        if has_residual:
            a_ref, w_ref, s_ref, b_ref, r_ref, o_ref, acc_ref = refs
        else:
            a_ref, w_ref, s_ref, b_ref, o_ref, acc_ref = refs
            r_ref = None
        k = pl.program_id(2)

        @pl.when(k == 0)
        def _init():
            acc_ref[...] = jnp.zeros_like(acc_ref)

        acc_ref[...] += jnp.dot(a_ref[...], w_ref[...],
                                preferred_element_type=jnp.float32)

        @pl.when(k == pl.num_programs(2) - 1)
        def _epilogue():
            acc = acc_ref[...] * s_ref[...] + b_ref[...]
            if has_residual:
                acc = acc + r_ref[...].astype(jnp.float32)
            if act == "relu":
                acc = jnp.maximum(acc, 0.0)
            o_ref[...] = acc.astype(o_ref.dtype)

    return kernel


def matmul_bn_act(a, w, scale, bias, residual=None, act="none",
                  out_dtype=jnp.bfloat16):
    """out = act((a @ w) * scale + bias [+ residual]).

    bf16 MXU inputs, f32 accumulation + f32 epilogue, bf16 output. M/N/K grid.
    """
    M, K = a.shape
    Kw, Cout = w.shape
    assert K == Kw
    has_res = residual is not None

    # K tile: a single 128-multiple step for small-K layers, up to 512 otherwise.
    TK = min(512, _round_up(K, 128))
    Kp = _round_up(K, TK)
    # N tile: 256 fills the 256-wide MXU weight dim on v6e/v7x; 128 floor keeps
    # tiny-Cout layers lane-dense without massive padding.
    TN = 128 if Cout <= 128 else 256
    Np = _round_up(Cout, TN)
    # M tile: VMEM is plentiful, so go big; multiple of 16 (bf16 packs 2 rows
    # per sublane). For big M keep >= 2 tiles so v7x megacore has parallel work.
    tm = 512 if M >= 1024 else _round_up(M, 16)
    Mp = _round_up(M, tm)

    a_p = jnp.pad(a.astype(jnp.bfloat16), ((0, Mp - M), (0, Kp - K)))
    w_p = jnp.pad(w.astype(jnp.bfloat16), ((0, Kp - K), (0, Np - Cout)))
    s_p = jnp.pad(scale.reshape(1, Cout).astype(jnp.float32),
                  ((0, 0), (0, Np - Cout)))
    b_p = jnp.pad(bias.reshape(1, Cout).astype(jnp.float32),
                  ((0, 0), (0, Np - Cout)))

    args = [a_p, w_p, s_p, b_p]
    in_specs = [
        pl.BlockSpec((tm, TK), lambda i, j, k: (i, k)),
        pl.BlockSpec((TK, TN), lambda i, j, k: (k, j)),
        pl.BlockSpec((1, TN), lambda i, j, k: (0, j)),
        pl.BlockSpec((1, TN), lambda i, j, k: (0, j)),
    ]
    if has_res:
        r_p = jnp.pad(residual.astype(jnp.bfloat16),
                      ((0, Mp - M), (0, Np - Cout)))
        args.append(r_p)
        in_specs.append(pl.BlockSpec((tm, TN), lambda i, j, k: (i, j)))

    bytes_accessed = (Mp * Kp * 2 + Kp * Np * 2 + Mp * Np * 2 + Np * 8
                      + (Mp * Np * 2 if has_res else 0))
    cost = pl.CostEstimate(flops=2 * Mp * Kp * Np, transcendentals=0,
                           bytes_accessed=bytes_accessed)

    out = pl.pallas_call(
        _make_mm_bn_act_kernel(act, has_res),
        out_shape=jax.ShapeDtypeStruct((Mp, Np), out_dtype),
        grid_spec=pltpu.PrefetchScalarGridSpec(
            num_scalar_prefetch=0,
            grid=(Mp // tm, Np // TN, Kp // TK),
            in_specs=in_specs,
            out_specs=pl.BlockSpec((tm, TN), lambda i, j, k: (i, j)),
            scratch_shapes=[pltpu.VMEM((tm, TN), jnp.float32)]),
        compiler_params=pltpu.CompilerParams(
            dimension_semantics=("parallel", "parallel", "arbitrary"),
            vmem_limit_bytes=32 * 1024 * 1024),
        cost_estimate=cost,
    )(*args)
    return out[:M, :Cout]


# ------------------------------- max pool ------------------------------------

def _maxpool_3x3_s2_kernel(ee_ref, eo_ref, oe_ref, oo_ref, o_ref):
    """Blocks: inputs (1, Ho+1, (Wo+1)*C); output (1, Ho, Wo*C).

    W and C are folded into the lane dimension, so the 9-way running max is
    lane-dense on the VPU and the w+1 shifted taps stay within the lane axis
    (no sublane-boundary-crossing slices). f32 math (v5e VPU has no bf16).
    """
    Ho, WCo = o_ref.shape[1], o_ref.shape[2]
    C = ee_ref.shape[2] - WCo            # (Wo+1)*C - Wo*C

    ee = ee_ref[0].astype(jnp.float32)
    eo = eo_ref[0].astype(jnp.float32)
    oe = oe_ref[0].astype(jnp.float32)
    oo = oo_ref[0].astype(jnp.float32)

    # 6 of 9 taps live on the current output row h.
    same = jnp.maximum(jnp.maximum(ee[:, :WCo], eo[:, :WCo]),
                       jnp.maximum(oe[:, :WCo], oo[:, :WCo]))
    same = jnp.maximum(same, jnp.maximum(ee[:, C:C + WCo], oe[:, C:C + WCo]))
    # 3 of 9 taps live on row h+1: ee, eo and ee shifted one pixel right.
    down = jnp.maximum(jnp.maximum(ee[:, :WCo], eo[:, :WCo]), ee[:, C:C + WCo])

    m = jnp.maximum(same[:Ho], down[1:Ho + 1])
    o_ref[0] = m.astype(o_ref.dtype)


def max_pool_3x3_s2(x_nhwc):
    """nn.MaxPool2d(kernel_size=3, stride=2, padding=1) in NHWC (bf16 in/out).

    Even/odd phase decomposition: 4 slabs (~1x input bytes) built by XLA; the
    Pallas kernel does the 9-term running max per image on a (Wo+1)*C-folded
    lane-dense layout.
    """
    N, H, W, C = x_nhwc.shape
    k, stride, pad = 3, 2, 1
    Ho = (H + 2 * pad - k) // stride + 1
    Wo = (W + 2 * pad - k) // stride + 1
    Hp, Wp = 2 * Ho + 2, 2 * Wo + 2
    xp = jnp.pad(x_nhwc,
                 ((0, 0), (pad, Hp - H - pad), (pad, Wp - W - pad), (0, 0)),
                 constant_values=float("-inf"))
    wc_in = (Wo + 1) * C
    ee = xp[:, 0::2, 0::2, :].reshape(N, Ho + 1, wc_in)
    eo = xp[:, 0::2, 1::2, :].reshape(N, Ho + 1, wc_in)
    oe = xp[:, 1::2, 0::2, :].reshape(N, Ho + 1, wc_in)
    oo = xp[:, 1::2, 1::2, :].reshape(N, Ho + 1, wc_in)

    # TODO(synk): for large resolutions, additionally tile Ho (halo of 1 row)
    # to keep per-step blocks small under v7x's 64 MiB VMEM.
    slab_spec = pl.BlockSpec((1, Ho + 1, wc_in), lambda n: (n, 0, 0))
    out = pl.pallas_call(
        _maxpool_3x3_s2_kernel,
        out_shape=jax.ShapeDtypeStruct((N, Ho, Wo * C), x_nhwc.dtype),
        grid=(N,),
        in_specs=[slab_spec] * 4,
        out_specs=pl.BlockSpec((1, Ho, Wo * C), lambda n: (n, 0, 0)),
        compiler_params=pltpu.CompilerParams(
            dimension_semantics=("parallel",),
            vmem_limit_bytes=32 * 1024 * 1024),
    )(ee, eo, oe, oo)
    return out.reshape(N, Ho, Wo, C)


# --------------------------- global average pool -----------------------------

def _gap_kernel(x_ref, o_ref, *, inv_hw):
    s = pl.program_id(0)

    @pl.when(s == 0)
    def _init():
        o_ref[...] = jnp.zeros_like(o_ref)

    # Output block index is constant over the reduction axis, so o_ref is
    # resident in VMEM — accumulate into it directly (no scratch + copy).
    o_ref[...] += jnp.sum(x_ref[...].astype(jnp.float32), axis=1)

    @pl.when(s == pl.num_programs(0) - 1)
    def _fin():
        o_ref[...] = o_ref[...] * inv_hw


def global_avg_pool(x_nhwc):
    """(N, H, W, C) bf16 -> (N, C) f32 mean over spatial; tiled HW reduction."""
    N, H, W, C = x_nhwc.shape
    HW = H * W
    x = x_nhwc.reshape(N, HW, C)                     # keep bf16 (half the HBM read)
    thw = min(512, _round_up(HW, 16))
    HWp = _round_up(HW, thw)
    if HWp != HW:
        x = jnp.pad(x, ((0, 0), (0, HWp - HW), (0, 0)))
    kernel = functools.partial(_gap_kernel, inv_hw=1.0 / HW)
    return pl.pallas_call(
        kernel,
        out_shape=jax.ShapeDtypeStruct((N, C), jnp.float32),
        grid_spec=pltpu.PrefetchScalarGridSpec(
            num_scalar_prefetch=0,
            grid=(HWp // thw,),
            in_specs=[pl.BlockSpec((N, thw, C), lambda s: (0, s, 0))],
            out_specs=pl.BlockSpec((N, C), lambda s: (0, 0))),
        compiler_params=pltpu.CompilerParams(
            dimension_semantics=("arbitrary",)),
    )(x)


# ------------------------------ JAX glue --------------------------------------

def _im2col(x, kh, kw, stride, pad):
    """x: NHWC -> (N*Ho*Wo, kh*kw*C) patch matrix, column order (dh, dw, cin)."""
    # TODO(synk): patch matrix is still built by XLA in HBM (bf16 now); folding
    # the taps into the kernel (Element-offset index_maps / manual DMA) would
    # remove this ~9x intermediate entirely.
    N, H, W, C = x.shape
    Ho = (H + 2 * pad - kh) // stride + 1
    Wo = (W + 2 * pad - kw) // stride + 1
    xp = jnp.pad(x, ((0, 0), (pad, pad), (pad, pad), (0, 0)))
    cols = []
    for dh in range(kh):
        for dw in range(kw):
            patch = xp[:, dh::stride, dw::stride, :][:, :Ho, :Wo, :]
            cols.append(patch)
    col = jnp.concatenate(cols, axis=-1)
    return col.reshape(N * Ho * Wo, kh * kw * C), (N, Ho, Wo)


def conv_bn_act(x_nhwc, p, stride, act="none", residual_nhwc=None):
    """Conv2dAuto(kernel, stride, padding=k//2, bias=False) + BN + act [+ residual]."""
    w = p["w"]  # (kh, kw, cin, cout)
    kh, kw, cin, cout = w.shape
    col, (N, Ho, Wo) = _im2col(x_nhwc, kh, kw, stride, kh // 2)
    res2d = None
    if residual_nhwc is not None:
        res2d = residual_nhwc.reshape(N * Ho * Wo, cout)
    out2d = matmul_bn_act(col, w.reshape(kh * kw * cin, cout),
                          p["scale"], p["bias"], residual=res2d, act=act)
    return out2d.reshape(N, Ho, Wo, cout)


# --------------------------- parameter init -----------------------------------

def _bn_params(key, c, eps=1e-5):
    k1, k2, k3, k4 = jax.random.split(key, 4)
    gamma = 1.0 + 0.1 * jax.random.normal(k1, (c,))
    beta = 0.1 * jax.random.normal(k2, (c,))
    mean = 0.1 * jax.random.normal(k3, (c,))
    var = 1.0 + 0.1 * jax.random.uniform(k4, (c,))
    scale = gamma / jnp.sqrt(var + eps)
    bias = beta - mean * scale
    return scale.astype(jnp.float32), bias.astype(jnp.float32)


def _conv_bn_params(key, kh, kw, cin, cout):
    kconv, kbn = jax.random.split(key)
    fan_in = kh * kw * cin
    w = jax.random.normal(kconv, (kh, kw, cin, cout)) / jnp.sqrt(fan_in)
    scale, bias = _bn_params(kbn, cout)
    return {"w": w.astype(jnp.float32), "scale": scale, "bias": bias}


def init_resnet_params(key, in_channels, n_classes, blocks_sizes, depths):
    keys = iter(jax.random.split(key, 128))
    params = {"gate": _conv_bn_params(next(keys), 7, 7, in_channels, blocks_sizes[0])}

    layer_io = [(blocks_sizes[0], blocks_sizes[0], depths[0])]
    for (cin, cout), n in zip(zip(blocks_sizes, blocks_sizes[1:]), depths[1:]):
        layer_io.append((cin, cout, n))  # expansion = 1 for ResNetBasicBlock

    layers = []
    for cin, cout, n in layer_io:
        blocks = []
        for bi in range(n):
            b_in = cin if bi == 0 else cout
            downsampling = (2 if cin != cout else 1) if bi == 0 else 1
            blk = {
                "conv1": _conv_bn_params(next(keys), 3, 3, b_in, cout),
                "conv2": _conv_bn_params(next(keys), 3, 3, cout, cout),
                "downsampling": downsampling,
            }
            if b_in != cout:  # should_apply_shortcut: 1x1 conv (stride=downsampling) + BN
                blk["shortcut"] = _conv_bn_params(next(keys), 1, 1, b_in, cout)
            blocks.append(blk)
        layers.append(blocks)
    params["layers"] = layers

    # TODO(synk): CB.CNN2d_decoder source is unavailable; modeled as global-avg-pool + linear head.
    c_last = blocks_sizes[-1]
    kd1, kd2 = jax.random.split(next(keys))
    params["decoder"] = {
        "w": (jax.random.normal(kd1, (c_last, n_classes)) / jnp.sqrt(c_last)).astype(jnp.float32),
        "b": (0.01 * jax.random.normal(kd2, (n_classes,))).astype(jnp.float32),
    }
    return params


# ------------------------------ forward ---------------------------------------

def resnet_forward(params, x_nchw):
    # NCHW (PyTorch) -> NHWC (kernel layout); bf16 activation path, f32 epilogues.
    x = jnp.transpose(x_nchw, (0, 2, 3, 1)).astype(jnp.bfloat16)

    # gate: Conv2d(7x7, s=2, p=3, bias=False) -> BN -> ReLU -> MaxPool(3, s=2, p=1)
    x = conv_bn_act(x, params["gate"], stride=2, act="relu")
    x = max_pool_3x3_s2(x)

    # ResNet layers of basic blocks
    for blocks in params["layers"]:
        for blk in blocks:
            stride = blk["downsampling"]
            if "shortcut" in blk:
                residual = conv_bn_act(x, blk["shortcut"], stride=stride, act="none")
            else:
                residual = x
            h = conv_bn_act(x, blk["conv1"], stride=stride, act="relu")
            # conv2 + BN, then "+ residual", then ReLU — fused in one Pallas call
            x = conv_bn_act(h, blk["conv2"], stride=1, act="relu",
                            residual_nhwc=residual)

    # decoder: GAP (Pallas reduction) + tiny linear head (plain JAX).
    pooled = global_avg_pool(x)                      # (N, C) f32
    dec = params["decoder"]
    logits = pooled @ dec["w"] + dec["b"]
    # TODO(synk): BB.act_func source unavailable; add_sigmoid='None', times_max=1 -> identity.
    return logits


# ------------------------------- main ------------------------------------------

if __name__ == "__main__":
    key = jax.random.PRNGKey(0)
    kx, kp = jax.random.split(key)

    in_channels, n_classes = 3, 5
    blocks_sizes, depths = [8, 16], [1, 1]   # small synthetic config

    x = jax.random.normal(kx, (2, in_channels, 32, 32), dtype=jnp.float32)
    params = init_resnet_params(kp, in_channels, n_classes, blocks_sizes, depths)

    fwd = jax.jit(functools.partial(resnet_forward, params))
    out = fwd(x)
    jax.block_until_ready(out)

    assert out.shape == (2, n_classes), out.shape
    assert jnp.all(jnp.isfinite(out))
    print("KERNEL_OK")
</pallas_src>

<mosaic_0001>
module attributes {stable_mosaic.version = 11 : i64} {
  func.func @kernel(%arg0: i32, %arg1: i32, %arg2: i32, %arg3: memref<512x256xbf16, #tpu.memory_space<vmem>>, %arg4: memref<256x128xbf16, #tpu.memory_space<vmem>>, %arg5: memref<1x128xf32, #tpu.memory_space<vmem>>, %arg6: memref<1x128xf32, #tpu.memory_space<vmem>>, %arg7: memref<512x128xbf16, #tpu.memory_space<vmem>>, %arg8: memref<512x128xf32, #tpu.memory_space<vmem>>) attributes {dimension_semantics = [#tpu.dimension_semantics<parallel>, #tpu.dimension_semantics<parallel>, #tpu.dimension_semantics<arbitrary>], iteration_bounds = array<i64: 1, 1, 1>, scalar_prefetch = 0 : i64, scratch_operands = 1 : i64, tpu.core_type = #tpu.core_type<tc>, window_params = [{transform_indices = @transform_0, window_bounds = array<i64: 512, 256>}, {transform_indices = @transform_1, window_bounds = array<i64: 256, 128>}, {transform_indices = @transform_2, window_bounds = array<i64: 1, 128>}, {transform_indices = @transform_3, window_bounds = array<i64: 1, 128>}, {transform_indices = @transform_4, window_bounds = array<i64: 512, 128>}]} {
    %c0_i32 = arith.constant 0 : i32
    %0 = arith.cmpi eq, %arg2, %c0_i32 : i32
    %1 = arith.extui %0 : i1 to i32
    %c0_i32_0 = arith.constant 0 : i32
    %2 = arith.cmpi ne, %1, %c0_i32_0 : i32
    scf.if %2 {
      %cst_10 = arith.constant 0.000000e+00 : f32
      %12 = vector.broadcast %cst_10 : f32 to vector<512x128xf32>
      %c0_11 = arith.constant 0 : index
      %c0_12 = arith.constant 0 : index
      %13 = vector.load %arg8[%c0_11, %c0_12] : memref<512x128xf32, #tpu.memory_space<vmem>>, vector<512x128xf32>
      tpu.vector_store %arg8[%c0_11, %c0_12], %12 {strides = array<i32>} : memref<512x128xf32, #tpu.memory_space<vmem>>, vector<512x128xf32>,
    } else {
    }
    %c0 = arith.constant 0 : index
    %c0_1 = arith.constant 0 : index
    %3 = vector.load %arg8[%c0, %c0_1] : memref<512x128xf32, #tpu.memory_space<vmem>>, vector<512x128xf32>
    %c0_2 = arith.constant 0 : index
    %c0_3 = arith.constant 0 : index
    %4 = vector.load %arg3[%c0_2, %c0_3] : memref<512x256xbf16, #tpu.memory_space<vmem>>, vector<512x256xbf16>
    %c0_4 = arith.constant 0 : index
    %c0_5 = arith.constant 0 : index
    %5 = vector.load %arg4[%c0_4, %c0_5] : memref<256x128xbf16, #tpu.memory_space<vmem>>, vector<256x128xbf16>
    %cst = arith.constant dense<0.000000e+00> : vector<512x128xf32>
    %6 = tpu.matmul %4, %5, %cst {dimension_numbers = #tpu.dot_dimension_numbers<[1], [0], [0], [1], [0, 0, 1, 1], [], []>} : vector<512x256xbf16>, vector<256x128xbf16>, vector<512x128xf32> -> vector<512x128xf32>
    %7 = arith.addf %3, %6 : vector<512x128xf32>
    %c0_6 = arith.constant 0 : index
    %c0_7 = arith.constant 0 : index
    %8 = vector.load %arg8[%c0_6, %c0_7] : memref<512x128xf32, #tpu.memory_space<vmem>>, vector<512x128xf32>
    tpu.vector_store %arg8[%c0_6, %c0_7], %7 {strides = array<i32>} : memref<512x128xf32, #tpu.memory_space<vmem>>, vector<512x128xf32>,
    %c0_i32_8 = arith.constant 0 : i32
    %9 = arith.cmpi eq, %arg2, %c0_i32_8 : i32
    %10 = arith.extui %9 : i1 to i32
    %c0_i32_9 = arith.constant 0 : i32
    %11 = arith.cmpi ne, %10, %c0_i32_9 : i32
    scf.if %11 {
      %c0_10 = arith.constant 0 : index
      %c0_11 = arith.constant 0 : index
      %12 = vector.load %arg8[%c0_10, %c0_11] : memref<512x128xf32, #tpu.memory_space<vmem>>, vector<512x128xf32>
      %c0_12 = arith.constant 0 : index
      %c0_13 = arith.constant 0 : index
      %13 = vector.load %arg5[%c0_12, %c0_13] : memref<1x128xf32, #tpu.memory_space<vmem>>, vector<1x128xf32>
      %14 = vector.broadcast %13 : vector<1x128xf32> to vector<512x128xf32>
      %15 = arith.mulf %12, %14 : vector<512x128xf32>
      %c0_14 = arith.constant 0 : index
      %c0_15 = arith.constant 0 : index
      %16 = vector.load %arg6[%c0_14, %c0_15] : memref<1x128xf32, #tpu.memory_space<vmem>>, vector<1x128xf32>
      %17 = vector.broadcast %16 : vector<1x128xf32> to vector<512x128xf32>
      %18 = arith.addf %15, %17 : vector<512x128xf32>
      %cst_16 = arith.constant 0.000000e+00 : f32
      %19 = vector.broadcast %cst_16 : f32 to vector<512x128xf32>
      %20 = arith.maximumf %18, %19 : vector<512x128xf32>
      %21 = arith.truncf %20 : vector<512x128xf32> to vector<512x128xbf16>
      %c0_17 = arith.constant 0 : index
      %c0_18 = arith.constant 0 : index
      %22 = vector.load %arg7[%c0_17, %c0_18] : memref<512x128xbf16, #tpu.memory_space<vmem>>, vector<512x128xbf16>
      tpu.vector_store %arg7[%c0_17, %c0_18], %21 {strides = array<i32>} : memref<512x128xbf16, #tpu.memory_space<vmem>>, vector<512x128xbf16>,
    } else {
    }
    return
  }
  func.func @transform_0(%arg0: i32, %arg1: i32, %arg2: i32) -> (i32, i32) {
    %c0_i32 = arith.constant 0 : i32
    return %arg0, %arg2 : i32, i32
  }
  func.func @transform_1(%arg0: i32, %arg1: i32, %arg2: i32) -> (i32, i32) {
    %c0_i32 = arith.constant 0 : i32
    return %arg2, %arg1 : i32, i32
  }
  func.func @transform_2(%arg0: i32, %arg1: i32, %arg2: i32) -> (i32, i32) {
    %c0_i32 = arith.constant 0 : i32
    %c0_i32_0 = arith.constant 0 : i32
    return %c0_i32, %arg1 : i32, i32
  }
  func.func @transform_3(%arg0: i32, %arg1: i32, %arg2: i32) -> (i32, i32) {
    %c0_i32 = arith.constant 0 : i32
    %c0_i32_0 = arith.constant 0 : i32
    return %c0_i32, %arg1 : i32, i32
  }
  func.func @transform_4(%arg0: i32, %arg1: i32, %arg2: i32) -> (i32, i32) {
    %c0_i32 = arith.constant 0 : i32
    return %arg0, %arg1 : i32, i32
  }
}

module attributes {stable_mosaic.version = 11 : i64} {
  func.func @_maxpool_3x3_s2_kernel(%arg0: i32, %arg1: memref<1x9x72xbf16, #tpu.memory_space<vmem>>, %arg2: memref<1x9x72xbf16, #tpu.memory_space<vmem>>, %arg3: memref<1x9x72xbf16, #tpu.memory_space<vmem>>, %arg4: memref<1x9x72xbf16, #tpu.memory_space<vmem>>, %arg5: memref<1x8x64xbf16, #tpu.memory_space<vmem>>) attributes {dimension_semantics = [#tpu.dimension_semantics<parallel>], iteration_bounds = array<i64: 2>, scalar_prefetch = 0 : i64, scratch_operands = 0 : i64, tpu.core_type = #tpu.core_type<tc>, window_params = [{transform_indices = @transform_0, window_bounds = array<i64: 1, 9, 72>}, {transform_indices = @transform_1, window_bounds = array<i64: 1, 9, 72>}, {transform_indices = @transform_2, window_bounds = array<i64: 1, 9, 72>}, {transform_indices = @transform_3, window_bounds = array<i64: 1, 9, 72>}, {transform_indices = @transform_4, window_bounds = array<i64: 1, 8, 64>}]} {
    %c0 = arith.constant 0 : index
    %c0_0 = arith.constant 0 : index
    %c0_1 = arith.constant 0 : index
    %0 = vector.load %arg1[%c0, %c0_0, %c0_1] : memref<1x9x72xbf16, #tpu.memory_space<vmem>>, vector<1x9x72xbf16>
    %1 = vector.shape_cast %0 : vector<1x9x72xbf16> to vector<9x72xbf16>
    %2 = arith.extf %1 : vector<9x72xbf16> to vector<9x72xf32>
    %c0_2 = arith.constant 0 : index
    %c0_3 = arith.constant 0 : index
    %c0_4 = arith.constant 0 : index
    %3 = vector.load %arg2[%c0_2, %c0_3, %c0_4] : memref<1x9x72xbf16, #tpu.memory_space<vmem>>, vector<1x9x72xbf16>
    %4 = vector.shape_cast %3 : vector<1x9x72xbf16> to vector<9x72xbf16>
    %5 = arith.extf %4 : vector<9x72xbf16> to vector<9x72xf32>
    %c0_5 = arith.constant 0 : index
    %c0_6 = arith.constant 0 : index
    %c0_7 = arith.constant 0 : index
    %6 = vector.load %arg3[%c0_5, %c0_6, %c0_7] : memref<1x9x72xbf16, #tpu.memory_space<vmem>>, vector<1x9x72xbf16>
    %7 = vector.shape_cast %6 : vector<1x9x72xbf16> to vector<9x72xbf16>
    %8 = arith.extf %7 : vector<9x72xbf16> to vector<9x72xf32>
    %c0_8 = arith.constant 0 : index
    %c0_9 = arith.constant 0 : index
    %c0_10 = arith.constant 0 : index
    %9 = vector.load %arg4[%c0_8, %c0_9, %c0_10] : memref<1x9x72xbf16, #tpu.memory_space<vmem>>, vector<1x9x72xbf16>
    %10 = vector.shape_cast %9 : vector<1x9x72xbf16> to vector<9x72xbf16>
    %11 = arith.extf %10 : vector<9x72xbf16> to vector<9x72xf32>
    %12 = vector.extract_strided_slice %2 {offsets = [0, 0], sizes = [9, 64], strides = [1, 1]} : vector<9x72xf32> to vector<9x64xf32>
    %13 = vector.extract_strided_slice %5 {offsets = [0, 0], sizes = [9, 64], strides = [1, 1]} : vector<9x72xf32> to vector<9x64xf32>
    %14 = arith.maximumf %12, %13 : vector<9x64xf32>
    %15 = vector.extract_strided_slice %8 {offsets = [0, 0], sizes = [9, 64], strides = [1, 1]} : vector<9x72xf32> to vector<9x64xf32>
    %16 = vector.extract_strided_slice %11 {offsets = [0, 0], sizes = [9, 64], strides = [1, 1]} : vector<9x72xf32> to vector<9x64xf32>
    %17 = arith.maximumf %15, %16 : vector<9x64xf32>
    %18 = arith.maximumf %14, %17 : vector<9x64xf32>
    %19 = vector.extract_strided_slice %2 {offsets = [0, 8], sizes = [9, 64], strides = [1, 1]} : vector<9x72xf32> to vector<9x64xf32>
    %20 = vector.extract_strided_slice %8 {offsets = [0, 8], sizes = [9, 64], strides = [1, 1]} : vector<9x72xf32> to vector<9x64xf32>
    %21 = arith.maximumf %19, %20 : vector<9x64xf32>
    %22 = arith.maximumf %18, %21 : vector<9x64xf32>
    %23 = vector.extract_strided_slice %2 {offsets = [0, 0], sizes = [9, 64], strides = [1, 1]} : vector<9x72xf32> to vector<9x64xf32>
    %24 = vector.extract_strided_slice %5 {offsets = [0, 0], sizes = [9, 64], strides = [1, 1]} : vector<9x72xf32> to vector<9x64xf32>
    %25 = arith.maximumf %23, %24 : vector<9x64xf32>
    %26 = vector.extract_strided_slice %2 {offsets = [0, 8], sizes = [9, 64], strides = [1, 1]} : vector<9x72xf32> to vector<9x64xf32>
    %27 = arith.maximumf %25, %26 : vector<9x64xf32>
    %28 = vector.extract_strided_slice %22 {offsets = [0, 0], sizes = [8, 64], strides = [1, 1]} : vector<9x64xf32> to vector<8x64xf32>
    %29 = vector.extract_strided_slice %27 {offsets = [1, 0], sizes = [8, 64], strides = [1, 1]} : vector<9x64xf32> to vector<8x64xf32>
    %30 = arith.maximumf %28, %29 : vector<8x64xf32>
    %31 = arith.truncf %30 : vector<8x64xf32> to vector<8x64xbf16>
    %c0_11 = arith.constant 0 : index
    %c0_12 = arith.constant 0 : index
    %c0_13 = arith.constant 0 : index
    %32 = vector.load %arg5[%c0_11, %c0_12, %c0_13] : memref<1x8x64xbf16, #tpu.memory_space<vmem>>, vector<1x8x64xbf16>
    %33 = vector.shape_cast %32 : vector<1x8x64xbf16> to vector<8x64xbf16>
    %34 = vector.shape_cast %31 : vector<8x64xbf16> to vector<1x8x64xbf16>
    tpu.vector_store %arg5[%c0_11, %c0_12, %c0_13], %34 {strides = array<i32>} : memref<1x8x64xbf16, #tpu.memory_space<vmem>>, vector<1x8x64xbf16>,
    return
  }
  func.func @transform_0(%arg0: i32) -> (i32, i32, i32) {
    %c0_i32 = arith.constant 0 : i32
    %c0_i32_0 = arith.constant 0 : i32
    %c0_i32_1 = arith.constant 0 : i32
    return %arg0, %c0_i32, %c0_i32_0 : i32, i32, i32
  }
  func.func @transform_1(%arg0: i32) -> (i32, i32, i32) {
    %c0_i32 = arith.constant 0 : i32
    %c0_i32_0 = arith.constant 0 : i32
    %c0_i32_1 = arith.constant 0 : i32
    return %arg0, %c0_i32, %c0_i32_0 : i32, i32, i32
  }
  func.func @transform_2(%arg0: i32) -> (i32, i32, i32) {
    %c0_i32 = arith.constant 0 : i32
    %c0_i32_0 = arith.constant 0 : i32
    %c0_i32_1 = arith.constant 0 : i32
    return %arg0, %c0_i32, %c0_i32_0 : i32, i32, i32
  }
  func.func @transform_3(%arg0: i32) -> (i32, i32, i32) {
    %c0_i32 = arith.constant 0 : i32
    %c0_i32_0 = arith.constant 0 : i32
    %c0_i32_1 = arith.constant 0 : i32
    return %arg0, %c0_i32, %c0_i32_0 : i32, i32, i32
  }
  func.func @transform_4(%arg0: i32) -> (i32, i32, i32) {
    %c0_i32 = arith.constant 0 : i32
    %c0_i32_0 = arith.constant 0 : i32
    %c0_i32_1 = arith.constant 0 : i32
    return %arg0, %c0_i32, %c0_i32_0 : i32, i32, i32
  }
}

module attributes {stable_mosaic.version = 11 : i64} {
  func.func @kernel(%arg0: i32, %arg1: i32, %arg2: i32, %arg3: memref<128x128xbf16, #tpu.memory_space<vmem>>, %arg4: memref<128x128xbf16, #tpu.memory_space<vmem>>, %arg5: memref<1x128xf32, #tpu.memory_space<vmem>>, %arg6: memref<1x128xf32, #tpu.memory_space<vmem>>, %arg7: memref<128x128xbf16, #tpu.memory_space<vmem>>, %arg8: memref<128x128xf32, #tpu.memory_space<vmem>>) attributes {dimension_semantics = [#tpu.dimension_semantics<parallel>, #tpu.dimension_semantics<parallel>, #tpu.dimension_semantics<arbitrary>], iteration_bounds = array<i64: 1, 1, 1>, scalar_prefetch = 0 : i64, scratch_operands = 1 : i64, tpu.core_type = #tpu.core_type<tc>, window_params = [{transform_indices = @transform_0, window_bounds = array<i64: 128, 128>}, {transform_indices = @transform_1, window_bounds = array<i64: 128, 128>}, {transform_indices = @transform_2, window_bounds = array<i64: 1, 128>}, {transform_indices = @transform_3, window_bounds = array<i64: 1, 128>}, {transform_indices = @transform_4, window_bounds = array<i64: 128, 128>}]} {
    %c0_i32 = arith.constant 0 : i32
    %0 = arith.cmpi eq, %arg2, %c0_i32 : i32
    %1 = arith.extui %0 : i1 to i32
    %c0_i32_0 = arith.constant 0 : i32
    %2 = arith.cmpi ne, %1, %c0_i32_0 : i32
    scf.if %2 {
      %cst_10 = arith.constant 0.000000e+00 : f32
      %12 = vector.broadcast %cst_10 : f32 to vector<128x128xf32>
      %c0_11 = arith.constant 0 : index
      %c0_12 = arith.constant 0 : index
      %13 = vector.load %arg8[%c0_11, %c0_12] : memref<128x128xf32, #tpu.memory_space<vmem>>, vector<128x128xf32>
      tpu.vector_store %arg8[%c0_11, %c0_12], %12 {strides = array<i32>} : memref<128x128xf32, #tpu.memory_space<vmem>>, vector<128x128xf32>,
    } else {
    }
    %c0 = arith.constant 0 : index
    %c0_1 = arith.constant 0 : index
    %3 = vector.load %arg8[%c0, %c0_1] : memref<128x128xf32, #tpu.memory_space<vmem>>, vector<128x128xf32>
    %c0_2 = arith.constant 0 : index
    %c0_3 = arith.constant 0 : index
    %4 = vector.load %arg3[%c0_2, %c0_3] : memref<128x128xbf16, #tpu.memory_space<vmem>>, vector<128x128xbf16>
    %c0_4 = arith.constant 0 : index
    %c0_5 = arith.constant 0 : index
    %5 = vector.load %arg4[%c0_4, %c0_5] : memref<128x128xbf16, #tpu.memory_space<vmem>>, vector<128x128xbf16>
    %cst = arith.constant dense<0.000000e+00> : vector<128x128xf32>
    %6 = tpu.matmul %4, %5, %cst {dimension_numbers = #tpu.dot_dimension_numbers<[1], [0], [0], [1], [0, 0, 1, 1], [], []>} : vector<128x128xbf16>, vector<128x128xbf16>, vector<128x128xf32> -> vector<128x128xf32>
    %7 = arith.addf %3, %6 : vector<128x128xf32>
    %c0_6 = arith.constant 0 : index
    %c0_7 = arith.constant 0 : index
    %8 = vector.load %arg8[%c0_6, %c0_7] : memref<128x128xf32, #tpu.memory_space<vmem>>, vector<128x128xf32>
    tpu.vector_store %arg8[%c0_6, %c0_7], %7 {strides = array<i32>} : memref<128x128xf32, #tpu.memory_space<vmem>>, vector<128x128xf32>,
    %c0_i32_8 = arith.constant 0 : i32
    %9 = arith.cmpi eq, %arg2, %c0_i32_8 : i32
    %10 = arith.extui %9 : i1 to i32
    %c0_i32_9 = arith.constant 0 : i32
    %11 = arith.cmpi ne, %10, %c0_i32_9 : i32
    scf.if %11 {
      %c0_10 = arith.constant 0 : index
      %c0_11 = arith.constant 0 : index
      %12 = vector.load %arg8[%c0_10, %c0_11] : memref<128x128xf32, #tpu.memory_space<vmem>>, vector<128x128xf32>
      %c0_12 = arith.constant 0 : index
      %c0_13 = arith.constant 0 : index
      %13 = vector.load %arg5[%c0_12, %c0_13] : memref<1x128xf32, #tpu.memory_space<vmem>>, vector<1x128xf32>
      %14 = vector.broadcast %13 : vector<1x128xf32> to vector<128x128xf32>
      %15 = arith.mulf %12, %14 : vector<128x128xf32>
      %c0_14 = arith.constant 0 : index
      %c0_15 = arith.constant 0 : index
      %16 = vector.load %arg6[%c0_14, %c0_15] : memref<1x128xf32, #tpu.memory_space<vmem>>, vector<1x128xf32>
      %17 = vector.broadcast %16 : vector<1x128xf32> to vector<128x128xf32>
      %18 = arith.addf %15, %17 : vector<128x128xf32>
      %cst_16 = arith.constant 0.000000e+00 : f32
      %19 = vector.broadcast %cst_16 : f32 to vector<128x128xf32>
      %20 = arith.maximumf %18, %19 : vector<128x128xf32>
      %21 = arith.truncf %20 : vector<128x128xf32> to vector<128x128xbf16>
      %c0_17 = arith.constant 0 : index
      %c0_18 = arith.constant 0 : index
      %22 = vector.load %arg7[%c0_17, %c0_18] : memref<128x128xbf16, #tpu.memory_space<vmem>>, vector<128x128xbf16>
      tpu.vector_store %arg7[%c0_17, %c0_18], %21 {strides = array<i32>} : memref<128x128xbf16, #tpu.memory_space<vmem>>, vector<128x128xbf16>,
    } else {
    }
    return
  }
  func.func @transform_0(%arg0: i32, %arg1: i32, %arg2: i32) -> (i32, i32) {
    %c0_i32 = arith.constant 0 : i32
    return %arg0, %arg2 : i32, i32
  }
  func.func @transform_1(%arg0: i32, %arg1: i32, %arg2: i32) -> (i32, i32) {
    %c0_i32 = arith.constant 0 : i32
    return %arg2, %arg1 : i32, i32
  }
  func.func @transform_2(%arg0: i32, %arg1: i32, %arg2: i32) -> (i32, i32) {
    %c0_i32 = arith.constant 0 : i32
    %c0_i32_0 = arith.constant 0 : i32
    return %c0_i32, %arg1 : i32, i32
  }
  func.func @transform_3(%arg0: i32, %arg1: i32, %arg2: i32) -> (i32, i32) {
    %c0_i32 = arith.constant 0 : i32
    %c0_i32_0 = arith.constant 0 : i32
    return %c0_i32, %arg1 : i32, i32
  }
  func.func @transform_4(%arg0: i32, %arg1: i32, %arg2: i32) -> (i32, i32) {
    %c0_i32 = arith.constant 0 : i32
    return %arg0, %arg1 : i32, i32
  }
}

module attributes {stable_mosaic.version = 11 : i64} {
  func.func @kernel(%arg0: i32, %arg1: i32, %arg2: i32, %arg3: memref<128x128xbf16, #tpu.memory_space<vmem>>, %arg4: memref<128x128xbf16, #tpu.memory_space<vmem>>, %arg5: memref<1x128xf32, #tpu.memory_space<vmem>>, %arg6: memref<1x128xf32, #tpu.memory_space<vmem>>, %arg7: memref<128x128xbf16, #tpu.memory_space<vmem>>, %arg8: memref<128x128xbf16, #tpu.memory_space<vmem>>, %arg9: memref<128x128xf32, #tpu.memory_space<vmem>>) attributes {dimension_semantics = [#tpu.dimension_semantics<parallel>, #tpu.dimension_semantics<parallel>, #tpu.dimension_semantics<arbitrary>], iteration_bounds = array<i64: 1, 1, 1>, scalar_prefetch = 0 : i64, scratch_operands = 1 : i64, tpu.core_type = #tpu.core_type<tc>, window_params = [{transform_indices = @transform_0, window_bounds = array<i64: 128, 128>}, {transform_indices = @transform_1, window_bounds = array<i64: 128, 128>}, {transform_indices = @transform_2, window_bounds = array<i64: 1, 128>}, {transform_indices = @transform_3, window_bounds = array<i64: 1, 128>}, {transform_indices = @transform_4, window_bounds = array<i64: 128, 128>}, {transform_indices = @transform_5, window_bounds = array<i64: 128, 128>}]} {
    %c0_i32 = arith.constant 0 : i32
    %0 = arith.cmpi eq, %arg2, %c0_i32 : i32
    %1 = arith.extui %0 : i1 to i32
    %c0_i32_0 = arith.constant 0 : i32
    %2 = arith.cmpi ne, %1, %c0_i32_0 : i32
    scf.if %2 {
      %cst_10 = arith.constant 0.000000e+00 : f32
      %12 = vector.broadcast %cst_10 : f32 to vector<128x128xf32>
      %c0_11 = arith.constant 0 : index
      %c0_12 = arith.constant 0 : index
      %13 = vector.load %arg9[%c0_11, %c0_12] : memref<128x128xf32, #tpu.memory_space<vmem>>, vector<128x128xf32>
      tpu.vector_store %arg9[%c0_11, %c0_12], %12 {strides = array<i32>} : memref<128x128xf32, #tpu.memory_space<vmem>>, vector<128x128xf32>,
    } else {
    }
    %c0 = arith.constant 0 : index
    %c0_1 = arith.constant 0 : index
    %3 = vector.load %arg9[%c0, %c0_1] : memref<128x128xf32, #tpu.memory_space<vmem>>, vector<128x128xf32>
    %c0_2 = arith.constant 0 : index
    %c0_3 = arith.constant 0 : index
    %4 = vector.load %arg3[%c0_2, %c0_3] : memref<128x128xbf16, #tpu.memory_space<vmem>>, vector<128x128xbf16>
    %c0_4 = arith.constant 0 : index
    %c0_5 = arith.constant 0 : index
    %5 = vector.load %arg4[%c0_4, %c0_5] : memref<128x128xbf16, #tpu.memory_space<vmem>>, vector<128x128xbf16>
    %cst = arith.constant dense<0.000000e+00> : vector<128x128xf32>
    %6 = tpu.matmul %4, %5, %cst {dimension_numbers = #tpu.dot_dimension_numbers<[1], [0], [0], [1], [0, 0, 1, 1], [], []>} : vector<128x128xbf16>, vector<128x128xbf16>, vector<128x128xf32> -> vector<128x128xf32>
    %7 = arith.addf %3, %6 : vector<128x128xf32>
    %c0_6 = arith.constant 0 : index
    %c0_7 = arith.constant 0 : index
    %8 = vector.load %arg9[%c0_6, %c0_7] : memref<128x128xf32, #tpu.memory_space<vmem>>, vector<128x128xf32>
    tpu.vector_store %arg9[%c0_6, %c0_7], %7 {strides = array<i32>} : memref<128x128xf32, #tpu.memory_space<vmem>>, vector<128x128xf32>,
    %c0_i32_8 = arith.constant 0 : i32
    %9 = arith.cmpi eq, %arg2, %c0_i32_8 : i32
    %10 = arith.extui %9 : i1 to i32
    %c0_i32_9 = arith.constant 0 : i32
    %11 = arith.cmpi ne, %10, %c0_i32_9 : i32
    scf.if %11 {
      %c0_10 = arith.constant 0 : index
      %c0_11 = arith.constant 0 : index
      %12 = vector.load %arg9[%c0_10, %c0_11] : memref<128x128xf32, #tpu.memory_space<vmem>>, vector<128x128xf32>
      %c0_12 = arith.constant 0 : index
      %c0_13 = arith.constant 0 : index
      %13 = vector.load %arg5[%c0_12, %c0_13] : memref<1x128xf32, #tpu.memory_space<vmem>>, vector<1x128xf32>
      %14 = vector.broadcast %13 : vector<1x128xf32> to vector<128x128xf32>
      %15 = arith.mulf %12, %14 : vector<128x128xf32>
      %c0_14 = arith.constant 0 : index
      %c0_15 = arith.constant 0 : index
      %16 = vector.load %arg6[%c0_14, %c0_15] : memref<1x128xf32, #tpu.memory_space<vmem>>, vector<1x128xf32>
      %17 = vector.broadcast %16 : vector<1x128xf32> to vector<128x128xf32>
      %18 = arith.addf %15, %17 : vector<128x128xf32>
      %c0_16 = arith.constant 0 : index
      %c0_17 = arith.constant 0 : index
      %19 = vector.load %arg7[%c0_16, %c0_17] : memref<128x128xbf16, #tpu.memory_space<vmem>>, vector<128x128xbf16>
      %20 = arith.extf %19 : vector<128x128xbf16> to vector<128x128xf32>
      %21 = arith.addf %18, %20 : vector<128x128xf32>
      %cst_18 = arith.constant 0.000000e+00 : f32
      %22 = vector.broadcast %cst_18 : f32 to vector<128x128xf32>
      %23 = arith.maximumf %21, %22 : vector<128x128xf32>
      %24 = arith.truncf %23 : vector<128x128xf32> to vector<128x128xbf16>
      %c0_19 = arith.constant 0 : index
      %c0_20 = arith.constant 0 : index
      %25 = vector.load %arg8[%c0_19, %c0_20] : memref<128x128xbf16, #tpu.memory_space<vmem>>, vector<128x128xbf16>
      tpu.vector_store %arg8[%c0_19, %c0_20], %24 {strides = array<i32>} : memref<128x128xbf16, #tpu.memory_space<vmem>>, vector<128x128xbf16>,
    } else {
    }
    return
  }
  func.func @transform_0(%arg0: i32, %arg1: i32, %arg2: i32) -> (i32, i32) {
    %c0_i32 = arith.constant 0 : i32
    return %arg0, %arg2 : i32, i32
  }
  func.func @transform_1(%arg0: i32, %arg1: i32, %arg2: i32) -> (i32, i32) {
    %c0_i32 = arith.constant 0 : i32
    return %arg2, %arg1 : i32, i32
  }
  func.func @transform_2(%arg0: i32, %arg1: i32, %arg2: i32) -> (i32, i32) {
    %c0_i32 = arith.constant 0 : i32
    %c0_i32_0 = arith.constant 0 : i32
    return %c0_i32, %arg1 : i32, i32
  }
  func.func @transform_3(%arg0: i32, %arg1: i32, %arg2: i32) -> (i32, i32) {
    %c0_i32 = arith.constant 0 : i32
    %c0_i32_0 = arith.constant 0 : i32
    return %c0_i32, %arg1 : i32, i32
  }
  func.func @transform_4(%arg0: i32, %arg1: i32, %arg2: i32) -> (i32, i32) {
    %c0_i32 = arith.constant 0 : i32
    return %arg0, %arg1 : i32, i32
  }
  func.func @transform_5(%arg0: i32, %arg1: i32, %arg2: i32) -> (i32, i32) {
    %c0_i32 = arith.constant 0 : i32
    return %arg0, %arg1 : i32, i32
  }
}

module attributes {stable_mosaic.version = 11 : i64} {
  func.func @kernel(%arg0: i32, %arg1: i32, %arg2: i32, %arg3: memref<32x128xbf16, #tpu.memory_space<vmem>>, %arg4: memref<128x128xbf16, #tpu.memory_space<vmem>>, %arg5: memref<1x128xf32, #tpu.memory_space<vmem>>, %arg6: memref<1x128xf32, #tpu.memory_space<vmem>>, %arg7: memref<32x128xbf16, #tpu.memory_space<vmem>>, %arg8: memref<32x128xf32, #tpu.memory_space<vmem>>) attributes {dimension_semantics = [#tpu.dimension_semantics<parallel>, #tpu.dimension_semantics<parallel>, #tpu.dimension_semantics<arbitrary>], iteration_bounds = array<i64: 1, 1, 1>, scalar_prefetch = 0 : i64, scratch_operands = 1 : i64, tpu.core_type = #tpu.core_type<tc>, window_params = [{transform_indices = @transform_0, window_bounds = array<i64: 32, 128>}, {transform_indices = @transform_1, window_bounds = array<i64: 128, 128>}, {transform_indices = @transform_2, window_bounds = array<i64: 1, 128>}, {transform_indices = @transform_3, window_bounds = array<i64: 1, 128>}, {transform_indices = @transform_4, window_bounds = array<i64: 32, 128>}]} {
    %c0_i32 = arith.constant 0 : i32
    %0 = arith.cmpi eq, %arg2, %c0_i32 : i32
    %1 = arith.extui %0 : i1 to i32
    %c0_i32_0 = arith.constant 0 : i32
    %2 = arith.cmpi ne, %1, %c0_i32_0 : i32
    scf.if %2 {
      %cst_10 = arith.constant 0.000000e+00 : f32
      %12 = vector.broadcast %cst_10 : f32 to vector<32x128xf32>
      %c0_11 = arith.constant 0 : index
      %c0_12 = arith.constant 0 : index
      %13 = vector.load %arg8[%c0_11, %c0_12] : memref<32x128xf32, #tpu.memory_space<vmem>>, vector<32x128xf32>
      tpu.vector_store %arg8[%c0_11, %c0_12], %12 {strides = array<i32>} : memref<32x128xf32, #tpu.memory_space<vmem>>, vector<32x128xf32>,
    } else {
    }
    %c0 = arith.constant 0 : index
    %c0_1 = arith.constant 0 : index
    %3 = vector.load %arg8[%c0, %c0_1] : memref<32x128xf32, #tpu.memory_space<vmem>>, vector<32x128xf32>
    %c0_2 = arith.constant 0 : index
    %c0_3 = arith.constant 0 : index
    %4 = vector.load %arg3[%c0_2, %c0_3] : memref<32x128xbf16, #tpu.memory_space<vmem>>, vector<32x128xbf16>
    %c0_4 = arith.constant 0 : index
    %c0_5 = arith.constant 0 : index
    %5 = vector.load %arg4[%c0_4, %c0_5] : memref<128x128xbf16, #tpu.memory_space<vmem>>, vector<128x128xbf16>
    %cst = arith.constant dense<0.000000e+00> : vector<32x128xf32>
    %6 = tpu.matmul %4, %5, %cst {dimension_numbers = #tpu.dot_dimension_numbers<[1], [0], [0], [1], [0, 0, 1, 1], [], []>} : vector<32x128xbf16>, vector<128x128xbf16>, vector<32x128xf32> -> vector<32x128xf32>
    %7 = arith.addf %3, %6 : vector<32x128xf32>
    %c0_6 = arith.constant 0 : index
    %c0_7 = arith.constant 0 : index
    %8 = vector.load %arg8[%c0_6, %c0_7] : memref<32x128xf32, #tpu.memory_space<vmem>>, vector<32x128xf32>
    tpu.vector_store %arg8[%c0_6, %c0_7], %7 {strides = array<i32>} : memref<32x128xf32, #tpu.memory_space<vmem>>, vector<32x128xf32>,
    %c0_i32_8 = arith.constant 0 : i32
    %9 = arith.cmpi eq, %arg2, %c0_i32_8 : i32
    %10 = arith.extui %9 : i1 to i32
    %c0_i32_9 = arith.constant 0 : i32
    %11 = arith.cmpi ne, %10, %c0_i32_9 : i32
    scf.if %11 {
      %c0_10 = arith.constant 0 : index
      %c0_11 = arith.constant 0 : index
      %12 = vector.load %arg8[%c0_10, %c0_11] : memref<32x128xf32, #tpu.memory_space<vmem>>, vector<32x128xf32>
      %c0_12 = arith.constant 0 : index
      %c0_13 = arith.constant 0 : index
      %13 = vector.load %arg5[%c0_12, %c0_13] : memref<1x128xf32, #tpu.memory_space<vmem>>, vector<1x128xf32>
      %14 = vector.broadcast %13 : vector<1x128xf32> to vector<32x128xf32>
      %15 = arith.mulf %12, %14 : vector<32x128xf32>
      %c0_14 = arith.constant 0 : index
      %c0_15 = arith.constant 0 : index
      %16 = vector.load %arg6[%c0_14, %c0_15] : memref<1x128xf32, #tpu.memory_space<vmem>>, vector<1x128xf32>
      %17 = vector.broadcast %16 : vector<1x128xf32> to vector<32x128xf32>
      %18 = arith.addf %15, %17 : vector<32x128xf32>
      %cst_16 = arith.constant 0.000000e+00 : f32
      %19 = vector.broadcast %cst_16 : f32 to vector<32x128xf32>
      %20 = arith.maximumf %18, %19 : vector<32x128xf32>
      %21 = arith.truncf %20 : vector<32x128xf32> to vector<32x128xbf16>
      %c0_17 = arith.constant 0 : index
      %c0_18 = arith.constant 0 : index
      %22 = vector.load %arg7[%c0_17, %c0_18] : memref<32x128xbf16, #tpu.memory_space<vmem>>, vector<32x128xbf16>
      tpu.vector_store %arg7[%c0_17, %c0_18], %21 {strides = array<i32>} : memref<32x128xbf16, #tpu.memory_space<vmem>>, vector<32x128xbf16>,
    } else {
    }
    return
  }
  func.func @transform_0(%arg0: i32, %arg1: i32, %arg2: i32) -> (i32, i32) {
    %c0_i32 = arith.constant 0 : i32
    return %arg0, %arg2 : i32, i32
  }
  func.func @transform_1(%arg0: i32, %arg1: i32, %arg2: i32) -> (i32, i32) {
    %c0_i32 = arith.constant 0 : i32
    return %arg2, %arg1 : i32, i32
  }
  func.func @transform_2(%arg0: i32, %arg1: i32, %arg2: i32) -> (i32, i32) {
    %c0_i32 = arith.constant 0 : i32
    %c0_i32_0 = arith.constant 0 : i32
    return %c0_i32, %arg1 : i32, i32
  }
  func.func @transform_3(%arg0: i32, %arg1: i32, %arg2: i32) -> (i32, i32) {
    %c0_i32 = arith.constant 0 : i32
    %c0_i32_0 = arith.constant 0 : i32
    return %c0_i32, %arg1 : i32, i32
  }
  func.func @transform_4(%arg0: i32, %arg1: i32, %arg2: i32) -> (i32, i32) {
    %c0_i32 = arith.constant 0 : i32
    return %arg0, %arg1 : i32, i32
  }
}

module attributes {stable_mosaic.version = 11 : i64} {
  func.func @kernel(%arg0: i32, %arg1: i32, %arg2: i32, %arg3: memref<32x128xbf16, #tpu.memory_space<vmem>>, %arg4: memref<128x128xbf16, #tpu.memory_space<vmem>>, %arg5: memref<1x128xf32, #tpu.memory_space<vmem>>, %arg6: memref<1x128xf32, #tpu.memory_space<vmem>>, %arg7: memref<32x128xbf16, #tpu.memory_space<vmem>>, %arg8: memref<32x128xf32, #tpu.memory_space<vmem>>) attributes {dimension_semantics = [#tpu.dimension_semantics<parallel>, #tpu.dimension_semantics<parallel>, #tpu.dimension_semantics<arbitrary>], iteration_bounds = array<i64: 1, 1, 1>, scalar_prefetch = 0 : i64, scratch_operands = 1 : i64, tpu.core_type = #tpu.core_type<tc>, window_params = [{transform_indices = @transform_0, window_bounds = array<i64: 32, 128>}, {transform_indices = @transform_1, window_bounds = array<i64: 128, 128>}, {transform_indices = @transform_2, window_bounds = array<i64: 1, 128>}, {transform_indices = @transform_3, window_bounds = array<i64: 1, 128>}, {transform_indices = @transform_4, window_bounds = array<i64: 32, 128>}]} {
    %c0_i32 = arith.constant 0 : i32
    %0 = arith.cmpi eq, %arg2, %c0_i32 : i32
    %1 = arith.extui %0 : i1 to i32
    %c0_i32_0 = arith.constant 0 : i32
    %2 = arith.cmpi ne, %1, %c0_i32_0 : i32
    scf.if %2 {
      %cst_10 = arith.constant 0.000000e+00 : f32
      %12 = vector.broadcast %cst_10 : f32 to vector<32x128xf32>
      %c0_11 = arith.constant 0 : index
      %c0_12 = arith.constant 0 : index
      %13 = vector.load %arg8[%c0_11, %c0_12] : memref<32x128xf32, #tpu.memory_space<vmem>>, vector<32x128xf32>
      tpu.vector_store %arg8[%c0_11, %c0_12], %12 {strides = array<i32>} : memref<32x128xf32, #tpu.memory_space<vmem>>, vector<32x128xf32>,
    } else {
    }
    %c0 = arith.constant 0 : index
    %c0_1 = arith.constant 0 : index
    %3 = vector.load %arg8[%c0, %c0_1] : memref<32x128xf32, #tpu.memory_space<vmem>>, vector<32x128xf32>
    %c0_2 = arith.constant 0 : index
    %c0_3 = arith.constant 0 : index
    %4 = vector.load %arg3[%c0_2, %c0_3] : memref<32x128xbf16, #tpu.memory_space<vmem>>, vector<32x128xbf16>
    %c0_4 = arith.constant 0 : index
    %c0_5 = arith.constant 0 : index
    %5 = vector.load %arg4[%c0_4, %c0_5] : memref<128x128xbf16, #tpu.memory_space<vmem>>, vector<128x128xbf16>
    %cst = arith.constant dense<0.000000e+00> : vector<32x128xf32>
    %6 = tpu.matmul %4, %5, %cst {dimension_numbers = #tpu.dot_dimension_numbers<[1], [0], [0], [1], [0, 0, 1, 1], [], []>} : vector<32x128xbf16>, vector<128x128xbf16>, vector<32x128xf32> -> vector<32x128xf32>
    %7 = arith.addf %3, %6 : vector<32x128xf32>
    %c0_6 = arith.constant 0 : index
    %c0_7 = arith.constant 0 : index
    %8 = vector.load %arg8[%c0_6, %c0_7] : memref<32x128xf32, #tpu.memory_space<vmem>>, vector<32x128xf32>
    tpu.vector_store %arg8[%c0_6, %c0_7], %7 {strides = array<i32>} : memref<32x128xf32, #tpu.memory_space<vmem>>, vector<32x128xf32>,
    %c0_i32_8 = arith.constant 0 : i32
    %9 = arith.cmpi eq, %arg2, %c0_i32_8 : i32
    %10 = arith.extui %9 : i1 to i32
    %c0_i32_9 = arith.constant 0 : i32
    %11 = arith.cmpi ne, %10, %c0_i32_9 : i32
    scf.if %11 {
      %c0_10 = arith.constant 0 : index
      %c0_11 = arith.constant 0 : index
      %12 = vector.load %arg8[%c0_10, %c0_11] : memref<32x128xf32, #tpu.memory_space<vmem>>, vector<32x128xf32>
      %c0_12 = arith.constant 0 : index
      %c0_13 = arith.constant 0 : index
      %13 = vector.load %arg5[%c0_12, %c0_13] : memref<1x128xf32, #tpu.memory_space<vmem>>, vector<1x128xf32>
      %14 = vector.broadcast %13 : vector<1x128xf32> to vector<32x128xf32>
      %15 = arith.mulf %12, %14 : vector<32x128xf32>
      %c0_14 = arith.constant 0 : index
      %c0_15 = arith.constant 0 : index
      %16 = vector.load %arg6[%c0_14, %c0_15] : memref<1x128xf32, #tpu.memory_space<vmem>>, vector<1x128xf32>
      %17 = vector.broadcast %16 : vector<1x128xf32> to vector<32x128xf32>
      %18 = arith.addf %15, %17 : vector<32x128xf32>
      %19 = arith.truncf %18 : vector<32x128xf32> to vector<32x128xbf16>
      %c0_16 = arith.constant 0 : index
      %c0_17 = arith.constant 0 : index
      %20 = vector.load %arg7[%c0_16, %c0_17] : memref<32x128xbf16, #tpu.memory_space<vmem>>, vector<32x128xbf16>
      tpu.vector_store %arg7[%c0_16, %c0_17], %19 {strides = array<i32>} : memref<32x128xbf16, #tpu.memory_space<vmem>>, vector<32x128xbf16>,
    } else {
    }
    return
  }
  func.func @transform_0(%arg0: i32, %arg1: i32, %arg2: i32) -> (i32, i32) {
    %c0_i32 = arith.constant 0 : i32
    return %arg0, %arg2 : i32, i32
  }
  func.func @transform_1(%arg0: i32, %arg1: i32, %arg2: i32) -> (i32, i32) {
    %c0_i32 = arith.constant 0 : i32
    return %arg2, %arg1 : i32, i32
  }
  func.func @transform_2(%arg0: i32, %arg1: i32, %arg2: i32) -> (i32, i32) {
    %c0_i32 = arith.constant 0 : i32
    %c0_i32_0 = arith.constant 0 : i32
    return %c0_i32, %arg1 : i32, i32
  }
  func.func @transform_3(%arg0: i32, %arg1: i32, %arg2: i32) -> (i32, i32) {
    %c0_i32 = arith.constant 0 : i32
    %c0_i32_0 = arith.constant 0 : i32
    return %c0_i32, %arg1 : i32, i32
  }
  func.func @transform_4(%arg0: i32, %arg1: i32, %arg2: i32) -> (i32, i32) {
    %c0_i32 = arith.constant 0 : i32
    return %arg0, %arg1 : i32, i32
  }
}

module attributes {stable_mosaic.version = 11 : i64} {
  func.func @kernel(%arg0: i32, %arg1: i32, %arg2: i32, %arg3: memref<32x256xbf16, #tpu.memory_space<vmem>>, %arg4: memref<256x128xbf16, #tpu.memory_space<vmem>>, %arg5: memref<1x128xf32, #tpu.memory_space<vmem>>, %arg6: memref<1x128xf32, #tpu.memory_space<vmem>>, %arg7: memref<32x128xbf16, #tpu.memory_space<vmem>>, %arg8: memref<32x128xbf16, #tpu.memory_space<vmem>>, %arg9: memref<32x128xf32, #tpu.memory_space<vmem>>) attributes {dimension_semantics = [#tpu.dimension_semantics<parallel>, #tpu.dimension_semantics<parallel>, #tpu.dimension_semantics<arbitrary>], iteration_bounds = array<i64: 1, 1, 1>, scalar_prefetch = 0 : i64, scratch_operands = 1 : i64, tpu.core_type = #tpu.core_type<tc>, window_params = [{transform_indices = @transform_0, window_bounds = array<i64: 32, 256>}, {transform_indices = @transform_1, window_bounds = array<i64: 256, 128>}, {transform_indices = @transform_2, window_bounds = array<i64: 1, 128>}, {transform_indices = @transform_3, window_bounds = array<i64: 1, 128>}, {transform_indices = @transform_4, window_bounds = array<i64: 32, 128>}, {transform_indices = @transform_5, window_bounds = array<i64: 32, 128>}]} {
    %c0_i32 = arith.constant 0 : i32
    %0 = arith.cmpi eq, %arg2, %c0_i32 : i32
    %1 = arith.extui %0 : i1 to i32
    %c0_i32_0 = arith.constant 0 : i32
    %2 = arith.cmpi ne, %1, %c0_i32_0 : i32
    scf.if %2 {
      %cst_10 = arith.constant 0.000000e+00 : f32
      %12 = vector.broadcast %cst_10 : f32 to vector<32x128xf32>
      %c0_11 = arith.constant 0 : index
      %c0_12 = arith.constant 0 : index
      %13 = vector.load %arg9[%c0_11, %c0_12] : memref<32x128xf32, #tpu.memory_space<vmem>>, vector<32x128xf32>
      tpu.vector_store %arg9[%c0_11, %c0_12], %12 {strides = array<i32>} : memref<32x128xf32, #tpu.memory_space<vmem>>, vector<32x128xf32>,
    } else {
    }
    %c0 = arith.constant 0 : index
    %c0_1 = arith.constant 0 : index
    %3 = vector.load %arg9[%c0, %c0_1] : memref<32x128xf32, #tpu.memory_space<vmem>>, vector<32x128xf32>
    %c0_2 = arith.constant 0 : index
    %c0_3 = arith.constant 0 : index
    %4 = vector.load %arg3[%c0_2, %c0_3] : memref<32x256xbf16, #tpu.memory_space<vmem>>, vector<32x256xbf16>
    %c0_4 = arith.constant 0 : index
    %c0_5 = arith.constant 0 : index
    %5 = vector.load %arg4[%c0_4, %c0_5] : memref<256x128xbf16, #tpu.memory_space<vmem>>, vector<256x128xbf16>
    %cst = arith.constant dense<0.000000e+00> : vector<32x128xf32>
    %6 = tpu.matmul %4, %5, %cst {dimension_numbers = #tpu.dot_dimension_numbers<[1], [0], [0], [1], [0, 0, 1, 1], [], []>} : vector<32x256xbf16>, vector<256x128xbf16>, vector<32x128xf32> -> vector<32x128xf32>
    %7 = arith.addf %3, %6 : vector<32x128xf32>
    %c0_6 = arith.constant 0 : index
    %c0_7 = arith.constant 0 : index
    %8 = vector.load %arg9[%c0_6, %c0_7] : memref<32x128xf32, #tpu.memory_space<vmem>>, vector<32x128xf32>
    tpu.vector_store %arg9[%c0_6, %c0_7], %7 {strides = array<i32>} : memref<32x128xf32, #tpu.memory_space<vmem>>, vector<32x128xf32>,
    %c0_i32_8 = arith.constant 0 : i32
    %9 = arith.cmpi eq, %arg2, %c0_i32_8 : i32
    %10 = arith.extui %9 : i1 to i32
    %c0_i32_9 = arith.constant 0 : i32
    %11 = arith.cmpi ne, %10, %c0_i32_9 : i32
    scf.if %11 {
      %c0_10 = arith.constant 0 : index
      %c0_11 = arith.constant 0 : index
      %12 = vector.load %arg9[%c0_10, %c0_11] : memref<32x128xf32, #tpu.memory_space<vmem>>, vector<32x128xf32>
      %c0_12 = arith.constant 0 : index
      %c0_13 = arith.constant 0 : index
      %13 = vector.load %arg5[%c0_12, %c0_13] : memref<1x128xf32, #tpu.memory_space<vmem>>, vector<1x128xf32>
      %14 = vector.broadcast %13 : vector<1x128xf32> to vector<32x128xf32>
      %15 = arith.mulf %12, %14 : vector<32x128xf32>
      %c0_14 = arith.constant 0 : index
      %c0_15 = arith.constant 0 : index
      %16 = vector.load %arg6[%c0_14, %c0_15] : memref<1x128xf32, #tpu.memory_space<vmem>>, vector<1x128xf32>
      %17 = vector.broadcast %16 : vector<1x128xf32> to vector<32x128xf32>
      %18 = arith.addf %15, %17 : vector<32x128xf32>
      %c0_16 = arith.constant 0 : index
      %c0_17 = arith.constant 0 : index
      %19 = vector.load %arg7[%c0_16, %c0_17] : memref<32x128xbf16, #tpu.memory_space<vmem>>, vector<32x128xbf16>
      %20 = arith.extf %19 : vector<32x128xbf16> to vector<32x128xf32>
      %21 = arith.addf %18, %20 : vector<32x128xf32>
      %cst_18 = arith.constant 0.000000e+00 : f32
      %22 = vector.broadcast %cst_18 : f32 to vector<32x128xf32>
      %23 = arith.maximumf %21, %22 : vector<32x128xf32>
      %24 = arith.truncf %23 : vector<32x128xf32> to vector<32x128xbf16>
      %c0_19 = arith.constant 0 : index
      %c0_20 = arith.constant 0 : index
      %25 = vector.load %arg8[%c0_19, %c0_20] : memref<32x128xbf16, #tpu.memory_space<vmem>>, vector<32x128xbf16>
      tpu.vector_store %arg8[%c0_19, %c0_20], %24 {strides = array<i32>} : memref<32x128xbf16, #tpu.memory_space<vmem>>, vector<32x128xbf16>,
    } else {
    }
    return
  }
  func.func @transform_0(%arg0: i32, %arg1: i32, %arg2: i32) -> (i32, i32) {
    %c0_i32 = arith.constant 0 : i32
    return %arg0, %arg2 : i32, i32
  }
  func.func @transform_1(%arg0: i32, %arg1: i32, %arg2: i32) -> (i32, i32) {
    %c0_i32 = arith.constant 0 : i32
    return %arg2, %arg1 : i32, i32
  }
  func.func @transform_2(%arg0: i32, %arg1: i32, %arg2: i32) -> (i32, i32) {
    %c0_i32 = arith.constant 0 : i32
    %c0_i32_0 = arith.constant 0 : i32
    return %c0_i32, %arg1 : i32, i32
  }
  func.func @transform_3(%arg0: i32, %arg1: i32, %arg2: i32) -> (i32, i32) {
    %c0_i32 = arith.constant 0 : i32
    %c0_i32_0 = arith.constant 0 : i32
    return %c0_i32, %arg1 : i32, i32
  }
  func.func @transform_4(%arg0: i32, %arg1: i32, %arg2: i32) -> (i32, i32) {
    %c0_i32 = arith.constant 0 : i32
    return %arg0, %arg1 : i32, i32
  }
  func.func @transform_5(%arg0: i32, %arg1: i32, %arg2: i32) -> (i32, i32) {
    %c0_i32 = arith.constant 0 : i32
    return %arg0, %arg1 : i32, i32
  }
}

module attributes {stable_mosaic.version = 11 : i64} {
  func.func @_gap_kernel(%arg0: i32, %arg1: memref<2x16x16xbf16, #tpu.memory_space<vmem>>, %arg2: memref<2x16xf32, #tpu.memory_space<vmem>>) attributes {dimension_semantics = [#tpu.dimension_semantics<arbitrary>], iteration_bounds = array<i64: 1>, scalar_prefetch = 0 : i64, scratch_operands = 0 : i64, tpu.core_type = #tpu.core_type<tc>, window_params = [{transform_indices = @transform_0, window_bounds = array<i64: 2, 16, 16>}, {pipeline_mode = #tpu.pipeline_mode<synchronous>, transform_indices = @transform_1, window_bounds = array<i64: 2, 16>}]} {
    %c0_i32 = arith.constant 0 : i32
    %0 = arith.cmpi eq, %arg0, %c0_i32 : i32
    %1 = arith.extui %0 : i1 to i32
    %c0_i32_0 = arith.constant 0 : i32
    %2 = arith.cmpi ne, %1, %c0_i32_0 : i32
    scf.if %2 {
      %cst_9 = arith.constant 0.000000e+00 : f32
      %12 = vector.broadcast %cst_9 : f32 to vector<2x16xf32>
      %c0_10 = arith.constant 0 : index
      %c0_11 = arith.constant 0 : index
      %13 = vector.load %arg2[%c0_10, %c0_11] : memref<2x16xf32, #tpu.memory_space<vmem>>, vector<2x16xf32>
      tpu.vector_store %arg2[%c0_10, %c0_11], %12 {strides = array<i32>} : memref<2x16xf32, #tpu.memory_space<vmem>>, vector<2x16xf32>,
    } else {
    }
    %c0 = arith.constant 0 : index
    %c0_1 = arith.constant 0 : index
    %3 = vector.load %arg2[%c0, %c0_1] : memref<2x16xf32, #tpu.memory_space<vmem>>, vector<2x16xf32>
    %c0_2 = arith.constant 0 : index
    %c0_3 = arith.constant 0 : index
    %c0_4 = arith.constant 0 : index
    %4 = vector.load %arg1[%c0_2, %c0_3, %c0_4] : memref<2x16x16xbf16, #tpu.memory_space<vmem>>, vector<2x16x16xbf16>
    %5 = arith.extf %4 : vector<2x16x16xbf16> to vector<2x16x16xf32>
    %cst = arith.constant dense<0.000000e+00> : vector<2x16xf32>
    %6 = vector.multi_reduction <add>, %5, %cst [1] : vector<2x16x16xf32> to vector<2x16xf32>
    %7 = arith.addf %3, %6 : vector<2x16xf32>
    %c0_5 = arith.constant 0 : index
    %c0_6 = arith.constant 0 : index
    %8 = vector.load %arg2[%c0_5, %c0_6] : memref<2x16xf32, #tpu.memory_space<vmem>>, vector<2x16xf32>
    tpu.vector_store %arg2[%c0_5, %c0_6], %7 {strides = array<i32>} : memref<2x16xf32, #tpu.memory_space<vmem>>, vector<2x16xf32>,
    %c0_i32_7 = arith.constant 0 : i32
    %9 = arith.cmpi eq, %arg0, %c0_i32_7 : i32
    %10 = arith.extui %9 : i1 to i32
    %c0_i32_8 = arith.constant 0 : i32
    %11 = arith.cmpi ne, %10, %c0_i32_8 : i32
    scf.if %11 {
      %c0_9 = arith.constant 0 : index
      %c0_10 = arith.constant 0 : index
      %12 = vector.load %arg2[%c0_9, %c0_10] : memref<2x16xf32, #tpu.memory_space<vmem>>, vector<2x16xf32>
      %cst_11 = arith.constant 6.250000e-02 : f32
      %13 = vector.broadcast %cst_11 : f32 to vector<2x16xf32>
      %14 = arith.mulf %12, %13 : vector<2x16xf32>
      %c0_12 = arith.constant 0 : index
      %c0_13 = arith.constant 0 : index
      %15 = vector.load %arg2[%c0_12, %c0_13] : memref<2x16xf32, #tpu.memory_space<vmem>>, vector<2x16xf32>
      tpu.vector_store %arg2[%c0_12, %c0_13], %14 {strides = array<i32>} : memref<2x16xf32, #tpu.memory_space<vmem>>, vector<2x16xf32>,
    } else {
    }
    return
  }
  func.func @transform_0(%arg0: i32) -> (i32, i32, i32) {
    %c0_i32 = arith.constant 0 : i32
    %c0_i32_0 = arith.constant 0 : i32
    %c0_i32_1 = arith.constant 0 : i32
    return %c0_i32, %arg0, %c0_i32_0 : i32, i32, i32
  }
  func.func @transform_1(%arg0: i32) -> (i32, i32) {
    %c0_i32 = arith.constant 0 : i32
    %c0_i32_0 = arith.constant 0 : i32
    %c0_i32_1 = arith.constant 0 : i32
    return %c0_i32, %c0_i32_0 : i32, i32
  }
}

</mosaic_0001>

<bundles_post_ra>
// kernel: resnet_forward.9
= control target key start
LH: loop header
LB: loop body
LE: loop exit
PB: predicated region body
PF: predicated region fallthrough
CT: control target
= control target key end

     0   :  { %s456_s15 = smov 0   ;;  %s486_s0 = inlined_call_operand.vmem [shape: bf16[2,9,72], index: 0, kind: input, shape index: {}]   ;;  %s487_s1 = inlined_call_operand.vmem [shape: bf16[2,9,72], index: 1, kind: input, shape index: {}]   ;;  %s488_s2 = inlined_call_operand.vmem [shape: bf16[2,9,72], index: 2, kind: input, shape index: {}]   ;;  %s489_s3 = inlined_call_operand.vmem [shape: bf16[2,9,72], index: 3, kind: input, shape index: {}]   ;;  %s490_s4 = inlined_call_operand.vmem [shape: bf16[2,8,64], index: 4, kind: output, shape index: {}]  }
   0x1 LB: > { %s388_s16 = sadd.s32 4294967295, %s428_s15   ;;  %p392_p0 = scmp.ge.s32.totalorder %s428_s15, 1  ;;  %s428_s15 = sphi %s456_s15, %s14_s15  }
   0x2   : > { %p192_p1 = scmp.lt.s32.totalorder %s428_s15, 3 }
   0x4   : > { %p193_p2 = pnand %p392_p0, %p192_p1 }
   0x5   : > { %p232_p3 = scmp.lt.s32.totalorder (!%p193_p2), %s388_s16, 1  ;;  %s430_s27 = smov (!%p193_p2), 120  }
   0x6   : > { %196 = sbr.rel (%p193_p2) target bundleno = 149 (0x95), region = 36 }
   0xb   : > { %s492_s16 = smov (!%p232_p3, %s388_s16), 1  ;;  %vm290_vm0 = vcmask 1046528   ;;  %vm297_vm1 = vcmask 519168  }
   0xc   : > { %s404_s17 = sshll.u32 %s492_s16, 3  ;;  %s401_s5 = sshll.u32 %s492_s16, 2 }
   0xd   : > { %s236_s20 = scalar_lea.vmem %s486_s0, %s404_s17  ;;  %s241_s23 = scalar_lea.vmem %s487_s1, %s404_s17 }
   0xe   : > { %v256_v0 = vld [vmem:[%s236_s20] sm:$0xf]  ;;  %v257_v1 = vld [vmem:[%s236_s20 + $0x4] sm:$0x1]  ;;  %s246_s26 = scalar_lea.vmem %s488_s2, %s404_s17  ;;  %s251_s30 = scalar_lea.vmem %s489_s3, %s404_s17 }
   0xf   : > { %v261_v2 = vld [vmem:[%s241_s23 + $0x4] sm:$0x1]  ;;  %v258_v3 = vunpack.c.l.bf16 %v256_v0  ;;  %v259_v4 = vunpack.c.l.bf16 %v257_v1  ;;  %v264_v6 = vld [vmem:[%s246_s26] sm:$0xf]  ;;  %s255_s8 = scalar_lea.vmem %s490_s4, %s401_s5 }
  0x10   : > { %v263_v5 = vunpack.c.l.bf16 %v261_v2  ;;  %v265_v9 = vunpack.c.l.bf16 %v264_v6  ;;  %v260_v11 = vld [vmem:[%s241_s23] sm:$0xf] }
  0x11   : > { %v417_v8 = vpack.i.bf16 %v259_v4, %v258_v3  ;;  %v266_v12 = vld [vmem:[%s251_s30] sm:$0xf]  ;;  %v262_v13 = vunpack.c.l.bf16 %v260_v11 }
  0x12   : > { %v269_v7 = vmax.f32 %v259_v4, %v263_v5  ;;  %v272_v10 = vmax.f32 %v258_v3, %v265_v9  ;;  %v267_v14 = vunpack.c.l.bf16 %v266_v12 }
  0x13   : > { %418 = vrot.lane.b32.xlu0 %v417_v8, %s430_s27  ;;  %v268_v15 = vmax.f32 %v258_v3, %v262_v13 }
  0x14   : > { %v270_v19 = vmax.f32 %v265_v9, %v267_v14 }
  0x16   : > { %v271_v24 = vmax.f32 %v268_v15, %v270_v19 }
  0x1b   : > { %274 = vrot.lane.b32.xlu0 %v272_v10, %s430_s27 }
  0x85   : > { %v419_v16 = vpop.permute.xlu0 %418 }
  0x86   : > { %v421_v17 = vunpack.i.h.bf16 %v419_v16  ;;  %v420_v18 = vunpack.i.l.bf16 %v419_v16 }
  0x88   : > { %v287_v20 = vmax.f32 %v269_v7, %v421_v17  ;;  %v286_v21 = vmax.f32 %v268_v15, %v420_v18 }
  0x8a   : > { %v292_v22 = vrot.slane %v287_v20, 1  ;;  %v291_v23 = vrot.slane %v286_v21, 1 }
  0x8c   : > { %v293_v25 = vsel %vm290_vm0, %v291_v23, %v292_v22 }
  0x8d   : > { %v275_v26 = vpop.permute.xlu0 %274 }
  0x8e   : > { %v277_v27 = vmax.f32 %v271_v24, %v275_v26 }
  0x90   : > { %v295_v28 = vmax.f32 %v277_v27, %v293_v25 }
  0x92   : > { %v296_v29 = vpack.c.bf16 %v295_v28, %v295_v28 }
  0x94   : > { %298 = vst.msk [vmem:[%s255_s8] sm:$0xf] %vm297_vm1, %v296_v29 }
  0x95 PF: > { %s14_s15 = sadd.s32 1, %s428_s15  }
  0x96   : > { %p11_p4 = scmp.ge.s32.totalorder %s14_s15, 4  }
  0x98   :  { %13 = sbr.rel (!%p11_p4) target bundleno = 1 (0x1), region = 75 }

// kernel: resnet_forward.8
= control target key start
LH: loop header
LB: loop body
LE: loop exit
PB: predicated region body
PF: predicated region fallthrough
CT: control target
= control target key end

     0   :  { %s2820_s1 = inlined_call_operand.vmem [shape: bf16[256,128], index: 1, kind: input, shape index: {}]   ;;  %s2821_s0 = inlined_call_operand.vmem [shape: bf16[512,256], index: 0, kind: input, shape index: {}]   ;;  %s2822_s2 = inlined_call_operand.vmem [shape: f32[1,128], index: 2, kind: input, shape index: {}]   ;;  %s2823_s3 = inlined_call_operand.vmem [shape: f32[1,128], index: 3, kind: input, shape index: {}]   ;;  %s2824_s4 = inlined_call_operand.vmem [shape: bf16[512,128], index: 4, kind: output, shape index: {}]  }
   0x1   :  { %v1917_v0 = vld [vmem:[%s2820_s1 + $0x38] sm:$0xff]  ;;  %v1916_v2 = vld [vmem:[%s2820_s1 + $0x30] sm:$0xff]  ;;  %v1915_v4 = vld [vmem:[%s2820_s1 + $0x28] sm:$0xff] }
   0x2   :  { %v1925_v1 = vld [vmem:[%s2820_s1 + $0x78] sm:$0xff]  ;;  %661 = vmatpush.bf16.msra.mxu0 %v1917_v0  ;;  %2117 = vmatpush.bf16.msra.mxu2 %v1917_v0  ;;  %v1924_v3 = vld [vmem:[%s2820_s1 + $0x70] sm:$0xff]  ;;  %v1923_v5 = vld [vmem:[%s2820_s1 + $0x68] sm:$0xff] }
   0x3   :  { %830 = vmatpush.bf16.msra.mxu1 %v1925_v1  ;;  %2125 = vmatpush.bf16.msra.mxu3 %v1925_v1  ;;  %v1914_v6 = vld [vmem:[%s2820_s1 + $0x20] sm:$0xff]  ;;  %v1913_v8 = vld [vmem:[%s2820_s1 + $0x18] sm:$0xff]  ;;  %v1912_v10 = vld [vmem:[%s2820_s1 + $0x10] sm:$0xff] }
   0x4   :  { %v1922_v7 = vld [vmem:[%s2820_s1 + $0x60] sm:$0xff]  ;;  %v1921_v9 = vld [vmem:[%s2820_s1 + $0x58] sm:$0xff]  ;;  %v1920_v11 = vld [vmem:[%s2820_s1 + $0x50] sm:$0xff] }
   0x5   :  { %v1911_v12 = vld [vmem:[%s2820_s1 + $0x8] sm:$0xff]  ;;  %v1910_v14 = vld [vmem:[%s2820_s1] sm:$0xff]  ;;  %v1536_v28 = vld [vmem:[%s2821_s0 + $0x10] sm:$0xf] }
   0x6   :  { %662 = vmatpush.bf16.msra.mxu0 %v1916_v2  ;;  %2118 = vmatpush.bf16.msra.mxu2 %v1916_v2  ;;  %v1919_v13 = vld [vmem:[%s2820_s1 + $0x48] sm:$0xff]  ;;  %v1918_v15 = vld [vmem:[%s2820_s1 + $0x40] sm:$0xff]  ;;  %v1849_v29 = vld [vmem:[%s2821_s0 + $0x14] sm:$0xf0] }
   0x7   :  { %831 = vmatpush.bf16.msra.mxu1 %v1924_v3  ;;  %2126 = vmatpush.bf16.msra.mxu3 %v1924_v3  ;;  %v1528_v16 = vld [vmem:[%s2821_s0] sm:$0xf]  ;;  %v1847_v17 = vld [vmem:[%s2821_s0 + $0x4] sm:$0xf0]  ;;  %v1846_v20 = vld [vmem:[%s2821_s0 + $0x4] sm:$0xf]  ;;  %v1537_v36 = vor.u32 %v1849_v29, %v1536_v28 }
   0x8   :  { %v1656_v18 = vld [vmem:[%s2821_s0 + $0x100] sm:$0xf]  ;;  %v1879_v19 = vld [vmem:[%s2821_s0 + $0x104] sm:$0xf0]  ;;  %v1530_v21 = vld [vmem:[%s2821_s0 + $0x8] sm:$0xf0]  ;;  %v1529_v24 = vor.u32 %v1847_v17, %v1528_v16 }
   0x9   :  { %v1878_v22 = vld [vmem:[%s2821_s0 + $0x104] sm:$0xf]  ;;  %v1658_v23 = vld [vmem:[%s2821_s0 + $0x108] sm:$0xf0]  ;;  %v1657_v25 = vor.u32 %v1879_v19, %v1656_v18  ;;  %v1533_v26 = vor.u32 %v1846_v20, %v1530_v21  ;;  %v1664_v30 = vld [vmem:[%s2821_s0 + $0x110] sm:$0xf] }
   0xa   :  { %663 = vmatpush.bf16.msra.mxu0 %v1915_v4  ;;  %2119 = vmatpush.bf16.msra.mxu2 %v1915_v4  ;;  %v1661_v27 = vor.u32 %v1878_v22, %v1658_v23  ;;  %v1881_v31 = vld [vmem:[%s2821_s0 + $0x114] sm:$0xf0]  ;;  %v1848_v32 = vld [vmem:[%s2821_s0 + $0x14] sm:$0xf]  ;;  %v1538_v33 = vld [vmem:[%s2821_s0 + $0x18] sm:$0xf0] }
   0xb   :  { %832 = vmatpush.bf16.msra.mxu1 %v1923_v5  ;;  %2127 = vmatpush.bf16.msra.mxu3 %v1923_v5  ;;  %v1880_v34 = vld [vmem:[%s2821_s0 + $0x114] sm:$0xf]  ;;  %v1666_v35 = vld [vmem:[%s2821_s0 + $0x118] sm:$0xf0]  ;;  %v1665_v37 = vor.u32 %v1881_v31, %v1664_v30  ;;  %v1541_v38 = vor.u32 %v1848_v32, %v1538_v33  ;;  %v1544_v40 = vld [vmem:[%s2821_s0 + $0x20] sm:$0xf] }
   0xc   :  { %v1669_v39 = vor.u32 %v1880_v34, %v1666_v35  ;;  %v1851_v41 = vld [vmem:[%s2821_s0 + $0x24] sm:$0xf0]  ;;  %v1672_v42 = vld [vmem:[%s2821_s0 + $0x120] sm:$0xf]  ;;  %v1850_v44 = vld [vmem:[%s2821_s0 + $0x24] sm:$0xf] }
   0xd   :  { %v1883_v43 = vld [vmem:[%s2821_s0 + $0x124] sm:$0xf0]  ;;  %v1546_v45 = vld [vmem:[%s2821_s0 + $0x28] sm:$0xf0]  ;;  %v1882_v46 = vld [vmem:[%s2821_s0 + $0x124] sm:$0xf]  ;;  %v1545_v48 = vor.u32 %v1851_v41, %v1544_v40 }
   0xe   :  { %664 = vmatpush.bf16.msra.mxu0 %v1914_v6  ;;  %2120 = vmatpush.bf16.msra.mxu2 %v1914_v6  ;;  %v1674_v47 = vld [vmem:[%s2821_s0 + $0x128] sm:$0xf0]  ;;  %v1673_v49 = vor.u32 %v1883_v43, %v1672_v42  ;;  %v1549_v50 = vor.u32 %v1850_v44, %v1546_v45  ;;  %v1552_v52 = vld [vmem:[%s2821_s0 + $0x30] sm:$0xf]  ;;  %v1853_v53 = vld [vmem:[%s2821_s0 + $0x34] sm:$0xf0] }
   0xf   :  { %833 = vmatpush.bf16.msra.mxu1 %v1922_v7  ;;  %2128 = vmatpush.bf16.msra.mxu3 %v1922_v7  ;;  %v1677_v51 = vor.u32 %v1882_v46, %v1674_v47  ;;  %v1680_v54 = vld [vmem:[%s2821_s0 + $0x130] sm:$0xf]  ;;  %v1885_v55 = vld [vmem:[%s2821_s0 + $0x134] sm:$0xf0]  ;;  %v1852_v56 = vld [vmem:[%s2821_s0 + $0x34] sm:$0xf]  ;;  %v1553_v60 = vor.u32 %v1853_v53, %v1552_v52 }
  0x10   :  { %v1554_v57 = vld [vmem:[%s2821_s0 + $0x38] sm:$0xf0]  ;;  %v1884_v58 = vld [vmem:[%s2821_s0 + $0x134] sm:$0xf]  ;;  %v1681_v61 = vor.u32 %v1885_v55, %v1680_v54  ;;  %v1560_v0 = vld [vmem:[%s2821_s0 + $0x40] sm:$0xf] }
  0x11   :  { %v1682_v59 = vld [vmem:[%s2821_s0 + $0x138] sm:$0xf0]  ;;  %v1557_v62 = vor.u32 %v1852_v56, %v1554_v57  ;;  %v1855_v1 = vld [vmem:[%s2821_s0 + $0x44] sm:$0xf0]  ;;  %v1688_v2 = vld [vmem:[%s2821_s0 + $0x140] sm:$0xf] }
  0x12   :  { %665 = vmatpush.bf16.msra.mxu0 %v1913_v8  ;;  %2121 = vmatpush.bf16.msra.mxu2 %v1913_v8  ;;  %v1685_v63 = vor.u32 %v1884_v58, %v1682_v59  ;;  %v1887_v3 = vld [vmem:[%s2821_s0 + $0x144] sm:$0xf0]  ;;  %v1854_v4 = vld [vmem:[%s2821_s0 + $0x44] sm:$0xf]  ;;  %v1562_v5 = vld [vmem:[%s2821_s0 + $0x48] sm:$0xf0]  ;;  %v1561_v8 = vor.u32 %v1855_v1, %v1560_v0 }
  0x13   :  { %834 = vmatpush.bf16.msra.mxu1 %v1921_v9  ;;  %2129 = vmatpush.bf16.msra.mxu3 %v1921_v9  ;;  %v1886_v6 = vld [vmem:[%s2821_s0 + $0x144] sm:$0xf]  ;;  %v1690_v7 = vld [vmem:[%s2821_s0 + $0x148] sm:$0xf0]  ;;  %v1689_v9 = vor.u32 %v1887_v3, %v1688_v2  ;;  %v1856_v16 = vld [vmem:[%s2821_s0 + $0x54] sm:$0xf] }
  0x14   :  { %v1570_v17 = vld [vmem:[%s2821_s0 + $0x58] sm:$0xf0]  ;;  %v1888_v18 = vld [vmem:[%s2821_s0 + $0x154] sm:$0xf]  ;;  %v1858_v28 = vld [vmem:[%s2821_s0 + $0x64] sm:$0xf] }
  0x15   :  { %v1698_v19 = vld [vmem:[%s2821_s0 + $0x158] sm:$0xf0]  ;;  %v1573_v22 = vor.u32 %v1856_v16, %v1570_v17  ;;  %v1578_v29 = vld [vmem:[%s2821_s0 + $0x68] sm:$0xf0]  ;;  %v1890_v30 = vld [vmem:[%s2821_s0 + $0x164] sm:$0xf] }
  0x16   :  { %666 = vmatpush.bf16.msra.mxu0 %v1912_v10  ;;  %2122 = vmatpush.bf16.msra.mxu2 %v1912_v10  ;;  %v1565_v10 = vor.u32 %v1854_v4, %v1562_v5  ;;  %v1701_v23 = vor.u32 %v1888_v18, %v1698_v19  ;;  %v1706_v31 = vld [vmem:[%s2821_s0 + $0x168] sm:$0xf0]  ;;  %v1581_v34 = vor.u32 %v1858_v28, %v1578_v29  ;;  %v1860_v40 = vld [vmem:[%s2821_s0 + $0x74] sm:$0xf]  ;;  %v1586_v41 = vld [vmem:[%s2821_s0 + $0x78] sm:$0xf0] }
  0x17   :  { %835 = vmatpush.bf16.msra.mxu1 %v1920_v11  ;;  %2130 = vmatpush.bf16.msra.mxu3 %v1920_v11  ;;  %v1693_v11 = vor.u32 %v1886_v6, %v1690_v7  ;;  %v1709_v35 = vor.u32 %v1890_v30, %v1706_v31  ;;  %v1892_v42 = vld [vmem:[%s2821_s0 + $0x174] sm:$0xf]  ;;  %v1714_v43 = vld [vmem:[%s2821_s0 + $0x178] sm:$0xf0]  ;;  %v1589_v46 = vor.u32 %v1860_v40, %v1586_v41  ;;  %v1862_v52 = vld [vmem:[%s2821_s0 + $0x84] sm:$0xf] }
  0x18   :  { %v1717_v47 = vor.u32 %v1892_v42, %v1714_v43  ;;  %v1594_v53 = vld [vmem:[%s2821_s0 + $0x88] sm:$0xf0]  ;;  %v1894_v54 = vld [vmem:[%s2821_s0 + $0x184] sm:$0xf]  ;;  %v2435_v3 = vld [vmem:[%s2823_s3] ss:$0 sm:$0xff] }
  0x19   :  { %v1722_v55 = vld [vmem:[%s2821_s0 + $0x188] sm:$0xf0]  ;;  %v1597_v59 = vor.u32 %v1862_v52, %v1594_v53  ;;  %v1896_v16 = vld [vmem:[%s2821_s0 + $0x194] sm:$0xf]  ;;  %v1730_v17 = vld [vmem:[%s2821_s0 + $0x198] sm:$0xf0] }
  0x1a   :  { %667 = vmatpush.bf16.msra.mxu0 %v1911_v12  ;;  %2123 = vmatpush.bf16.msra.mxu2 %v1911_v12  ;;  %v1568_v12 = vld [vmem:[%s2821_s0 + $0x50] sm:$0xf]  ;;  %v1733_v29 = vor.u32 %v1896_v16, %v1730_v17  ;;  %v1866_v52 = vld [vmem:[%s2821_s0 + $0xa4] sm:$0xf]  ;;  %v1610_v53 = vld [vmem:[%s2821_s0 + $0xa8] sm:$0xf0] }
  0x1b   :  { %836 = vmatpush.bf16.msra.mxu1 %v1919_v13  ;;  %2131 = vmatpush.bf16.msra.mxu3 %v1919_v13  ;;  %v1857_v13 = vld [vmem:[%s2821_s0 + $0x54] sm:$0xf0] }
  0x1c   :  { %v1569_v20 = vor.u32 %v1857_v13, %v1568_v12  ;;  %v1897_v13 = vld [vmem:[%s2821_s0 + $0x194] sm:$0xf0] }
  0x1e   :  { %668 = vmatpush.bf16.msra.mxu0 %v1910_v14  ;;  %2124 = vmatpush.bf16.msra.mxu2 %v1910_v14  ;;  %v1696_v14 = vld [vmem:[%s2821_s0 + $0x150] sm:$0xf] }
  0x1f   :  { %837 = vmatpush.bf16.msra.mxu1 %v1918_v15  ;;  %2132 = vmatpush.bf16.msra.mxu3 %v1918_v15  ;;  %v1889_v15 = vld [vmem:[%s2821_s0 + $0x154] sm:$0xf0] }
  0x20   :  { %v1697_v21 = vor.u32 %v1889_v15, %v1696_v14  ;;  %v1864_v14 = vld [vmem:[%s2821_s0 + $0x94] sm:$0xf]  ;;  %v1602_v15 = vld [vmem:[%s2821_s0 + $0x98] sm:$0xf0] }
  0x21   :  { %669 = vmatmul.bf16.vlgmr.msra.gmra.mxu0 %v1529_v24  ;;  %749 = vmatmul.bf16.vlgmr.msra.gmra.mxu2 %v1657_v25  ;;  %v1576_v24 = vld [vmem:[%s2821_s0 + $0x60] sm:$0xf]  ;;  %v1859_v25 = vld [vmem:[%s2821_s0 + $0x64] sm:$0xf0] }
  0x22   :  { %838 = vmatmul.bf16.vlgmr.msra.gmra.mxu1 %v1533_v26  ;;  %918 = vmatmul.bf16.vlgmr.msra.gmra.mxu3 %v1661_v27  ;;  %v1704_v26 = vld [vmem:[%s2821_s0 + $0x160] sm:$0xf]  ;;  %v1891_v27 = vld [vmem:[%s2821_s0 + $0x164] sm:$0xf0]  ;;  %v1577_v32 = vor.u32 %v1859_v25, %v1576_v24  ;;  %v1605_v24 = vor.u32 %v1864_v14, %v1602_v15 }
  0x23   :  { %v1705_v33 = vor.u32 %v1891_v27, %v1704_v26 }
  0x31   :  { %674 = vmatmul.bf16.gmra.mxu0 %v1537_v36  ;;  %754 = vmatmul.bf16.gmra.mxu2 %v1665_v37  ;;  %v1584_v36 = vld [vmem:[%s2821_s0 + $0x70] sm:$0xf]  ;;  %v1861_v37 = vld [vmem:[%s2821_s0 + $0x74] sm:$0xf0] }
  0x32   :  { %843 = vmatmul.bf16.gmra.mxu1 %v1541_v38  ;;  %923 = vmatmul.bf16.gmra.mxu3 %v1669_v39  ;;  %v1712_v38 = vld [vmem:[%s2821_s0 + $0x170] sm:$0xf]  ;;  %v1893_v39 = vld [vmem:[%s2821_s0 + $0x174] sm:$0xf0]  ;;  %v1585_v44 = vor.u32 %v1861_v37, %v1584_v36 }
  0x33   :  { %v1713_v45 = vor.u32 %v1893_v39, %v1712_v38 }
  0x41   :  { %679 = vmatmul.bf16.gmra.mxu0 %v1545_v48  ;;  %759 = vmatmul.bf16.gmra.mxu2 %v1673_v49  ;;  %v1592_v48 = vld [vmem:[%s2821_s0 + $0x80] sm:$0xf]  ;;  %v1863_v49 = vld [vmem:[%s2821_s0 + $0x84] sm:$0xf0] }
  0x42   :  { %848 = vmatmul.bf16.gmra.mxu1 %v1549_v50  ;;  %928 = vmatmul.bf16.gmra.mxu3 %v1677_v51  ;;  %v1720_v50 = vld [vmem:[%s2821_s0 + $0x180] sm:$0xf]  ;;  %v1895_v51 = vld [vmem:[%s2821_s0 + $0x184] sm:$0xf0]  ;;  %v1593_v56 = vor.u32 %v1863_v49, %v1592_v48 }
  0x43   :  { %v1721_v57 = vor.u32 %v1895_v51, %v1720_v50  ;;  %v1736_v48 = vld [vmem:[%s2821_s0 + $0x1a0] sm:$0xf]  ;;  %v1899_v51 = vld [vmem:[%s2821_s0 + $0x1a4] sm:$0xf0] }
  0x51   :  { %684 = vmatmul.bf16.gmra.mxu0 %v1553_v60  ;;  %764 = vmatmul.bf16.gmra.mxu2 %v1681_v61  ;;  %v1725_v60 = vor.u32 %v1894_v54, %v1722_v55  ;;  %v1898_v54 = vld [vmem:[%s2821_s0 + $0x1a4] sm:$0xf]  ;;  %v1738_v55 = vld [vmem:[%s2821_s0 + $0x1a8] sm:$0xf0] }
  0x52   :  { %853 = vmatmul.bf16.gmra.mxu1 %v1557_v62  ;;  %933 = vmatmul.bf16.gmra.mxu3 %v1685_v63  ;;  %v2429_v63 = vld [vmem:[%s2822_s2] ss:$0 sm:$0xff] }
  0x61   :  { %689 = vmatmul.bf16.gmra.mxu0 %v1561_v8  ;;  %769 = vmatmul.bf16.gmra.mxu2 %v1689_v9  ;;  %v1600_v8 = vld [vmem:[%s2821_s0 + $0x90] sm:$0xf]  ;;  %v1865_v9 = vld [vmem:[%s2821_s0 + $0x94] sm:$0xf0] }
  0x62   :  { %858 = vmatmul.bf16.gmra.mxu1 %v1565_v10  ;;  %938 = vmatmul.bf16.gmra.mxu3 %v1693_v11  ;;  %v1728_v10 = vld [vmem:[%s2821_s0 + $0x190] sm:$0xf] }
  0x71   :  { %694 = vmatmul.bf16.gmra.mxu0 %v1569_v20  ;;  %774 = vmatmul.bf16.gmra.mxu2 %v1697_v21 }
  0x72   :  { %863 = vmatmul.bf16.gmra.mxu1 %v1573_v22  ;;  %943 = vmatmul.bf16.gmra.mxu3 %v1701_v23  ;;  %v1601_v22 = vor.u32 %v1865_v9, %v1600_v8  ;;  %v1729_v23 = vor.u32 %v1897_v13, %v1728_v10 }
  0x81   :  { %699 = vmatmul.bf16.gmra.mxu0 %v1577_v32  ;;  %779 = vmatmul.bf16.gmra.mxu2 %v1705_v33 }
  0x82   :  { %868 = vmatmul.bf16.gmra.mxu1 %v1581_v34  ;;  %948 = vmatmul.bf16.gmra.mxu3 %v1709_v35 }
  0x91   :  { %704 = vmatmul.bf16.gmra.mxu0 %v1585_v44  ;;  %784 = vmatmul.bf16.gmra.mxu2 %v1713_v45 }
  0x92   :  { %873 = vmatmul.bf16.gmra.mxu1 %v1589_v46  ;;  %953 = vmatmul.bf16.gmra.mxu3 %v1717_v47  ;;  %v1608_v46 = vld [vmem:[%s2821_s0 + $0xa0] sm:$0xf]  ;;  %v1867_v47 = vld [vmem:[%s2821_s0 + $0xa4] sm:$0xf0] }
  0x9e   :  { %v670_v58 = vpop.f32.mrf.mxu0 }
  0x9f   :  { %v839_v61 = vpop.f32.mrf.mxu1 }
  0xa0   :  { %v840_v62 = vadd.f32 %v839_v61, %v670_v58  ;;  %v1737_v61 = vor.u32 %v1899_v51, %v1736_v48 }
  0xa1   :  { %709 = vmatmul.bf16.gmra.mxu0 %v1593_v56  ;;  %789 = vmatmul.bf16.gmra.mxu2 %v1721_v57 }
  0xa2   :  { %878 = vmatmul.bf16.gmra.mxu1 %v1597_v59  ;;  %958 = vmatmul.bf16.gmra.mxu3 %v1725_v60  ;;  %v1198_v2 = vmul.f32 %v2429_v63, %v840_v62  ;;  %v1609_v60 = vor.u32 %v1867_v47, %v1608_v46  ;;  %v1613_v62 = vor.u32 %v1866_v52, %v1610_v53 }
  0xa4   :  { %v750_v0 = vpop.f32.mrf.mxu2  ;;  %v1266_v11 = vadd.f32 %v2435_v3, %v1198_v2 }
  0xa5   :  { %v919_v1 = vpop.f32.mrf.mxu3 }
  0xa6   :  { %v672_v4 = vpop.f32.mrf.mxu0  ;;  %v920_v6 = vadd.f32 %v919_v1, %v750_v0  ;;  %v1330_v25 = vmax.f32 %v1266_v11, 0.0 }
  0xa7   :  { %v841_v5 = vpop.f32.mrf.mxu1 }
  0xa8   :  { %v842_v7 = vadd.f32 %v841_v5, %v672_v4  ;;  %v1230_v18 = vmul.f32 %v2429_v63, %v920_v6  ;;  %v1741_v5 = vor.u32 %v1898_v54, %v1738_v55 }
  0xaa   :  { %v1199_v12 = vmul.f32 %v2429_v63, %v842_v7  ;;  %v1298_v31 = vadd.f32 %v2435_v3, %v1230_v18 }
  0xac   :  { %v1267_v19 = vadd.f32 %v2435_v3, %v1199_v12  ;;  %v752_v20 = vpop.f32.mrf.mxu2  ;;  %v1362_v36 = vmax.f32 %v1298_v31, 0.0  ;;  %v1746_v31 = vld [vmem:[%s2821_s0 + $0x1b8] sm:$0xf0] }
  0xad   :  { %v921_v21 = vpop.f32.mrf.mxu3 }
  0xae   :  { %v1331_v26 = vmax.f32 %v1267_v19, 0.0  ;;  %v922_v27 = vadd.f32 %v921_v21, %v752_v20  ;;  %v675_v28 = vpop.f32.mrf.mxu0 }
  0xaf   :  { %v844_v30 = vpop.f32.mrf.mxu1 }
  0xb0   :  { %v1929_v32 = vpack.c.bf16 %v1331_v26, %v1330_v25  ;;  %v1231_v33 = vmul.f32 %v2429_v63, %v922_v27  ;;  %v845_v35 = vadd.f32 %v844_v30, %v675_v28  ;;  %v1901_v27 = vld [vmem:[%s2821_s0 + $0x1b4] sm:$0xf0]  ;;  %v1868_v28 = vld [vmem:[%s2821_s0 + $0xb4] sm:$0xf] }
  0xb1   :  { %714 = vmatmul.bf16.gmra.mxu0 %v1601_v22  ;;  %794 = vmatmul.bf16.gmra.mxu2 %v1729_v23  ;;  %v1616_v22 = vld [vmem:[%s2821_s0 + $0xb0] sm:$0xf]  ;;  %v1869_v23 = vld [vmem:[%s2821_s0 + $0xb4] sm:$0xf0]  ;;  %v1900_v30 = vld [vmem:[%s2821_s0 + $0x1b4] sm:$0xf] }
  0xb2   :  { %1930 = vst [vmem:[%s2824_s4] sm:$0xff] %v1929_v32   ;;  %v1299_v34 = vadd.f32 %v2435_v3, %v1231_v33  ;;  %883 = vmatmul.bf16.gmra.mxu1 %v1605_v24  ;;  %963 = vmatmul.bf16.gmra.mxu3 %v1733_v29  ;;  %v1200_v41 = vmul.f32 %v2429_v63, %v845_v35  ;;  %v1744_v24 = vld [vmem:[%s2821_s0 + $0x1b0] sm:$0xf]  ;;  %v1618_v29 = vld [vmem:[%s2821_s0 + $0xb8] sm:$0xf0] }
  0xb4   :  { %v1363_v37 = vmax.f32 %v1299_v34, 0.0  ;;  %v755_v38 = vpop.f32.mrf.mxu2  ;;  %v1268_v49 = vadd.f32 %v2435_v3, %v1200_v41 }
  0xb5   :  { %v924_v39 = vpop.f32.mrf.mxu3 }
  0xb6   :  { %v2009_v40 = vpack.c.bf16 %v1363_v37, %v1362_v36  ;;  %v677_v42 = vpop.f32.mrf.mxu0  ;;  %v925_v44 = vadd.f32 %v924_v39, %v755_v38  ;;  %v1332_v0 = vmax.f32 %v1268_v49, 0.0  ;;  %v1617_v36 = vor.u32 %v1869_v23, %v1616_v22 }
  0xb7   :  { %v846_v43 = vpop.f32.mrf.mxu1  ;;  %v1745_v37 = vor.u32 %v1901_v27, %v1744_v24  ;;  %v1621_v38 = vor.u32 %v1868_v28, %v1618_v29 }
  0xb8   :  { %2101 = vst [vmem:[%s2824_s4 + $0x80] sm:$0xff] %v2009_v40   ;;  %v847_v45 = vadd.f32 %v846_v43, %v677_v42  ;;  %v1232_v56 = vmul.f32 %v2429_v63, %v925_v44  ;;  %v1749_v43 = vor.u32 %v1900_v30, %v1746_v31 }
  0xba   :  { %v1201_v50 = vmul.f32 %v2429_v63, %v847_v45  ;;  %v1300_v7 = vadd.f32 %v2435_v3, %v1232_v56 }
  0xbc   :  { %v1269_v57 = vadd.f32 %v2435_v3, %v1201_v50  ;;  %v757_v58 = vpop.f32.mrf.mxu2  ;;  %v1364_v12 = vmax.f32 %v1300_v7, 0.0  ;;  %v1754_v7 = vld [vmem:[%s2821_s0 + $0x1c8] sm:$0xf0] }
  0xbd   :  { %v926_v59 = vpop.f32.mrf.mxu3 }
  0xbe   :  { %v1333_v1 = vmax.f32 %v1269_v57, 0.0  ;;  %v927_v2 = vadd.f32 %v926_v59, %v757_v58  ;;  %v680_v4 = vpop.f32.mrf.mxu0 }
  0xbf   :  { %v849_v6 = vpop.f32.mrf.mxu1 }
  0xc0   :  { %v1934_v8 = vpack.c.bf16 %v1333_v1, %v1332_v0  ;;  %v1233_v9 = vmul.f32 %v2429_v63, %v927_v2  ;;  %v850_v11 = vadd.f32 %v849_v6, %v680_v4  ;;  %v1903_v2 = vld [vmem:[%s2821_s0 + $0x1c4] sm:$0xf0]  ;;  %v1870_v4 = vld [vmem:[%s2821_s0 + $0xc4] sm:$0xf] }
  0xc1   :  { %719 = vmatmul.bf16.gmra.mxu0 %v1609_v60  ;;  %799 = vmatmul.bf16.gmra.mxu2 %v1737_v61  ;;  %v1624_v60 = vld [vmem:[%s2821_s0 + $0xc0] sm:$0xf]  ;;  %v1871_v61 = vld [vmem:[%s2821_s0 + $0xc4] sm:$0xf0]  ;;  %v1902_v6 = vld [vmem:[%s2821_s0 + $0x1c4] sm:$0xf] }
  0xc2   :  { %2086 = vst [vmem:[%s2824_s4 + $0x8] sm:$0xff] %v1934_v8   ;;  %v1301_v10 = vadd.f32 %v2435_v3, %v1233_v9  ;;  %888 = vmatmul.bf16.gmra.mxu1 %v1613_v62  ;;  %968 = vmatmul.bf16.gmra.mxu3 %v1741_v5  ;;  %v1202_v17 = vmul.f32 %v2429_v63, %v850_v11  ;;  %v1752_v62 = vld [vmem:[%s2821_s0 + $0x1c0] sm:$0xf]  ;;  %v1626_v5 = vld [vmem:[%s2821_s0 + $0xc8] sm:$0xf0] }
  0xc4   :  { %v1365_v13 = vmax.f32 %v1301_v10, 0.0  ;;  %v760_v14 = vpop.f32.mrf.mxu2  ;;  %v1270_v25 = vadd.f32 %v2435_v3, %v1202_v17 }
  0xc5   :  { %v929_v15 = vpop.f32.mrf.mxu3 }
  0xc6   :  { %v2014_v16 = vpack.c.bf16 %v1365_v13, %v1364_v12  ;;  %v682_v18 = vpop.f32.mrf.mxu0  ;;  %v930_v20 = vadd.f32 %v929_v15, %v760_v14  ;;  %v1334_v39 = vmax.f32 %v1270_v25, 0.0  ;;  %v1625_v12 = vor.u32 %v1871_v61, %v1624_v60 }
  0xc7   :  { %v851_v19 = vpop.f32.mrf.mxu1  ;;  %v1753_v13 = vor.u32 %v1903_v2, %v1752_v62  ;;  %v1629_v14 = vor.u32 %v1870_v4, %v1626_v5 }
  0xc8   :  { %2102 = vst [vmem:[%s2824_s4 + $0x88] sm:$0xff] %v2014_v16   ;;  %v852_v21 = vadd.f32 %v851_v19, %v682_v18  ;;  %v1234_v32 = vmul.f32 %v2429_v63, %v930_v20  ;;  %v1757_v19 = vor.u32 %v1902_v6, %v1754_v7 }
  0xca   :  { %v1203_v26 = vmul.f32 %v2429_v63, %v852_v21  ;;  %v1302_v45 = vadd.f32 %v2435_v3, %v1234_v32 }
  0xcc   :  { %v1271_v33 = vadd.f32 %v2435_v3, %v1203_v26  ;;  %v762_v34 = vpop.f32.mrf.mxu2  ;;  %v1366_v50 = vmax.f32 %v1302_v45, 0.0  ;;  %v1762_v45 = vld [vmem:[%s2821_s0 + $0x1d8] sm:$0xf0] }
  0xcd   :  { %v931_v35 = vpop.f32.mrf.mxu3 }
  0xce   :  { %v1335_v40 = vmax.f32 %v1271_v33, 0.0  ;;  %v932_v41 = vadd.f32 %v931_v35, %v762_v34  ;;  %v685_v42 = vpop.f32.mrf.mxu0 }
  0xcf   :  { %v854_v44 = vpop.f32.mrf.mxu1 }
  0xd0   :  { %v1939_v46 = vpack.c.bf16 %v1335_v40, %v1334_v39  ;;  %v1235_v47 = vmul.f32 %v2429_v63, %v932_v41  ;;  %v855_v49 = vadd.f32 %v854_v44, %v685_v42  ;;  %v1905_v41 = vld [vmem:[%s2821_s0 + $0x1d4] sm:$0xf0]  ;;  %v1872_v42 = vld [vmem:[%s2821_s0 + $0xd4] sm:$0xf] }
  0xd1   :  { %724 = vmatmul.bf16.gmra.mxu0 %v1617_v36  ;;  %804 = vmatmul.bf16.gmra.mxu2 %v1745_v37  ;;  %v1632_v36 = vld [vmem:[%s2821_s0 + $0xd0] sm:$0xf]  ;;  %v1873_v37 = vld [vmem:[%s2821_s0 + $0xd4] sm:$0xf0]  ;;  %v1904_v44 = vld [vmem:[%s2821_s0 + $0x1d4] sm:$0xf] }
  0xd2   :  { %2087 = vst [vmem:[%s2824_s4 + $0x10] sm:$0xff] %v1939_v46   ;;  %v1303_v48 = vadd.f32 %v2435_v3, %v1235_v47  ;;  %893 = vmatmul.bf16.gmra.mxu1 %v1621_v38  ;;  %973 = vmatmul.bf16.gmra.mxu3 %v1749_v43  ;;  %v1204_v55 = vmul.f32 %v2429_v63, %v855_v49  ;;  %v1760_v38 = vld [vmem:[%s2821_s0 + $0x1d0] sm:$0xf]  ;;  %v1634_v43 = vld [vmem:[%s2821_s0 + $0xd8] sm:$0xf0] }
  0xd4   :  { %v1367_v51 = vmax.f32 %v1303_v48, 0.0  ;;  %v765_v52 = vpop.f32.mrf.mxu2  ;;  %v1272_v0 = vadd.f32 %v2435_v3, %v1204_v55 }
  0xd5   :  { %v934_v53 = vpop.f32.mrf.mxu3 }
  0xd6   :  { %v2019_v54 = vpack.c.bf16 %v1367_v51, %v1366_v50  ;;  %v687_v56 = vpop.f32.mrf.mxu0  ;;  %v935_v58 = vadd.f32 %v934_v53, %v765_v52  ;;  %v1336_v15 = vmax.f32 %v1272_v0, 0.0  ;;  %v1633_v50 = vor.u32 %v1873_v37, %v1632_v36 }
  0xd7   :  { %v856_v57 = vpop.f32.mrf.mxu1  ;;  %v1761_v51 = vor.u32 %v1905_v41, %v1760_v38  ;;  %v1637_v52 = vor.u32 %v1872_v42, %v1634_v43 }
  0xd8   :  { %2103 = vst [vmem:[%s2824_s4 + $0x90] sm:$0xff] %v2019_v54   ;;  %v857_v59 = vadd.f32 %v856_v57, %v687_v56  ;;  %v1236_v8 = vmul.f32 %v2429_v63, %v935_v58  ;;  %v1765_v57 = vor.u32 %v1904_v44, %v1762_v45 }
  0xda   :  { %v1205_v1 = vmul.f32 %v2429_v63, %v857_v59  ;;  %v1304_v21 = vadd.f32 %v2435_v3, %v1236_v8 }
  0xdc   :  { %v1273_v9 = vadd.f32 %v2435_v3, %v1205_v1  ;;  %v767_v10 = vpop.f32.mrf.mxu2  ;;  %v1368_v26 = vmax.f32 %v1304_v21, 0.0  ;;  %v1770_v21 = vld [vmem:[%s2821_s0 + $0x1e8] sm:$0xf0] }
  0xdd   :  { %v936_v11 = vpop.f32.mrf.mxu3 }
  0xde   :  { %v1337_v16 = vmax.f32 %v1273_v9, 0.0  ;;  %v937_v17 = vadd.f32 %v936_v11, %v767_v10  ;;  %v690_v18 = vpop.f32.mrf.mxu0 }
  0xdf   :  { %v859_v20 = vpop.f32.mrf.mxu1 }
  0xe0   :  { %v1944_v22 = vpack.c.bf16 %v1337_v16, %v1336_v15  ;;  %v1237_v23 = vmul.f32 %v2429_v63, %v937_v17  ;;  %v860_v25 = vadd.f32 %v859_v20, %v690_v18  ;;  %v1907_v17 = vld [vmem:[%s2821_s0 + $0x1e4] sm:$0xf0]  ;;  %v1874_v18 = vld [vmem:[%s2821_s0 + $0xe4] sm:$0xf] }
  0xe1   :  { %729 = vmatmul.bf16.gmra.mxu0 %v1625_v12  ;;  %809 = vmatmul.bf16.gmra.mxu2 %v1753_v13  ;;  %v1640_v12 = vld [vmem:[%s2821_s0 + $0xe0] sm:$0xf]  ;;  %v1875_v13 = vld [vmem:[%s2821_s0 + $0xe4] sm:$0xf0]  ;;  %v1906_v20 = vld [vmem:[%s2821_s0 + $0x1e4] sm:$0xf] }
  0xe2   :  { %2088 = vst [vmem:[%s2824_s4 + $0x18] sm:$0xff] %v1944_v22   ;;  %v1305_v24 = vadd.f32 %v2435_v3, %v1237_v23  ;;  %898 = vmatmul.bf16.gmra.mxu1 %v1629_v14  ;;  %978 = vmatmul.bf16.gmra.mxu3 %v1757_v19  ;;  %v1206_v31 = vmul.f32 %v2429_v63, %v860_v25  ;;  %v1768_v14 = vld [vmem:[%s2821_s0 + $0x1e0] sm:$0xf]  ;;  %v1642_v19 = vld [vmem:[%s2821_s0 + $0xe8] sm:$0xf0] }
  0xe4   :  { %v1369_v27 = vmax.f32 %v1305_v24, 0.0  ;;  %v770_v28 = vpop.f32.mrf.mxu2  ;;  %v1274_v39 = vadd.f32 %v2435_v3, %v1206_v31 }
  0xe5   :  { %v939_v29 = vpop.f32.mrf.mxu3 }
  0xe6   :  { %v2024_v30 = vpack.c.bf16 %v1369_v27, %v1368_v26  ;;  %v692_v32 = vpop.f32.mrf.mxu0  ;;  %v940_v34 = vadd.f32 %v939_v29, %v770_v28  ;;  %v1338_v53 = vmax.f32 %v1274_v39, 0.0  ;;  %v1641_v26 = vor.u32 %v1875_v13, %v1640_v12 }
  0xe7   :  { %v861_v33 = vpop.f32.mrf.mxu1  ;;  %v1769_v27 = vor.u32 %v1907_v17, %v1768_v14  ;;  %v1645_v28 = vor.u32 %v1874_v18, %v1642_v19 }
  0xe8   :  { %2104 = vst [vmem:[%s2824_s4 + $0x98] sm:$0xff] %v2024_v30   ;;  %v862_v35 = vadd.f32 %v861_v33, %v692_v32  ;;  %v1238_v46 = vmul.f32 %v2429_v63, %v940_v34  ;;  %v1773_v33 = vor.u32 %v1906_v20, %v1770_v21 }
  0xea   :  { %v1207_v40 = vmul.f32 %v2429_v63, %v862_v35  ;;  %v1306_v59 = vadd.f32 %v2435_v3, %v1238_v46 }
  0xec   :  { %v1275_v47 = vadd.f32 %v2435_v3, %v1207_v40  ;;  %v772_v48 = vpop.f32.mrf.mxu2  ;;  %v1370_v1 = vmax.f32 %v1306_v59, 0.0  ;;  %v1778_v59 = vld [vmem:[%s2821_s0 + $0x1f8] sm:$0xf0] }
  0xed   :  { %v941_v49 = vpop.f32.mrf.mxu3 }
  0xee   :  { %v1339_v54 = vmax.f32 %v1275_v47, 0.0  ;;  %v942_v55 = vadd.f32 %v941_v49, %v772_v48  ;;  %v695_v56 = vpop.f32.mrf.mxu0 }
  0xef   :  { %v864_v58 = vpop.f32.mrf.mxu1 }
  0xf0   :  { %v1949_v60 = vpack.c.bf16 %v1339_v54, %v1338_v53  ;;  %v1239_v61 = vmul.f32 %v2429_v63, %v942_v55  ;;  %v865_v0 = vadd.f32 %v864_v58, %v695_v56  ;;  %v1909_v55 = vld [vmem:[%s2821_s0 + $0x1f4] sm:$0xf0]  ;;  %v1876_v56 = vld [vmem:[%s2821_s0 + $0xf4] sm:$0xf] }
  0xf1   :  { %734 = vmatmul.bf16.gmra.mxu0 %v1633_v50  ;;  %814 = vmatmul.bf16.gmra.mxu2 %v1761_v51  ;;  %v1648_v50 = vld [vmem:[%s2821_s0 + $0xf0] sm:$0xf]  ;;  %v1877_v51 = vld [vmem:[%s2821_s0 + $0xf4] sm:$0xf0]  ;;  %v1908_v58 = vld [vmem:[%s2821_s0 + $0x1f4] sm:$0xf] }
  0xf2   :  { %2089 = vst [vmem:[%s2824_s4 + $0x20] sm:$0xff] %v1949_v60   ;;  %v1307_v62 = vadd.f32 %v2435_v3, %v1239_v61  ;;  %903 = vmatmul.bf16.gmra.mxu1 %v1637_v52  ;;  %983 = vmatmul.bf16.gmra.mxu3 %v1765_v57  ;;  %v1208_v7 = vmul.f32 %v2429_v63, %v865_v0  ;;  %v1776_v52 = vld [vmem:[%s2821_s0 + $0x1f0] sm:$0xf]  ;;  %v1650_v57 = vld [vmem:[%s2821_s0 + $0xf8] sm:$0xf0] }
  0xf4   :  { %v1371_v2 = vmax.f32 %v1307_v62, 0.0  ;;  %v775_v4 = vpop.f32.mrf.mxu2  ;;  %v1276_v15 = vadd.f32 %v2435_v3, %v1208_v7 }
  0xf5   :  { %v944_v5 = vpop.f32.mrf.mxu3 }
  0xf6   :  { %v2029_v6 = vpack.c.bf16 %v1371_v2, %v1370_v1  ;;  %v697_v8 = vpop.f32.mrf.mxu0  ;;  %v945_v10 = vadd.f32 %v944_v5, %v775_v4  ;;  %v1340_v29 = vmax.f32 %v1276_v15, 0.0  ;;  %v1649_v1 = vor.u32 %v1877_v51, %v1648_v50 }
  0xf7   :  { %v866_v9 = vpop.f32.mrf.mxu1  ;;  %v1777_v2 = vor.u32 %v1909_v55, %v1776_v52  ;;  %v1653_v4 = vor.u32 %v1876_v56, %v1650_v57 }
  0xf8   :  { %2105 = vst [vmem:[%s2824_s4 + $0xa0] sm:$0xff] %v2029_v6   ;;  %v867_v11 = vadd.f32 %v866_v9, %v697_v8  ;;  %v1240_v22 = vmul.f32 %v2429_v63, %v945_v10  ;;  %v1781_v9 = vor.u32 %v1908_v58, %v1778_v59 }
  0xfa   :  { %v1209_v16 = vmul.f32 %v2429_v63, %v867_v11  ;;  %v1308_v35 = vadd.f32 %v2435_v3, %v1240_v22 }
  0xfc   :  { %v1277_v23 = vadd.f32 %v2435_v3, %v1209_v16  ;;  %v777_v24 = vpop.f32.mrf.mxu2  ;;  %v1372_v40 = vmax.f32 %v1308_v35, 0.0 }
  0xfd   :  { %v946_v25 = vpop.f32.mrf.mxu3 }
  0xfe   :  { %v1341_v30 = vmax.f32 %v1277_v23, 0.0  ;;  %v947_v31 = vadd.f32 %v946_v25, %v777_v24  ;;  %v700_v32 = vpop.f32.mrf.mxu0 }
  0xff   :  { %v869_v34 = vpop.f32.mrf.mxu1 }
 0x100   :  { %v1954_v36 = vpack.c.bf16 %v1341_v30, %v1340_v29  ;;  %v1241_v37 = vmul.f32 %v2429_v63, %v947_v31  ;;  %v870_v39 = vadd.f32 %v869_v34, %v700_v32 }
 0x101   :  { %739 = vmatmul.bf16.gmra.mxu0 %v1641_v26  ;;  %819 = vmatmul.bf16.gmra.mxu2 %v1769_v27 }
 0x102   :  { %2090 = vst [vmem:[%s2824_s4 + $0x28] sm:$0xff] %v1954_v36   ;;  %v1309_v38 = vadd.f32 %v2435_v3, %v1241_v37  ;;  %908 = vmatmul.bf16.gmra.mxu1 %v1645_v28  ;;  %988 = vmatmul.bf16.gmra.mxu3 %v1773_v33  ;;  %v1210_v45 = vmul.f32 %v2429_v63, %v870_v39 }
 0x104   :  { %v1373_v41 = vmax.f32 %v1309_v38, 0.0  ;;  %v780_v42 = vpop.f32.mrf.mxu2  ;;  %v1278_v53 = vadd.f32 %v2435_v3, %v1210_v45 }
 0x105   :  { %v949_v43 = vpop.f32.mrf.mxu3 }
 0x106   :  { %v2034_v44 = vpack.c.bf16 %v1373_v41, %v1372_v40  ;;  %v702_v46 = vpop.f32.mrf.mxu0  ;;  %v950_v48 = vadd.f32 %v949_v43, %v780_v42  ;;  %v1342_v5 = vmax.f32 %v1278_v53, 0.0 }
 0x107   :  { %v871_v47 = vpop.f32.mrf.mxu1 }
 0x108   :  { %2106 = vst [vmem:[%s2824_s4 + $0xa8] sm:$0xff] %v2034_v44   ;;  %v872_v49 = vadd.f32 %v871_v47, %v702_v46  ;;  %v1242_v60 = vmul.f32 %v2429_v63, %v950_v48 }
 0x10a   :  { %v1211_v54 = vmul.f32 %v2429_v63, %v872_v49  ;;  %v1310_v11 = vadd.f32 %v2435_v3, %v1242_v60 }
 0x10c   :  { %v1279_v61 = vadd.f32 %v2435_v3, %v1211_v54  ;;  %v782_v62 = vpop.f32.mrf.mxu2  ;;  %v1374_v16 = vmax.f32 %v1310_v11, 0.0 }
 0x10d   :  { %v951_v0 = vpop.f32.mrf.mxu3 }
 0x10e   :  { %v1343_v6 = vmax.f32 %v1279_v61, 0.0  ;;  %v952_v7 = vadd.f32 %v951_v0, %v782_v62  ;;  %v705_v8 = vpop.f32.mrf.mxu0 }
 0x10f   :  { %v874_v10 = vpop.f32.mrf.mxu1 }
 0x110   :  { %v1959_v12 = vpack.c.bf16 %v1343_v6, %v1342_v5  ;;  %v1243_v13 = vmul.f32 %v2429_v63, %v952_v7  ;;  %v875_v15 = vadd.f32 %v874_v10, %v705_v8 }
 0x111   :  { %744 = vmatmul.bf16.gmra.mxu0 %v1649_v1  ;;  %824 = vmatmul.bf16.gmra.mxu2 %v1777_v2 }
 0x112   :  { %2091 = vst [vmem:[%s2824_s4 + $0x30] sm:$0xff] %v1959_v12   ;;  %v1311_v14 = vadd.f32 %v2435_v3, %v1243_v13  ;;  %913 = vmatmul.bf16.gmra.mxu1 %v1653_v4  ;;  %993 = vmatmul.bf16.gmra.mxu3 %v1781_v9  ;;  %v1212_v21 = vmul.f32 %v2429_v63, %v875_v15 }
 0x114   :  { %v1375_v17 = vmax.f32 %v1311_v14, 0.0  ;;  %v785_v18 = vpop.f32.mrf.mxu2  ;;  %v1280_v26 = vadd.f32 %v2435_v3, %v1212_v21 }
 0x115   :  { %v954_v19 = vpop.f32.mrf.mxu3 }
 0x116   :  { %v2039_v20 = vpack.c.bf16 %v1375_v17, %v1374_v16  ;;  %v707_v22 = vpop.f32.mrf.mxu0  ;;  %v955_v24 = vadd.f32 %v954_v19, %v785_v18  ;;  %v1344_v32 = vmax.f32 %v1280_v26, 0.0 }
 0x117   :  { %v876_v23 = vpop.f32.mrf.mxu1 }
 0x118   :  { %2107 = vst [vmem:[%s2824_s4 + $0xb0] sm:$0xff] %v2039_v20   ;;  %v877_v25 = vadd.f32 %v876_v23, %v707_v22  ;;  %v1244_v28 = vmul.f32 %v2429_v63, %v955_v24 }
 0x11a   :  { %v1213_v27 = vmul.f32 %v2429_v63, %v877_v25  ;;  %v1312_v37 = vadd.f32 %v2435_v3, %v1244_v28 }
 0x11c   :  { %v1281_v29 = vadd.f32 %v2435_v3, %v1213_v27  ;;  %v787_v30 = vpop.f32.mrf.mxu2  ;;  %v1376_v42 = vmax.f32 %v1312_v37, 0.0 }
 0x11d   :  { %v956_v31 = vpop.f32.mrf.mxu3 }
 0x11e   :  { %v1345_v33 = vmax.f32 %v1281_v29, 0.0  ;;  %v957_v34 = vadd.f32 %v956_v31, %v787_v30  ;;  %v710_v35 = vpop.f32.mrf.mxu0 }
 0x11f   :  { %v879_v36 = vpop.f32.mrf.mxu1 }
 0x120   :  { %v1964_v38 = vpack.c.bf16 %v1345_v33, %v1344_v32  ;;  %v1245_v39 = vmul.f32 %v2429_v63, %v957_v34  ;;  %v880_v41 = vadd.f32 %v879_v36, %v710_v35 }
 0x122   :  { %2092 = vst [vmem:[%s2824_s4 + $0x38] sm:$0xff] %v1964_v38   ;;  %v1313_v40 = vadd.f32 %v2435_v3, %v1245_v39  ;;  %v1214_v47 = vmul.f32 %v2429_v63, %v880_v41 }
 0x124   :  { %v1377_v43 = vmax.f32 %v1313_v40, 0.0  ;;  %v790_v44 = vpop.f32.mrf.mxu2  ;;  %v1282_v52 = vadd.f32 %v2435_v3, %v1214_v47 }
 0x125   :  { %v959_v45 = vpop.f32.mrf.mxu3 }
 0x126   :  { %v2044_v46 = vpack.c.bf16 %v1377_v43, %v1376_v42  ;;  %v712_v48 = vpop.f32.mrf.mxu0  ;;  %v960_v50 = vadd.f32 %v959_v45, %v790_v44  ;;  %v1346_v58 = vmax.f32 %v1282_v52, 0.0 }
 0x127   :  { %v881_v49 = vpop.f32.mrf.mxu1 }
 0x128   :  { %2108 = vst [vmem:[%s2824_s4 + $0xb8] sm:$0xff] %v2044_v46   ;;  %v882_v51 = vadd.f32 %v881_v49, %v712_v48  ;;  %v1246_v54 = vmul.f32 %v2429_v63, %v960_v50 }
 0x12a   :  { %v1215_v53 = vmul.f32 %v2429_v63, %v882_v51  ;;  %v1314_v0 = vadd.f32 %v2435_v3, %v1246_v54 }
 0x12c   :  { %v1283_v55 = vadd.f32 %v2435_v3, %v1215_v53  ;;  %v792_v56 = vpop.f32.mrf.mxu2  ;;  %v1378_v6 = vmax.f32 %v1314_v0, 0.0 }
 0x12d   :  { %v961_v57 = vpop.f32.mrf.mxu3 }
 0x12e   :  { %v1347_v59 = vmax.f32 %v1283_v55, 0.0  ;;  %v962_v60 = vadd.f32 %v961_v57, %v792_v56  ;;  %v715_v61 = vpop.f32.mrf.mxu0 }
 0x12f   :  { %v884_v62 = vpop.f32.mrf.mxu1 }
 0x130   :  { %v1969_v1 = vpack.c.bf16 %v1347_v59, %v1346_v58  ;;  %v1247_v2 = vmul.f32 %v2429_v63, %v962_v60  ;;  %v885_v5 = vadd.f32 %v884_v62, %v715_v61 }
 0x132   :  { %2093 = vst [vmem:[%s2824_s4 + $0x40] sm:$0xff] %v1969_v1   ;;  %v1315_v4 = vadd.f32 %v2435_v3, %v1247_v2  ;;  %v1216_v11 = vmul.f32 %v2429_v63, %v885_v5 }
 0x134   :  { %v1379_v7 = vmax.f32 %v1315_v4, 0.0  ;;  %v795_v8 = vpop.f32.mrf.mxu2  ;;  %v1284_v16 = vadd.f32 %v2435_v3, %v1216_v11 }
 0x135   :  { %v964_v9 = vpop.f32.mrf.mxu3 }
 0x136   :  { %v2049_v10 = vpack.c.bf16 %v1379_v7, %v1378_v6  ;;  %v717_v12 = vpop.f32.mrf.mxu0  ;;  %v965_v14 = vadd.f32 %v964_v9, %v795_v8  ;;  %v1348_v22 = vmax.f32 %v1284_v16, 0.0 }
 0x137   :  { %v886_v13 = vpop.f32.mrf.mxu1 }
 0x138   :  { %2109 = vst [vmem:[%s2824_s4 + $0xc0] sm:$0xff] %v2049_v10   ;;  %v887_v15 = vadd.f32 %v886_v13, %v717_v12  ;;  %v1248_v18 = vmul.f32 %v2429_v63, %v965_v14 }
 0x13a   :  { %v1217_v17 = vmul.f32 %v2429_v63, %v887_v15  ;;  %v1316_v27 = vadd.f32 %v2435_v3, %v1248_v18 }
 0x13c   :  { %v1285_v19 = vadd.f32 %v2435_v3, %v1217_v17  ;;  %v797_v20 = vpop.f32.mrf.mxu2  ;;  %v1380_v32 = vmax.f32 %v1316_v27, 0.0 }
 0x13d   :  { %v966_v21 = vpop.f32.mrf.mxu3 }
 0x13e   :  { %v1349_v23 = vmax.f32 %v1285_v19, 0.0  ;;  %v967_v24 = vadd.f32 %v966_v21, %v797_v20  ;;  %v720_v25 = vpop.f32.mrf.mxu0 }
 0x13f   :  { %v889_v26 = vpop.f32.mrf.mxu1 }
 0x140   :  { %v1974_v28 = vpack.c.bf16 %v1349_v23, %v1348_v22  ;;  %v1249_v29 = vmul.f32 %v2429_v63, %v967_v24  ;;  %v890_v31 = vadd.f32 %v889_v26, %v720_v25 }
 0x142   :  { %2094 = vst [vmem:[%s2824_s4 + $0x48] sm:$0xff] %v1974_v28   ;;  %v1317_v30 = vadd.f32 %v2435_v3, %v1249_v29  ;;  %v1218_v37 = vmul.f32 %v2429_v63, %v890_v31 }
 0x144   :  { %v1381_v33 = vmax.f32 %v1317_v30, 0.0  ;;  %v800_v34 = vpop.f32.mrf.mxu2  ;;  %v1286_v42 = vadd.f32 %v2435_v3, %v1218_v37 }
 0x145   :  { %v969_v35 = vpop.f32.mrf.mxu3 }
 0x146   :  { %v2054_v36 = vpack.c.bf16 %v1381_v33, %v1380_v32  ;;  %v722_v38 = vpop.f32.mrf.mxu0  ;;  %v970_v40 = vadd.f32 %v969_v35, %v800_v34  ;;  %v1350_v48 = vmax.f32 %v1286_v42, 0.0 }
 0x147   :  { %v891_v39 = vpop.f32.mrf.mxu1 }
 0x148   :  { %2110 = vst [vmem:[%s2824_s4 + $0xc8] sm:$0xff] %v2054_v36   ;;  %v892_v41 = vadd.f32 %v891_v39, %v722_v38  ;;  %v1250_v44 = vmul.f32 %v2429_v63, %v970_v40 }
 0x14a   :  { %v1219_v43 = vmul.f32 %v2429_v63, %v892_v41  ;;  %v1318_v53 = vadd.f32 %v2435_v3, %v1250_v44 }
 0x14c   :  { %v1287_v45 = vadd.f32 %v2435_v3, %v1219_v43  ;;  %v802_v46 = vpop.f32.mrf.mxu2  ;;  %v1382_v58 = vmax.f32 %v1318_v53, 0.0 }
 0x14d   :  { %v971_v47 = vpop.f32.mrf.mxu3 }
 0x14e   :  { %v1351_v49 = vmax.f32 %v1287_v45, 0.0  ;;  %v972_v50 = vadd.f32 %v971_v47, %v802_v46  ;;  %v725_v51 = vpop.f32.mrf.mxu0 }
 0x14f   :  { %v894_v52 = vpop.f32.mrf.mxu1 }
 0x150   :  { %v1979_v54 = vpack.c.bf16 %v1351_v49, %v1350_v48  ;;  %v1251_v55 = vmul.f32 %v2429_v63, %v972_v50  ;;  %v895_v57 = vadd.f32 %v894_v52, %v725_v51 }
 0x152   :  { %2095 = vst [vmem:[%s2824_s4 + $0x50] sm:$0xff] %v1979_v54   ;;  %v1319_v56 = vadd.f32 %v2435_v3, %v1251_v55  ;;  %v1220_v0 = vmul.f32 %v2429_v63, %v895_v57 }
 0x154   :  { %v1383_v59 = vmax.f32 %v1319_v56, 0.0  ;;  %v805_v60 = vpop.f32.mrf.mxu2  ;;  %v1288_v6 = vadd.f32 %v2435_v3, %v1220_v0 }
 0x155   :  { %v974_v61 = vpop.f32.mrf.mxu3 }
 0x156   :  { %v2059_v62 = vpack.c.bf16 %v1383_v59, %v1382_v58  ;;  %v727_v1 = vpop.f32.mrf.mxu0  ;;  %v975_v4 = vadd.f32 %v974_v61, %v805_v60  ;;  %v1352_v12 = vmax.f32 %v1288_v6, 0.0 }
 0x157   :  { %v896_v2 = vpop.f32.mrf.mxu1 }
 0x158   :  { %2111 = vst [vmem:[%s2824_s4 + $0xd0] sm:$0xff] %v2059_v62   ;;  %v897_v5 = vadd.f32 %v896_v2, %v727_v1  ;;  %v1252_v8 = vmul.f32 %v2429_v63, %v975_v4 }
 0x15a   :  { %v1221_v7 = vmul.f32 %v2429_v63, %v897_v5  ;;  %v1320_v17 = vadd.f32 %v2435_v3, %v1252_v8 }
 0x15c   :  { %v1289_v9 = vadd.f32 %v2435_v3, %v1221_v7  ;;  %v807_v10 = vpop.f32.mrf.mxu2  ;;  %v1384_v22 = vmax.f32 %v1320_v17, 0.0 }
 0x15d   :  { %v976_v11 = vpop.f32.mrf.mxu3 }
 0x15e   :  { %v1353_v13 = vmax.f32 %v1289_v9, 0.0  ;;  %v977_v14 = vadd.f32 %v976_v11, %v807_v10  ;;  %v730_v15 = vpop.f32.mrf.mxu0 }
 0x15f   :  { %v899_v16 = vpop.f32.mrf.mxu1 }
 0x160   :  { %v1984_v18 = vpack.c.bf16 %v1353_v13, %v1352_v12  ;;  %v1253_v19 = vmul.f32 %v2429_v63, %v977_v14  ;;  %v900_v21 = vadd.f32 %v899_v16, %v730_v15 }
 0x162   :  { %2096 = vst [vmem:[%s2824_s4 + $0x58] sm:$0xff] %v1984_v18   ;;  %v1321_v20 = vadd.f32 %v2435_v3, %v1253_v19  ;;  %v1222_v27 = vmul.f32 %v2429_v63, %v900_v21 }
 0x164   :  { %v1385_v23 = vmax.f32 %v1321_v20, 0.0  ;;  %v810_v24 = vpop.f32.mrf.mxu2  ;;  %v1290_v32 = vadd.f32 %v2435_v3, %v1222_v27 }
 0x165   :  { %v979_v25 = vpop.f32.mrf.mxu3 }
 0x166   :  { %v2064_v26 = vpack.c.bf16 %v1385_v23, %v1384_v22  ;;  %v732_v28 = vpop.f32.mrf.mxu0  ;;  %v980_v30 = vadd.f32 %v979_v25, %v810_v24  ;;  %v1354_v38 = vmax.f32 %v1290_v32, 0.0  ;;  %v2135_v23 = vld [vmem:[%s2822_s2] ss:$0 sm:$0xff] }
 0x167   :  { %v901_v29 = vpop.f32.mrf.mxu1 }
 0x168   :  { %2112 = vst [vmem:[%s2824_s4 + $0xd8] sm:$0xff] %v2064_v26   ;;  %v902_v31 = vadd.f32 %v901_v29, %v732_v28  ;;  %v1254_v34 = vmul.f32 %v2429_v63, %v980_v30 }
 0x16a   :  { %v1223_v33 = vmul.f32 %v2429_v63, %v902_v31  ;;  %v1322_v43 = vadd.f32 %v2435_v3, %v1254_v34 }
 0x16c   :  { %v1291_v35 = vadd.f32 %v2435_v3, %v1223_v33  ;;  %v812_v36 = vpop.f32.mrf.mxu2  ;;  %v1386_v48 = vmax.f32 %v1322_v43, 0.0 }
 0x16d   :  { %v981_v37 = vpop.f32.mrf.mxu3 }
 0x16e   :  { %v1355_v39 = vmax.f32 %v1291_v35, 0.0  ;;  %v982_v40 = vadd.f32 %v981_v37, %v812_v36  ;;  %v735_v41 = vpop.f32.mrf.mxu0 }
 0x16f   :  { %v904_v42 = vpop.f32.mrf.mxu1 }
 0x170   :  { %v1989_v44 = vpack.c.bf16 %v1355_v39, %v1354_v38  ;;  %v1255_v45 = vmul.f32 %v2429_v63, %v982_v40  ;;  %v905_v47 = vadd.f32 %v904_v42, %v735_v41 }
 0x172   :  { %2097 = vst [vmem:[%s2824_s4 + $0x60] sm:$0xff] %v1989_v44   ;;  %v1323_v46 = vadd.f32 %v2435_v3, %v1255_v45  ;;  %v1224_v53 = vmul.f32 %v2429_v63, %v905_v47 }
 0x174   :  { %v1387_v49 = vmax.f32 %v1323_v46, 0.0  ;;  %v815_v50 = vpop.f32.mrf.mxu2  ;;  %v1292_v58 = vadd.f32 %v2435_v3, %v1224_v53 }
 0x175   :  { %v984_v51 = vpop.f32.mrf.mxu3 }
 0x176   :  { %v2069_v52 = vpack.c.bf16 %v1387_v49, %v1386_v48  ;;  %v737_v54 = vpop.f32.mrf.mxu0  ;;  %v985_v56 = vadd.f32 %v984_v51, %v815_v50  ;;  %v1356_v1 = vmax.f32 %v1292_v58, 0.0 }
 0x177   :  { %v906_v55 = vpop.f32.mrf.mxu1 }
 0x178   :  { %2113 = vst [vmem:[%s2824_s4 + $0xe0] sm:$0xff] %v2069_v52   ;;  %v907_v57 = vadd.f32 %v906_v55, %v737_v54  ;;  %v1256_v60 = vmul.f32 %v2429_v63, %v985_v56 }
 0x17a   :  { %v1225_v59 = vmul.f32 %v2429_v63, %v907_v57  ;;  %v1324_v7 = vadd.f32 %v2435_v3, %v1256_v60 }
 0x17c   :  { %v1293_v61 = vadd.f32 %v2435_v3, %v1225_v59  ;;  %v817_v62 = vpop.f32.mrf.mxu2  ;;  %v1388_v12 = vmax.f32 %v1324_v7, 0.0 }
 0x17d   :  { %v986_v0 = vpop.f32.mrf.mxu3 }
 0x17e   :  { %v1357_v2 = vmax.f32 %v1293_v61, 0.0  ;;  %v987_v4 = vadd.f32 %v986_v0, %v817_v62  ;;  %v740_v5 = vpop.f32.mrf.mxu0 }
 0x17f   :  { %v909_v6 = vpop.f32.mrf.mxu1 }
 0x180   :  { %v1994_v8 = vpack.c.bf16 %v1357_v2, %v1356_v1  ;;  %v1257_v9 = vmul.f32 %v2429_v63, %v987_v4  ;;  %v910_v11 = vadd.f32 %v909_v6, %v740_v5 }
 0x182   :  { %2098 = vst [vmem:[%s2824_s4 + $0x68] sm:$0xff] %v1994_v8   ;;  %v1325_v10 = vadd.f32 %v2435_v3, %v1257_v9  ;;  %v1226_v17 = vmul.f32 %v2429_v63, %v910_v11  ;;  %v2136_v63 = vld [vmem:[%s2823_s3] ss:$0 sm:$0xff] }
 0x184   :  { %v1389_v13 = vmax.f32 %v1325_v10, 0.0  ;;  %v820_v14 = vpop.f32.mrf.mxu2  ;;  %v1294_v22 = vadd.f32 %v2435_v3, %v1226_v17 }
 0x185   :  { %v989_v15 = vpop.f32.mrf.mxu3 }
 0x186   :  { %v2074_v16 = vpack.c.bf16 %v1389_v13, %v1388_v12  ;;  %v742_v18 = vpop.f32.mrf.mxu0  ;;  %v990_v20 = vadd.f32 %v989_v15, %v820_v14  ;;  %v1358_v29 = vmax.f32 %v1294_v22, 0.0 }
 0x187   :  { %v911_v19 = vpop.f32.mrf.mxu1 }
 0x188   :  { %2114 = vst [vmem:[%s2824_s4 + $0xe8] sm:$0xff] %v2074_v16   ;;  %v912_v21 = vadd.f32 %v911_v19, %v742_v18  ;;  %v1258_v25 = vmul.f32 %v2135_v23, %v990_v20 }
 0x18a   :  { %v1227_v24 = vmul.f32 %v2135_v23, %v912_v21  ;;  %v1326_v34 = vadd.f32 %v2136_v63, %v1258_v25 }
 0x18c   :  { %v1295_v26 = vadd.f32 %v2136_v63, %v1227_v24  ;;  %v822_v27 = vpop.f32.mrf.mxu2  ;;  %v1390_v38 = vmax.f32 %v1326_v34, 0.0 }
 0x18d   :  { %v991_v28 = vpop.f32.mrf.mxu3 }
 0x18e   :  { %v1359_v30 = vmax.f32 %v1295_v26, 0.0  ;;  %v992_v31 = vadd.f32 %v991_v28, %v822_v27  ;;  %v745_v32 = vpop.f32.mrf.mxu0 }
 0x18f   :  { %v914_v33 = vpop.f32.mrf.mxu1 }
 0x190   :  { %v1999_v3 = vpack.c.bf16 %v1359_v30, %v1358_v29  ;;  %v1259_v35 = vmul.f32 %v2135_v23, %v992_v31  ;;  %v915_v37 = vadd.f32 %v914_v33, %v745_v32 }
 0x192   :  { %2099 = vst [vmem:[%s2824_s4 + $0x70] sm:$0xff] %v1999_v3   ;;  %v1327_v36 = vadd.f32 %v2136_v63, %v1259_v35  ;;  %v1228_v43 = vmul.f32 %v2135_v23, %v915_v37 }
 0x194   :  { %v1391_v39 = vmax.f32 %v1327_v36, 0.0  ;;  %v825_v40 = vpop.f32.mrf.mxu2  ;;  %v1296_v48 = vadd.f32 %v2136_v63, %v1228_v43 }
 0x195   :  { %v994_v41 = vpop.f32.mrf.mxu3 }
 0x196   :  { %v2079_v42 = vpack.c.bf16 %v1391_v39, %v1390_v38  ;;  %v747_v44 = vpop.f32.mrf.mxu0  ;;  %v995_v46 = vadd.f32 %v994_v41, %v825_v40  ;;  %v1360_v54 = vmax.f32 %v1296_v48, 0.0 }
 0x197   :  { %v916_v45 = vpop.f32.mrf.mxu1 }
 0x198   :  { %2115 = vst [vmem:[%s2824_s4 + $0xf0] sm:$0xff] %v2079_v42   ;;  %v917_v47 = vadd.f32 %v916_v45, %v747_v44  ;;  %v1260_v50 = vmul.f32 %v2135_v23, %v995_v46 }
 0x19a   :  { %v1229_v49 = vmul.f32 %v2135_v23, %v917_v47  ;;  %v1328_v57 = vadd.f32 %v2136_v63, %v1260_v50 }
 0x19c   :  { %v1297_v51 = vadd.f32 %v2136_v63, %v1229_v49  ;;  %v827_v52 = vpop.f32.mrf.mxu2  ;;  %v1392_v61 = vmax.f32 %v1328_v57, 0.0 }
 0x19d   :  { %v996_v53 = vpop.f32.mrf.mxu3 }
 0x19e   :  { %v1361_v55 = vmax.f32 %v1297_v51, 0.0  ;;  %v997_v56 = vadd.f32 %v996_v53, %v827_v52 }
 0x1a0   :  { %v2004_v58 = vpack.c.bf16 %v1361_v55, %v1360_v54  ;;  %v1261_v59 = vmul.f32 %v2135_v23, %v997_v56 }
 0x1a2   :  { %2100 = vst [vmem:[%s2824_s4 + $0x78] sm:$0xff] %v2004_v58   ;;  %v1329_v60 = vadd.f32 %v2136_v63, %v1261_v59 }
 0x1a4   :  { %v1393_v62 = vmax.f32 %v1329_v60, 0.0 }
 0x1a6   :  { %v2084_v0 = vpack.c.bf16 %v1393_v62, %v1392_v61 }
 0x1a8   :  { %2116 = vst [vmem:[%s2824_s4 + $0xf8] sm:$0xff] %v2084_v0  }

// kernel: resnet_forward.10
= control target key start
LH: loop header
LB: loop body
LE: loop exit
PB: predicated region body
PF: predicated region fallthrough
CT: control target
= control target key end

     0   :  { %s665_s1 = inlined_call_operand.vmem [shape: bf16[128,128], index: 1, kind: input, shape index: {}]   ;;  %s666_s2 = inlined_call_operand.vmem [shape: f32[1,128], index: 2, kind: input, shape index: {}]   ;;  %s667_s3 = inlined_call_operand.vmem [shape: f32[1,128], index: 3, kind: input, shape index: {}]   ;;  %s668_s0 = inlined_call_operand.vmem [shape: bf16[128,128], index: 0, kind: input, shape index: {}]   ;;  %s669_s4 = inlined_call_operand.vmem [shape: bf16[128,128], index: 4, kind: output, shape index: {}]  }
   0x1   :  { %v452_v0 = vld [vmem:[%s665_s1 + $0x38] sm:$0xff]  ;;  %v451_v1 = vld [vmem:[%s665_s1 + $0x30] sm:$0xff]  ;;  %v450_v2 = vld [vmem:[%s665_s1 + $0x28] sm:$0xff] }
   0x2   :  { %181 = vmatpush.bf16.msra.mxu0 %v452_v0  ;;  %500 = vmatpush.bf16.msra.mxu1 %v452_v0  ;;  %v449_v3 = vld [vmem:[%s665_s1 + $0x20] sm:$0xff]  ;;  %v448_v4 = vld [vmem:[%s665_s1 + $0x18] sm:$0xff]  ;;  %v447_v5 = vld [vmem:[%s665_s1 + $0x10] sm:$0xff] }
   0x3   :  { %501 = vmatpush.bf16.msra.mxu2 %v452_v0  ;;  %502 = vmatpush.bf16.msra.mxu3 %v452_v0  ;;  %v446_v6 = vld [vmem:[%s665_s1 + $0x8] sm:$0xff]  ;;  %v445_v7 = vld [vmem:[%s665_s1] sm:$0xff]  ;;  %v439_v9 = vld [vmem:[%s668_s0 + $0x10] sm:$0xff] }
   0x4   :  { %v437_v8 = vld [vmem:[%s668_s0] sm:$0xff]  ;;  %v443_v11 = vld [vmem:[%s668_s0 + $0x30] sm:$0xff]  ;;  %v438_v12 = vld [vmem:[%s668_s0 + $0x8] sm:$0xff] }
   0x5   :  { %v441_v10 = vld [vmem:[%s668_s0 + $0x20] sm:$0xff]  ;;  %v440_v13 = vld [vmem:[%s668_s0 + $0x18] sm:$0xff]  ;;  %v442_v14 = vld [vmem:[%s668_s0 + $0x28] sm:$0xff] }
   0x6   :  { %182 = vmatpush.bf16.msra.mxu0 %v451_v1  ;;  %503 = vmatpush.bf16.msra.mxu1 %v451_v1  ;;  %v444_v15 = vld [vmem:[%s668_s0 + $0x38] sm:$0xff]  ;;  %v602_v18 = vld [vmem:[%s666_s2] ss:$0 sm:$0xff] }
   0x7   :  { %504 = vmatpush.bf16.msra.mxu2 %v451_v1  ;;  %505 = vmatpush.bf16.msra.mxu3 %v451_v1  ;;  %v608_v20 = vld [vmem:[%s667_s3] ss:$0 sm:$0xff] }
   0xa   :  { %183 = vmatpush.bf16.msra.mxu0 %v450_v2  ;;  %506 = vmatpush.bf16.msra.mxu1 %v450_v2 }
   0xb   :  { %507 = vmatpush.bf16.msra.mxu2 %v450_v2  ;;  %508 = vmatpush.bf16.msra.mxu3 %v450_v2 }
   0xe   :  { %184 = vmatpush.bf16.msra.mxu0 %v449_v3  ;;  %509 = vmatpush.bf16.msra.mxu1 %v449_v3 }
   0xf   :  { %510 = vmatpush.bf16.msra.mxu2 %v449_v3  ;;  %511 = vmatpush.bf16.msra.mxu3 %v449_v3 }
  0x12   :  { %185 = vmatpush.bf16.msra.mxu0 %v448_v4  ;;  %512 = vmatpush.bf16.msra.mxu1 %v448_v4 }
  0x13   :  { %513 = vmatpush.bf16.msra.mxu2 %v448_v4  ;;  %514 = vmatpush.bf16.msra.mxu3 %v448_v4 }
  0x16   :  { %186 = vmatpush.bf16.msra.mxu0 %v447_v5  ;;  %515 = vmatpush.bf16.msra.mxu1 %v447_v5 }
  0x17   :  { %516 = vmatpush.bf16.msra.mxu2 %v447_v5  ;;  %517 = vmatpush.bf16.msra.mxu3 %v447_v5 }
  0x1a   :  { %187 = vmatpush.bf16.msra.mxu0 %v446_v6  ;;  %518 = vmatpush.bf16.msra.mxu1 %v446_v6 }
  0x1b   :  { %519 = vmatpush.bf16.msra.mxu2 %v446_v6  ;;  %520 = vmatpush.bf16.msra.mxu3 %v446_v6 }
  0x1e   :  { %188 = vmatpush.bf16.msra.mxu0 %v445_v7  ;;  %521 = vmatpush.bf16.msra.mxu1 %v445_v7 }
  0x1f   :  { %522 = vmatpush.bf16.msra.mxu2 %v445_v7  ;;  %523 = vmatpush.bf16.msra.mxu3 %v445_v7 }
  0x21   :  { %189 = vmatmul.bf16.vlgmr.msra.gmra.mxu0 %v437_v8  ;;  %199 = vmatmul.bf16.vlgmr.msra.gmra.mxu1 %v439_v9 }
  0x22   :  { %209 = vmatmul.bf16.vlgmr.msra.gmra.mxu2 %v441_v10  ;;  %219 = vmatmul.bf16.vlgmr.msra.gmra.mxu3 %v443_v11 }
  0x31   :  { %194 = vmatmul.bf16.gmra.mxu0 %v438_v12  ;;  %204 = vmatmul.bf16.gmra.mxu1 %v440_v13 }
  0x32   :  { %214 = vmatmul.bf16.gmra.mxu2 %v442_v14  ;;  %224 = vmatmul.bf16.gmra.mxu3 %v444_v15 }
  0x9e   :  { %v190_v16 = vpop.f32.mrf.mxu0  ;;  %v200_v17 = vpop.f32.mrf.mxu1 }
  0x9f   :  { %v285_v19 = vmul.f32 %v602_v18, %v190_v16  ;;  %v289_v21 = vmul.f32 %v602_v18, %v200_v17 }
  0xa1   :  { %v305_v26 = vadd.f32 %v608_v20, %v285_v19  ;;  %v309_v27 = vadd.f32 %v608_v20, %v289_v21 }
  0xa3   :  { %v321_v34 = vmax.f32 %v305_v26, 0.0  ;;  %v325_v35 = vmax.f32 %v309_v27, 0.0 }
  0xa5   :  { %v210_v22 = vpop.f32.mrf.mxu2  ;;  %v220_v23 = vpop.f32.mrf.mxu3 }
  0xa6   :  { %v192_v24 = vpop.f32.mrf.mxu0  ;;  %v202_v25 = vpop.f32.mrf.mxu1  ;;  %v293_v32 = vmul.f32 %v602_v18, %v210_v22  ;;  %v297_v33 = vmul.f32 %v602_v18, %v220_v23 }
  0xa7   :  { %v286_v28 = vmul.f32 %v602_v18, %v192_v24  ;;  %v290_v29 = vmul.f32 %v602_v18, %v202_v25 }
  0xa8   :  { %v313_v42 = vadd.f32 %v608_v20, %v293_v32  ;;  %v317_v43 = vadd.f32 %v608_v20, %v297_v33 }
  0xa9   :  { %v306_v30 = vadd.f32 %v608_v20, %v286_v28  ;;  %v310_v31 = vadd.f32 %v608_v20, %v290_v29 }
  0xaa   :  { %v329_v50 = vmax.f32 %v313_v42, 0.0  ;;  %v333_v51 = vmax.f32 %v317_v43, 0.0 }
  0xab   :  { %v322_v36 = vmax.f32 %v306_v30, 0.0  ;;  %v326_v37 = vmax.f32 %v310_v31, 0.0 }
  0xad   :  { %v456_v38 = vpack.c.bf16 %v322_v36, %v321_v34  ;;  %v466_v39 = vpack.c.bf16 %v326_v37, %v325_v35  ;;  %v212_v40 = vpop.f32.mrf.mxu2  ;;  %v222_v41 = vpop.f32.mrf.mxu3 }
  0xae   :  { %v294_v44 = vmul.f32 %v602_v18, %v212_v40  ;;  %v298_v45 = vmul.f32 %v602_v18, %v222_v41  ;;  %v195_v46 = vpop.f32.mrf.mxu0  ;;  %v205_v47 = vpop.f32.mrf.mxu1 }
  0xaf   :  { %457 = vst [vmem:[%s669_s4] sm:$0xff] %v456_v38   ;;  %v287_v54 = vmul.f32 %v602_v18, %v195_v46  ;;  %v291_v55 = vmul.f32 %v602_v18, %v205_v47 }
  0xb0   :  { %494 = vst [vmem:[%s669_s4 + $0x10] sm:$0xff] %v466_v39   ;;  %v314_v48 = vadd.f32 %v608_v20, %v294_v44  ;;  %v318_v49 = vadd.f32 %v608_v20, %v298_v45 }
  0xb1   :  { %v307_v62 = vadd.f32 %v608_v20, %v287_v54  ;;  %v311_v63 = vadd.f32 %v608_v20, %v291_v55 }
  0xb2   :  { %v330_v52 = vmax.f32 %v314_v48, 0.0  ;;  %v334_v53 = vmax.f32 %v318_v49, 0.0 }
  0xb3   :  { %v323_v6 = vmax.f32 %v307_v62, 0.0  ;;  %v327_v7 = vmax.f32 %v311_v63, 0.0 }
  0xb4   :  { %v476_v56 = vpack.c.bf16 %v330_v52, %v329_v50  ;;  %v486_v57 = vpack.c.bf16 %v334_v53, %v333_v51 }
  0xb5   :  { %v215_v58 = vpop.f32.mrf.mxu2  ;;  %v225_v59 = vpop.f32.mrf.mxu3 }
  0xb6   :  { %496 = vst [vmem:[%s669_s4 + $0x20] sm:$0xff] %v476_v56   ;;  %v197_v60 = vpop.f32.mrf.mxu0  ;;  %v207_v61 = vpop.f32.mrf.mxu1  ;;  %v295_v4 = vmul.f32 %v602_v18, %v215_v58  ;;  %v299_v5 = vmul.f32 %v602_v18, %v225_v59 }
  0xb7   :  { %498 = vst [vmem:[%s669_s4 + $0x30] sm:$0xff] %v486_v57   ;;  %v288_v0 = vmul.f32 %v602_v18, %v197_v60  ;;  %v292_v1 = vmul.f32 %v602_v18, %v207_v61 }
  0xb8   :  { %v315_v14 = vadd.f32 %v608_v20, %v295_v4  ;;  %v319_v15 = vadd.f32 %v608_v20, %v299_v5 }
  0xb9   :  { %v308_v2 = vadd.f32 %v608_v20, %v288_v0  ;;  %v312_v3 = vadd.f32 %v608_v20, %v292_v1 }
  0xba   :  { %v331_v22 = vmax.f32 %v315_v14, 0.0  ;;  %v335_v23 = vmax.f32 %v319_v15, 0.0 }
  0xbb   :  { %v324_v8 = vmax.f32 %v308_v2, 0.0  ;;  %v328_v9 = vmax.f32 %v312_v3, 0.0 }
  0xbd   :  { %v461_v10 = vpack.c.bf16 %v324_v8, %v323_v6  ;;  %v471_v11 = vpack.c.bf16 %v328_v9, %v327_v7  ;;  %v217_v12 = vpop.f32.mrf.mxu2  ;;  %v227_v13 = vpop.f32.mrf.mxu3 }
  0xbe   :  { %v296_v16 = vmul.f32 %v602_v18, %v217_v12  ;;  %v300_v17 = vmul.f32 %v602_v18, %v227_v13 }
  0xbf   :  { %493 = vst [vmem:[%s669_s4 + $0x8] sm:$0xff] %v461_v10  }
  0xc0   :  { %495 = vst [vmem:[%s669_s4 + $0x18] sm:$0xff] %v471_v11   ;;  %v316_v19 = vadd.f32 %v608_v20, %v296_v16  ;;  %v320_v21 = vadd.f32 %v608_v20, %v300_v17 }
  0xc2   :  { %v332_v24 = vmax.f32 %v316_v19, 0.0  ;;  %v336_v25 = vmax.f32 %v320_v21, 0.0 }
  0xc4   :  { %v481_v26 = vpack.c.bf16 %v332_v24, %v331_v22  ;;  %v491_v27 = vpack.c.bf16 %v336_v25, %v335_v23 }
  0xc6   :  { %497 = vst [vmem:[%s669_s4 + $0x28] sm:$0xff] %v481_v26  }
  0xc7   :  { %499 = vst [vmem:[%s669_s4 + $0x38] sm:$0xff] %v491_v27  }

// kernel: resnet_forward.11
= control target key start
LH: loop header
LB: loop body
LE: loop exit
PB: predicated region body
PF: predicated region fallthrough
CT: control target
= control target key end

     0   :  { %s784_s1 = inlined_call_operand.vmem [shape: bf16[128,128], index: 1, kind: input, shape index: {}]   ;;  %s785_s2 = inlined_call_operand.vmem [shape: f32[1,128], index: 2, kind: input, shape index: {}]   ;;  %s786_s3 = inlined_call_operand.vmem [shape: f32[1,128], index: 3, kind: input, shape index: {}]   ;;  %s787_s0 = inlined_call_operand.vmem [shape: bf16[128,128], index: 0, kind: input, shape index: {}]   ;;  %s788_s4 = inlined_call_operand.vmem [shape: bf16[128,128], index: 4, kind: input, shape index: {}]   ;;  %s789_s5 = inlined_call_operand.vmem [shape: bf16[128,128], index: 5, kind: output, shape index: {}]  }
   0x1   :  { %v503_v0 = vld [vmem:[%s784_s1 + $0x38] sm:$0xff]  ;;  %v502_v1 = vld [vmem:[%s784_s1 + $0x30] sm:$0xff]  ;;  %v501_v2 = vld [vmem:[%s784_s1 + $0x28] sm:$0xff] }
   0x2   :  { %184 = vmatpush.bf16.msra.mxu0 %v503_v0  ;;  %590 = vmatpush.bf16.msra.mxu1 %v503_v0  ;;  %v500_v3 = vld [vmem:[%s784_s1 + $0x20] sm:$0xff]  ;;  %v499_v4 = vld [vmem:[%s784_s1 + $0x18] sm:$0xff]  ;;  %v498_v5 = vld [vmem:[%s784_s1 + $0x10] sm:$0xff] }
   0x3   :  { %591 = vmatpush.bf16.msra.mxu2 %v503_v0  ;;  %592 = vmatpush.bf16.msra.mxu3 %v503_v0  ;;  %v497_v6 = vld [vmem:[%s784_s1 + $0x8] sm:$0xff]  ;;  %v496_v7 = vld [vmem:[%s784_s1] sm:$0xff]  ;;  %v490_v9 = vld [vmem:[%s787_s0 + $0x10] sm:$0xff] }
   0x4   :  { %v488_v8 = vld [vmem:[%s787_s0] sm:$0xff]  ;;  %v494_v11 = vld [vmem:[%s787_s0 + $0x30] sm:$0xff]  ;;  %v489_v12 = vld [vmem:[%s787_s0 + $0x8] sm:$0xff] }
   0x5   :  { %v492_v10 = vld [vmem:[%s787_s0 + $0x20] sm:$0xff]  ;;  %v491_v13 = vld [vmem:[%s787_s0 + $0x18] sm:$0xff]  ;;  %v493_v14 = vld [vmem:[%s787_s0 + $0x28] sm:$0xff] }
   0x6   :  { %185 = vmatpush.bf16.msra.mxu0 %v502_v1  ;;  %593 = vmatpush.bf16.msra.mxu1 %v502_v1  ;;  %v495_v15 = vld [vmem:[%s787_s0 + $0x38] sm:$0xff]  ;;  %v697_v16 = vld [vmem:[%s785_s2] ss:$0 sm:$0xff]  ;;  %v577_v23 = vld [vmem:[%s788_s4 + $0x10] sm:$0xff]  }
   0x7   :  { %594 = vmatpush.bf16.msra.mxu2 %v502_v1  ;;  %595 = vmatpush.bf16.msra.mxu3 %v502_v1  ;;  %v703_v20 = vld [vmem:[%s786_s3] ss:$0 sm:$0xff]  ;;  %v514_v27 = vunpack.c.l.bf16 %v577_v23  ;;  %v515_v35 = vunpack.c.h.bf16 %v577_v23  ;;  %v581_v41 = vld [vmem:[%s788_s4 + $0x30] sm:$0xff]  }
   0x8   :  { %v505_v22 = vld [vmem:[%s788_s4] sm:$0xff]   ;;  %v530_v49 = vunpack.c.l.bf16 %v581_v41  ;;  %v531_v59 = vunpack.c.h.bf16 %v581_v41 }
   0x9   :  { %v506_v25 = vunpack.c.l.bf16 %v505_v22  ;;  %v507_v33 = vunpack.c.h.bf16 %v505_v22  ;;  %v579_v40 = vld [vmem:[%s788_s4 + $0x20] sm:$0xff]  }
   0xa   :  { %186 = vmatpush.bf16.msra.mxu0 %v501_v2  ;;  %596 = vmatpush.bf16.msra.mxu1 %v501_v2  ;;  %v522_v47 = vunpack.c.l.bf16 %v579_v40  ;;  %v523_v57 = vunpack.c.h.bf16 %v579_v40 }
   0xb   :  { %597 = vmatpush.bf16.msra.mxu2 %v501_v2  ;;  %598 = vmatpush.bf16.msra.mxu3 %v501_v2 }
   0xe   :  { %187 = vmatpush.bf16.msra.mxu0 %v500_v3  ;;  %599 = vmatpush.bf16.msra.mxu1 %v500_v3 }
   0xf   :  { %600 = vmatpush.bf16.msra.mxu2 %v500_v3  ;;  %601 = vmatpush.bf16.msra.mxu3 %v500_v3 }
  0x12   :  { %188 = vmatpush.bf16.msra.mxu0 %v499_v4  ;;  %602 = vmatpush.bf16.msra.mxu1 %v499_v4 }
  0x13   :  { %603 = vmatpush.bf16.msra.mxu2 %v499_v4  ;;  %604 = vmatpush.bf16.msra.mxu3 %v499_v4 }
  0x16   :  { %189 = vmatpush.bf16.msra.mxu0 %v498_v5  ;;  %605 = vmatpush.bf16.msra.mxu1 %v498_v5 }
  0x17   :  { %606 = vmatpush.bf16.msra.mxu2 %v498_v5  ;;  %607 = vmatpush.bf16.msra.mxu3 %v498_v5 }
  0x1a   :  { %190 = vmatpush.bf16.msra.mxu0 %v497_v6  ;;  %608 = vmatpush.bf16.msra.mxu1 %v497_v6 }
  0x1b   :  { %609 = vmatpush.bf16.msra.mxu2 %v497_v6  ;;  %610 = vmatpush.bf16.msra.mxu3 %v497_v6 }
  0x1e   :  { %191 = vmatpush.bf16.msra.mxu0 %v496_v7  ;;  %611 = vmatpush.bf16.msra.mxu1 %v496_v7 }
  0x1f   :  { %612 = vmatpush.bf16.msra.mxu2 %v496_v7  ;;  %613 = vmatpush.bf16.msra.mxu3 %v496_v7 }
  0x21   :  { %192 = vmatmul.bf16.vlgmr.msra.gmra.mxu0 %v488_v8  ;;  %202 = vmatmul.bf16.vlgmr.msra.gmra.mxu1 %v490_v9  ;;  %v576_v8 = vld [vmem:[%s788_s4 + $0x8] sm:$0xff]   ;;  %v578_v9 = vld [vmem:[%s788_s4 + $0x18] sm:$0xff]  }
  0x22   :  { %212 = vmatmul.bf16.vlgmr.msra.gmra.mxu2 %v492_v10  ;;  %222 = vmatmul.bf16.vlgmr.msra.gmra.mxu3 %v494_v11 }
  0x31   :  { %197 = vmatmul.bf16.gmra.mxu0 %v489_v12  ;;  %207 = vmatmul.bf16.gmra.mxu1 %v491_v13 }
  0x32   :  { %217 = vmatmul.bf16.gmra.mxu2 %v493_v14  ;;  %227 = vmatmul.bf16.gmra.mxu3 %v495_v15  ;;  %v510_v15 = vunpack.c.l.bf16 %v576_v8 }
  0x9e   :  { %v193_v17 = vpop.f32.mrf.mxu0  ;;  %v203_v18 = vpop.f32.mrf.mxu1 }
  0x9f   :  { %v288_v19 = vmul.f32 %v697_v16, %v193_v17  ;;  %v292_v21 = vmul.f32 %v697_v16, %v203_v18  ;;  %v518_v18 = vunpack.c.l.bf16 %v578_v9 }
  0xa1   :  { %v308_v24 = vadd.f32 %v703_v20, %v288_v19  ;;  %v312_v26 = vadd.f32 %v703_v20, %v292_v21 }
  0xa3   :  { %v356_v38 = vadd.f32 %v506_v25, %v308_v24  ;;  %v360_v39 = vadd.f32 %v514_v27, %v312_v26  ;;  %v511_v27 = vunpack.c.h.bf16 %v576_v8 }
  0xa5   :  { %v213_v28 = vpop.f32.mrf.mxu2  ;;  %v223_v29 = vpop.f32.mrf.mxu3  ;;  %v372_v50 = vmax.f32 %v356_v38, 0.0  ;;  %v376_v51 = vmax.f32 %v360_v39, 0.0 }
  0xa6   :  { %v195_v30 = vpop.f32.mrf.mxu0  ;;  %v205_v31 = vpop.f32.mrf.mxu1  ;;  %v296_v36 = vmul.f32 %v697_v16, %v213_v28  ;;  %v300_v37 = vmul.f32 %v697_v16, %v223_v29  ;;  %v519_v29 = vunpack.c.h.bf16 %v578_v9 }
  0xa7   :  { %v289_v32 = vmul.f32 %v697_v16, %v195_v30  ;;  %v293_v34 = vmul.f32 %v697_v16, %v205_v31 }
  0xa8   :  { %v316_v46 = vadd.f32 %v703_v20, %v296_v36  ;;  %v320_v48 = vadd.f32 %v703_v20, %v300_v37 }
  0xa9   :  { %v309_v42 = vadd.f32 %v703_v20, %v289_v32  ;;  %v313_v43 = vadd.f32 %v703_v20, %v293_v34  ;;  %v580_v34 = vld [vmem:[%s788_s4 + $0x28] sm:$0xff]  }
  0xaa   :  { %v364_v0 = vadd.f32 %v522_v47, %v316_v46  ;;  %v368_v1 = vadd.f32 %v530_v49, %v320_v48  ;;  %v526_v41 = vunpack.c.l.bf16 %v580_v34 }
  0xab   :  { %v357_v44 = vadd.f32 %v507_v33, %v309_v42  ;;  %v361_v45 = vadd.f32 %v515_v35, %v313_v43  ;;  %v582_v35 = vld [vmem:[%s788_s4 + $0x38] sm:$0xff]  }
  0xac   :  { %v380_v10 = vmax.f32 %v364_v0, 0.0  ;;  %v384_v11 = vmax.f32 %v368_v1, 0.0  ;;  %v534_v43 = vunpack.c.l.bf16 %v582_v35 }
  0xad   :  { %v373_v52 = vmax.f32 %v357_v44, 0.0  ;;  %v377_v53 = vmax.f32 %v361_v45, 0.0  ;;  %v215_v54 = vpop.f32.mrf.mxu2  ;;  %v225_v55 = vpop.f32.mrf.mxu3 }
  0xae   :  { %v297_v56 = vmul.f32 %v697_v16, %v215_v54  ;;  %v301_v58 = vmul.f32 %v697_v16, %v225_v55  ;;  %v198_v60 = vpop.f32.mrf.mxu0  ;;  %v208_v61 = vpop.f32.mrf.mxu1 }
  0xaf   :  { %v539_v62 = vpack.c.bf16 %v373_v52, %v372_v50  ;;  %v549_v63 = vpack.c.bf16 %v377_v53, %v376_v51  ;;  %v290_v4 = vmul.f32 %v697_v16, %v198_v60  ;;  %v294_v5 = vmul.f32 %v697_v16, %v208_v61 }
  0xb0   :  { %v317_v2 = vadd.f32 %v703_v20, %v297_v56  ;;  %v321_v3 = vadd.f32 %v703_v20, %v301_v58  ;;  %v527_v51 = vunpack.c.h.bf16 %v580_v34  ;;  %v535_v53 = vunpack.c.h.bf16 %v582_v35 }
  0xb1   :  { %540 = vst [vmem:[%s789_s5] sm:$0xff] %v539_v62   ;;  %v310_v14 = vadd.f32 %v703_v20, %v290_v4  ;;  %v314_v17 = vadd.f32 %v703_v20, %v294_v5 }
  0xb2   :  { %584 = vst [vmem:[%s789_s5 + $0x10] sm:$0xff] %v549_v63   ;;  %v365_v6 = vadd.f32 %v523_v57, %v317_v2  ;;  %v369_v7 = vadd.f32 %v531_v59, %v321_v3 }
  0xb3   :  { %v358_v32 = vadd.f32 %v510_v15, %v310_v14  ;;  %v362_v33 = vadd.f32 %v518_v18, %v314_v17 }
  0xb4   :  { %v381_v12 = vmax.f32 %v365_v6, 0.0  ;;  %v385_v13 = vmax.f32 %v369_v7, 0.0 }
  0xb5   :  { %v218_v19 = vpop.f32.mrf.mxu2  ;;  %v228_v21 = vpop.f32.mrf.mxu3  ;;  %v374_v44 = vmax.f32 %v358_v32, 0.0  ;;  %v378_v45 = vmax.f32 %v362_v33, 0.0 }
  0xb6   :  { %v559_v22 = vpack.c.bf16 %v381_v12, %v380_v10  ;;  %v569_v23 = vpack.c.bf16 %v385_v13, %v384_v11  ;;  %v200_v24 = vpop.f32.mrf.mxu0  ;;  %v210_v25 = vpop.f32.mrf.mxu1  ;;  %v298_v30 = vmul.f32 %v697_v16, %v218_v19  ;;  %v302_v31 = vmul.f32 %v697_v16, %v228_v21 }
  0xb7   :  { %v291_v26 = vmul.f32 %v697_v16, %v200_v24  ;;  %v295_v28 = vmul.f32 %v697_v16, %v210_v25 }
  0xb8   :  { %586 = vst [vmem:[%s789_s5 + $0x20] sm:$0xff] %v559_v22   ;;  %v318_v40 = vadd.f32 %v703_v20, %v298_v30  ;;  %v322_v42 = vadd.f32 %v703_v20, %v302_v31 }
  0xb9   :  { %588 = vst [vmem:[%s789_s5 + $0x30] sm:$0xff] %v569_v23   ;;  %v311_v36 = vadd.f32 %v703_v20, %v291_v26  ;;  %v315_v37 = vadd.f32 %v703_v20, %v295_v28 }
  0xba   :  { %v366_v56 = vadd.f32 %v526_v41, %v318_v40  ;;  %v370_v57 = vadd.f32 %v534_v43, %v322_v42 }
  0xbb   :  { %v359_v38 = vadd.f32 %v511_v27, %v311_v36  ;;  %v363_v39 = vadd.f32 %v519_v29, %v315_v37 }
  0xbc   :  { %v386_v62 = vmax.f32 %v370_v57, 0.0 }
  0xbd   :  { %v375_v46 = vmax.f32 %v359_v38, 0.0  ;;  %v379_v47 = vmax.f32 %v363_v39, 0.0  ;;  %v220_v48 = vpop.f32.mrf.mxu2  ;;  %v230_v49 = vpop.f32.mrf.mxu3 }
  0xbe   :  { %v299_v50 = vmul.f32 %v697_v16, %v220_v48  ;;  %v303_v52 = vmul.f32 %v697_v16, %v230_v49  ;;  %v382_v16 = vmax.f32 %v366_v56, 0.0 }
  0xbf   :  { %v544_v54 = vpack.c.bf16 %v375_v46, %v374_v44  ;;  %v554_v55 = vpack.c.bf16 %v379_v47, %v378_v45 }
  0xc0   :  { %v319_v58 = vadd.f32 %v703_v20, %v299_v50  ;;  %v323_v59 = vadd.f32 %v703_v20, %v303_v52 }
  0xc1   :  { %583 = vst [vmem:[%s789_s5 + $0x8] sm:$0xff] %v544_v54  }
  0xc2   :  { %585 = vst [vmem:[%s789_s5 + $0x18] sm:$0xff] %v554_v55   ;;  %v367_v60 = vadd.f32 %v527_v51, %v319_v58  ;;  %v371_v61 = vadd.f32 %v535_v53, %v323_v59 }
  0xc4   :  { %v383_v63 = vmax.f32 %v367_v60, 0.0  ;;  %v387_v0 = vmax.f32 %v371_v61, 0.0 }
  0xc6   :  { %v564_v1 = vpack.c.bf16 %v383_v63, %v382_v16  ;;  %v574_v2 = vpack.c.bf16 %v387_v0, %v386_v62 }
  0xc8   :  { %587 = vst [vmem:[%s789_s5 + $0x28] sm:$0xff] %v564_v1  }
  0xc9   :  { %589 = vst [vmem:[%s789_s5 + $0x38] sm:$0xff] %v574_v2  }

// kernel: resnet_forward.13
= control target key start
LH: loop header
LB: loop body
LE: loop exit
PB: predicated region body
PF: predicated region fallthrough
CT: control target
= control target key end

     0   :  { %s313_s1 = inlined_call_operand.vmem [shape: bf16[128,128], index: 1, kind: input, shape index: {}]   ;;  %s314_s2 = inlined_call_operand.vmem [shape: f32[1,128], index: 2, kind: input, shape index: {}]   ;;  %s315_s3 = inlined_call_operand.vmem [shape: f32[1,128], index: 3, kind: input, shape index: {}]   ;;  %s316_s0 = inlined_call_operand.vmem [shape: bf16[32,128], index: 0, kind: input, shape index: {}]   ;;  %s317_s4 = inlined_call_operand.vmem [shape: bf16[32,128], index: 4, kind: output, shape index: {}]  }
   0x1   :  { %v224_v0 = vld [vmem:[%s313_s1 + $0x38] sm:$0xff]  ;;  %v223_v1 = vld [vmem:[%s313_s1 + $0x30] sm:$0xff]  ;;  %v222_v2 = vld [vmem:[%s313_s1 + $0x28] sm:$0xff] }
   0x2   :  { %109 = vmatpush.bf16.msra.mxu0 %v224_v0  ;;  %236 = vmatpush.bf16.msra.mxu1 %v224_v0  ;;  %v221_v3 = vld [vmem:[%s313_s1 + $0x20] sm:$0xff]  ;;  %v220_v4 = vld [vmem:[%s313_s1 + $0x18] sm:$0xff]  ;;  %v219_v5 = vld [vmem:[%s313_s1 + $0x10] sm:$0xff] }
   0x3   :  { %v218_v6 = vld [vmem:[%s313_s1 + $0x8] sm:$0xff]  ;;  %v217_v7 = vld [vmem:[%s313_s1] sm:$0xff] }
   0x4   :  { %v215_v8 = vld [vmem:[%s316_s0] sm:$0xff]  ;;  %v216_v9 = vld [vmem:[%s316_s0 + $0x8] sm:$0xff] }
   0x5   :  { %v244_v12 = vld [vmem:[%s314_s2] ss:$0 sm:$0xff] }
   0x6   :  { %110 = vmatpush.bf16.msra.mxu0 %v223_v1  ;;  %237 = vmatpush.bf16.msra.mxu1 %v223_v1  ;;  %v245_v14 = vld [vmem:[%s315_s3] ss:$0 sm:$0xff] }
   0xa   :  { %111 = vmatpush.bf16.msra.mxu0 %v222_v2  ;;  %238 = vmatpush.bf16.msra.mxu1 %v222_v2 }
   0xe   :  { %112 = vmatpush.bf16.msra.mxu0 %v221_v3  ;;  %239 = vmatpush.bf16.msra.mxu1 %v221_v3 }
  0x12   :  { %113 = vmatpush.bf16.msra.mxu0 %v220_v4  ;;  %240 = vmatpush.bf16.msra.mxu1 %v220_v4 }
  0x16   :  { %114 = vmatpush.bf16.msra.mxu0 %v219_v5  ;;  %241 = vmatpush.bf16.msra.mxu1 %v219_v5 }
  0x1a   :  { %115 = vmatpush.bf16.msra.mxu0 %v218_v6  ;;  %242 = vmatpush.bf16.msra.mxu1 %v218_v6 }
  0x1e   :  { %116 = vmatpush.bf16.msra.mxu0 %v217_v7  ;;  %243 = vmatpush.bf16.msra.mxu1 %v217_v7 }
  0x21   :  { %117 = vmatmul.bf16.vlgmr.msra.gmra.mxu0 %v215_v8  ;;  %122 = vmatmul.bf16.vlgmr.msra.gmra.mxu1 %v216_v9 }
  0x9e   :  { %v118_v10 = vpop.f32.mrf.mxu0  ;;  %v123_v11 = vpop.f32.mrf.mxu1 }
  0x9f   :  { %v147_v13 = vmul.f32 %v244_v12, %v118_v10  ;;  %v149_v15 = vmul.f32 %v244_v12, %v123_v11 }
  0xa1   :  { %v155_v18 = vadd.f32 %v245_v14, %v147_v13  ;;  %v157_v19 = vadd.f32 %v245_v14, %v149_v15 }
  0xa3   :  { %v159_v24 = vmax.f32 %v155_v18, 0.0  ;;  %v161_v25 = vmax.f32 %v157_v19, 0.0 }
  0xa6   :  { %v120_v16 = vpop.f32.mrf.mxu0  ;;  %v125_v17 = vpop.f32.mrf.mxu1 }
  0xa7   :  { %v148_v20 = vmul.f32 %v244_v12, %v120_v16  ;;  %v150_v21 = vmul.f32 %v244_v12, %v125_v17 }
  0xa9   :  { %v156_v22 = vadd.f32 %v245_v14, %v148_v20  ;;  %v158_v23 = vadd.f32 %v245_v14, %v150_v21 }
  0xab   :  { %v160_v26 = vmax.f32 %v156_v22, 0.0  ;;  %v162_v27 = vmax.f32 %v158_v23, 0.0 }
  0xad   :  { %v228_v28 = vpack.c.bf16 %v160_v26, %v159_v24  ;;  %v233_v29 = vpack.c.bf16 %v162_v27, %v161_v25 }
  0xaf   :  { %229 = vst [vmem:[%s317_s4] sm:$0xff] %v228_v28  }
  0xb0   :  { %235 = vst [vmem:[%s317_s4 + $0x8] sm:$0xff] %v233_v29  }

// kernel: resnet_forward.12
= control target key start
LH: loop header
LB: loop body
LE: loop exit
PB: predicated region body
PF: predicated region fallthrough
CT: control target
= control target key end

     0   :  { %s309_s1 = inlined_call_operand.vmem [shape: bf16[128,128], index: 1, kind: input, shape index: {}]   ;;  %s310_s2 = inlined_call_operand.vmem [shape: f32[1,128], index: 2, kind: input, shape index: {}]   ;;  %s311_s3 = inlined_call_operand.vmem [shape: f32[1,128], index: 3, kind: input, shape index: {}]   ;;  %s312_s0 = inlined_call_operand.vmem [shape: bf16[32,128], index: 0, kind: input, shape index: {}]   ;;  %s313_s4 = inlined_call_operand.vmem [shape: bf16[32,128], index: 4, kind: output, shape index: {}]  }
   0x1   :  { %v220_v0 = vld [vmem:[%s309_s1 + $0x38] sm:$0xff]  ;;  %v219_v1 = vld [vmem:[%s309_s1 + $0x30] sm:$0xff]  ;;  %v218_v2 = vld [vmem:[%s309_s1 + $0x28] sm:$0xff] }
   0x2   :  { %109 = vmatpush.bf16.msra.mxu0 %v220_v0  ;;  %232 = vmatpush.bf16.msra.mxu1 %v220_v0  ;;  %v217_v3 = vld [vmem:[%s309_s1 + $0x20] sm:$0xff]  ;;  %v216_v4 = vld [vmem:[%s309_s1 + $0x18] sm:$0xff]  ;;  %v215_v5 = vld [vmem:[%s309_s1 + $0x10] sm:$0xff] }
   0x3   :  { %v214_v6 = vld [vmem:[%s309_s1 + $0x8] sm:$0xff]  ;;  %v213_v7 = vld [vmem:[%s309_s1] sm:$0xff] }
   0x4   :  { %v211_v8 = vld [vmem:[%s312_s0] sm:$0xff]  ;;  %v212_v9 = vld [vmem:[%s312_s0 + $0x8] sm:$0xff] }
   0x5   :  { %v240_v12 = vld [vmem:[%s310_s2] ss:$0 sm:$0xff] }
   0x6   :  { %110 = vmatpush.bf16.msra.mxu0 %v219_v1  ;;  %233 = vmatpush.bf16.msra.mxu1 %v219_v1  ;;  %v241_v14 = vld [vmem:[%s311_s3] ss:$0 sm:$0xff] }
   0xa   :  { %111 = vmatpush.bf16.msra.mxu0 %v218_v2  ;;  %234 = vmatpush.bf16.msra.mxu1 %v218_v2 }
   0xe   :  { %112 = vmatpush.bf16.msra.mxu0 %v217_v3  ;;  %235 = vmatpush.bf16.msra.mxu1 %v217_v3 }
  0x12   :  { %113 = vmatpush.bf16.msra.mxu0 %v216_v4  ;;  %236 = vmatpush.bf16.msra.mxu1 %v216_v4 }
  0x16   :  { %114 = vmatpush.bf16.msra.mxu0 %v215_v5  ;;  %237 = vmatpush.bf16.msra.mxu1 %v215_v5 }
  0x1a   :  { %115 = vmatpush.bf16.msra.mxu0 %v214_v6  ;;  %238 = vmatpush.bf16.msra.mxu1 %v214_v6 }
  0x1e   :  { %116 = vmatpush.bf16.msra.mxu0 %v213_v7  ;;  %239 = vmatpush.bf16.msra.mxu1 %v213_v7 }
  0x21   :  { %117 = vmatmul.bf16.vlgmr.msra.gmra.mxu0 %v211_v8  ;;  %122 = vmatmul.bf16.vlgmr.msra.gmra.mxu1 %v212_v9 }
  0x9e   :  { %v118_v10 = vpop.f32.mrf.mxu0  ;;  %v123_v11 = vpop.f32.mrf.mxu1 }
  0x9f   :  { %v147_v13 = vmul.f32 %v240_v12, %v118_v10  ;;  %v149_v15 = vmul.f32 %v240_v12, %v123_v11 }
  0xa1   :  { %v155_v20 = vadd.f32 %v241_v14, %v147_v13  ;;  %v157_v21 = vadd.f32 %v241_v14, %v149_v15 }
  0xa6   :  { %v120_v16 = vpop.f32.mrf.mxu0  ;;  %v125_v17 = vpop.f32.mrf.mxu1 }
  0xa7   :  { %v148_v18 = vmul.f32 %v240_v12, %v120_v16  ;;  %v150_v19 = vmul.f32 %v240_v12, %v125_v17 }
  0xa9   :  { %v156_v22 = vadd.f32 %v241_v14, %v148_v18  ;;  %v158_v23 = vadd.f32 %v241_v14, %v150_v19 }
  0xab   :  { %v224_v24 = vpack.c.bf16 %v156_v22, %v155_v20  ;;  %v229_v25 = vpack.c.bf16 %v158_v23, %v157_v21 }
  0xad   :  { %225 = vst [vmem:[%s313_s4] sm:$0xff] %v224_v24  }
  0xae   :  { %231 = vst [vmem:[%s313_s4 + $0x8] sm:$0xff] %v229_v25  }

// kernel: resnet_forward.14
= control target key start
LH: loop header
LB: loop body
LE: loop exit
PB: predicated region body
PF: predicated region fallthrough
CT: control target
= control target key end

     0   :  { %s539_s1 = inlined_call_operand.vmem [shape: bf16[256,128], index: 1, kind: input, shape index: {}]   ;;  %s540_s0 = inlined_call_operand.vmem [shape: bf16[32,256], index: 0, kind: input, shape index: {}]   ;;  %s541_s2 = inlined_call_operand.vmem [shape: f32[1,128], index: 2, kind: input, shape index: {}]   ;;  %s542_s3 = inlined_call_operand.vmem [shape: f32[1,128], index: 3, kind: input, shape index: {}]   ;;  %s543_s4 = inlined_call_operand.vmem [shape: bf16[32,128], index: 4, kind: input, shape index: {}]   ;;  %s544_s5 = inlined_call_operand.vmem [shape: bf16[32,128], index: 5, kind: output, shape index: {}]  }
   0x1   :  { %v372_v0 = vld [vmem:[%s539_s1 + $0x38] sm:$0xff]  ;;  %v371_v2 = vld [vmem:[%s539_s1 + $0x30] sm:$0xff]  ;;  %v370_v4 = vld [vmem:[%s539_s1 + $0x28] sm:$0xff] }
   0x2   :  { %v380_v1 = vld [vmem:[%s539_s1 + $0x78] sm:$0xff]  ;;  %184 = vmatpush.bf16.msra.mxu0 %v372_v0  ;;  %401 = vmatpush.bf16.msra.mxu2 %v372_v0  ;;  %v379_v3 = vld [vmem:[%s539_s1 + $0x70] sm:$0xff]  ;;  %v378_v5 = vld [vmem:[%s539_s1 + $0x68] sm:$0xff] }
   0x3   :  { %203 = vmatpush.bf16.msra.mxu1 %v380_v1  ;;  %409 = vmatpush.bf16.msra.mxu3 %v380_v1  ;;  %v369_v6 = vld [vmem:[%s539_s1 + $0x20] sm:$0xff]  ;;  %v368_v8 = vld [vmem:[%s539_s1 + $0x18] sm:$0xff]  ;;  %v367_v10 = vld [vmem:[%s539_s1 + $0x10] sm:$0xff] }
   0x4   :  { %v377_v7 = vld [vmem:[%s539_s1 + $0x60] sm:$0xff]  ;;  %v376_v9 = vld [vmem:[%s539_s1 + $0x58] sm:$0xff]  ;;  %v375_v11 = vld [vmem:[%s539_s1 + $0x50] sm:$0xff] }
   0x5   :  { %v366_v12 = vld [vmem:[%s539_s1 + $0x8] sm:$0xff]  ;;  %v365_v14 = vld [vmem:[%s539_s1] sm:$0xff]  ;;  %v291_v18 = vld [vmem:[%s540_s0 + $0x10] sm:$0xf] }
   0x6   :  { %185 = vmatpush.bf16.msra.mxu0 %v371_v2  ;;  %402 = vmatpush.bf16.msra.mxu2 %v371_v2  ;;  %v374_v13 = vld [vmem:[%s539_s1 + $0x48] sm:$0xff]  ;;  %v373_v15 = vld [vmem:[%s539_s1 + $0x40] sm:$0xff]  ;;  %v364_v19 = vld [vmem:[%s540_s0 + $0x14] sm:$0xf0] }
   0x7   :  { %204 = vmatpush.bf16.msra.mxu1 %v379_v3  ;;  %410 = vmatpush.bf16.msra.mxu3 %v379_v3  ;;  %v283_v16 = vld [vmem:[%s540_s0] sm:$0xf]  ;;  %v362_v17 = vld [vmem:[%s540_s0 + $0x4] sm:$0xf0]  ;;  %v361_v20 = vld [vmem:[%s540_s0 + $0x4] sm:$0xf]  ;;  %v292_v25 = vor.u32 %v364_v19, %v291_v18 }
   0x8   :  { %v285_v21 = vld [vmem:[%s540_s0 + $0x8] sm:$0xf0]  ;;  %v363_v22 = vld [vmem:[%s540_s0 + $0x14] sm:$0xf]  ;;  %v293_v23 = vld [vmem:[%s540_s0 + $0x18] sm:$0xf0]  ;;  %v284_v24 = vor.u32 %v362_v17, %v283_v16 }
   0x9   :  { %v288_v26 = vor.u32 %v361_v20, %v285_v21  ;;  %v296_v27 = vor.u32 %v363_v22, %v293_v23  ;;  %v417_v31 = vld [vmem:[%s541_s2] ss:$0 sm:$0xff]  ;;  %v399_v46 = vld [vmem:[%s543_s4 + $0x8] sm:$0xff]  }
   0xa   :  { %186 = vmatpush.bf16.msra.mxu0 %v370_v4  ;;  %403 = vmatpush.bf16.msra.mxu2 %v370_v4  ;;  %v418_v33 = vld [vmem:[%s542_s3] ss:$0 sm:$0xff]  ;;  %v387_v52 = vunpack.c.l.bf16 %v399_v46  ;;  %v388_v58 = vunpack.c.h.bf16 %v399_v46 }
   0xb   :  { %205 = vmatpush.bf16.msra.mxu1 %v378_v5  ;;  %411 = vmatpush.bf16.msra.mxu3 %v378_v5  ;;  %v382_v35 = vld [vmem:[%s543_s4] sm:$0xff]  }
   0xc   :  { %v383_v41 = vunpack.c.l.bf16 %v382_v35  ;;  %v384_v45 = vunpack.c.h.bf16 %v382_v35 }
   0xe   :  { %187 = vmatpush.bf16.msra.mxu0 %v369_v6  ;;  %404 = vmatpush.bf16.msra.mxu2 %v369_v6 }
   0xf   :  { %206 = vmatpush.bf16.msra.mxu1 %v377_v7  ;;  %412 = vmatpush.bf16.msra.mxu3 %v377_v7 }
  0x12   :  { %188 = vmatpush.bf16.msra.mxu0 %v368_v8  ;;  %405 = vmatpush.bf16.msra.mxu2 %v368_v8 }
  0x13   :  { %207 = vmatpush.bf16.msra.mxu1 %v376_v9  ;;  %413 = vmatpush.bf16.msra.mxu3 %v376_v9 }
  0x16   :  { %189 = vmatpush.bf16.msra.mxu0 %v367_v10  ;;  %406 = vmatpush.bf16.msra.mxu2 %v367_v10 }
  0x17   :  { %208 = vmatpush.bf16.msra.mxu1 %v375_v11  ;;  %414 = vmatpush.bf16.msra.mxu3 %v375_v11 }
  0x1a   :  { %190 = vmatpush.bf16.msra.mxu0 %v366_v12  ;;  %407 = vmatpush.bf16.msra.mxu2 %v366_v12 }
  0x1b   :  { %209 = vmatpush.bf16.msra.mxu1 %v374_v13  ;;  %415 = vmatpush.bf16.msra.mxu3 %v374_v13 }
  0x1e   :  { %191 = vmatpush.bf16.msra.mxu0 %v365_v14  ;;  %408 = vmatpush.bf16.msra.mxu2 %v365_v14 }
  0x1f   :  { %210 = vmatpush.bf16.msra.mxu1 %v373_v15  ;;  %416 = vmatpush.bf16.msra.mxu3 %v373_v15 }
  0x21   :  { %192 = vmatmul.bf16.vlgmr.msra.gmra.mxu0 %v284_v24  ;;  %197 = vmatmul.bf16.vlgmr.msra.gmra.mxu2 %v292_v25 }
  0x22   :  { %211 = vmatmul.bf16.vlgmr.msra.gmra.mxu1 %v288_v26  ;;  %216 = vmatmul.bf16.vlgmr.msra.gmra.mxu3 %v296_v27 }
  0x9e   :  { %v193_v28 = vpop.f32.mrf.mxu0 }
  0x9f   :  { %v212_v29 = vpop.f32.mrf.mxu1 }
  0xa0   :  { %v213_v30 = vadd.f32 %v212_v29, %v193_v28 }
  0xa2   :  { %v241_v32 = vmul.f32 %v417_v31, %v213_v30 }
  0xa4   :  { %v198_v34 = vpop.f32.mrf.mxu2  ;;  %v249_v40 = vadd.f32 %v418_v33, %v241_v32 }
  0xa5   :  { %v217_v36 = vpop.f32.mrf.mxu3 }
  0xa6   :  { %v218_v37 = vadd.f32 %v217_v36, %v198_v34  ;;  %v195_v38 = vpop.f32.mrf.mxu0  ;;  %v261_v47 = vadd.f32 %v383_v41, %v249_v40 }
  0xa7   :  { %v214_v39 = vpop.f32.mrf.mxu1 }
  0xa8   :  { %v215_v42 = vadd.f32 %v214_v39, %v195_v38  ;;  %v243_v43 = vmul.f32 %v417_v31, %v218_v37  ;;  %v265_v55 = vmax.f32 %v261_v47, 0.0 }
  0xaa   :  { %v242_v44 = vmul.f32 %v417_v31, %v215_v42  ;;  %v251_v51 = vadd.f32 %v418_v33, %v243_v43 }
  0xac   :  { %v250_v48 = vadd.f32 %v418_v33, %v242_v44  ;;  %v200_v49 = vpop.f32.mrf.mxu2  ;;  %v263_v59 = vadd.f32 %v387_v52, %v251_v51 }
  0xad   :  { %v219_v50 = vpop.f32.mrf.mxu3 }
  0xae   :  { %v262_v53 = vadd.f32 %v384_v45, %v250_v48  ;;  %v220_v54 = vadd.f32 %v219_v50, %v200_v49  ;;  %v267_v63 = vmax.f32 %v263_v59, 0.0 }
  0xb0   :  { %v266_v56 = vmax.f32 %v262_v53, 0.0  ;;  %v244_v57 = vmul.f32 %v417_v31, %v220_v54 }
  0xb2   :  { %v392_v60 = vpack.c.bf16 %v266_v56, %v265_v55  ;;  %v252_v61 = vadd.f32 %v418_v33, %v244_v57 }
  0xb4   :  { %393 = vst [vmem:[%s544_s5] sm:$0xff] %v392_v60   ;;  %v264_v62 = vadd.f32 %v388_v58, %v252_v61 }
  0xb6   :  { %v268_v0 = vmax.f32 %v264_v62, 0.0 }
  0xb8   :  { %v397_v1 = vpack.c.bf16 %v268_v0, %v267_v63 }
  0xba   :  { %400 = vst [vmem:[%s544_s5 + $0x8] sm:$0xff] %v397_v1  }

// kernel: resnet_forward.15
= control target key start
LH: loop header
LB: loop body
LE: loop exit
PB: predicated region body
PF: predicated region fallthrough
CT: control target
= control target key end

     0   :  { %vm12_vm0 = vcmask 123904   ;;  %v70_v0 = vmov 0.0   ;;  %vm23_vm1 = vcmask 130048   ;;  %vm44_vm2 = vcmask 1041409   ;;  %s105_s1 = inlined_call_operand.vmem [shape: f32[2,16], index: 1, kind: output, shape index: {}]   ;;  %s106_s0 = inlined_call_operand.vmem [shape: bf16[2,16,16], index: 0, kind: input, shape index: {}]  }
   0x1   :  { %13 = vst.msk [vmem:[%s105_s1] sm:$0x3] %vm12_vm0, %v70_v0  ;;  %v61_v1 = vld [vmem:[%s106_s0] sm:$0xff]   ;;  %v68_v2 = vld [vmem:[%s106_s0 + $0x8] sm:$0xff]  }
   0x2   :  { %v62_v3 = vunpack.c.l.bf16 %v61_v1  ;;  %v63_v4 = vunpack.c.h.bf16 %v61_v1  ;;  %v66_v5 = vunpack.c.l.bf16 %v68_v2  ;;  %v67_v6 = vunpack.c.h.bf16 %v68_v2 }
   0x4   :  { %v24_v7 = vsel %vm23_vm1, %v62_v3, 0.0  ;;  %v25_v8 = vsel %vm23_vm1, %v63_v4, 0.0  ;;  %v33_v9 = vsel %vm23_vm1, %v66_v5, 0.0  ;;  %v34_v10 = vsel %vm23_vm1, %v67_v6, 0.0 }
   0x5   :  { %v26_v11 = vadd.f32 %v25_v8, %v24_v7  ;;  %v35_v12 = vadd.f32 %v34_v10, %v33_v9 }
   0x7   :  { %v27_v13 = vrot.slane %v26_v11, 4  ;;  %v36_v14 = vrot.slane %v35_v12, 4 }
   0x8   :  { %v14_v23 = vld [vmem:[%s105_s1] sm:$0x3] }
   0x9   :  { %v28_v15 = vadd.f32 %v27_v13, %v26_v11  ;;  %v37_v16 = vadd.f32 %v36_v14, %v35_v12 }
   0xb   :  { %v29_v17 = vrot.slane %v28_v15, 2  ;;  %v38_v18 = vrot.slane %v37_v16, 2 }
   0xd   :  { %v30_v19 = vadd.f32 %v29_v17, %v28_v15  ;;  %v39_v20 = vadd.f32 %v38_v18, %v37_v16 }
   0xf   :  { %v31_v21 = vrot.slane %v30_v19, 1  ;;  %v40_v22 = vrot.slane %v39_v20, 1 }
  0x11   :  { %v32_v24 = vadd.f32 %v31_v21, %v30_v19  ;;  %v41_v25 = vadd.f32 %v40_v22, %v39_v20 }
  0x13   :  { %v45_v26 = vsel %vm44_vm2, %v41_v25, %v32_v24 }
  0x14   :  { %v47_v27 = vadd.f32 %v45_v26, %v14_v23 }
  0x16   :  { %49 = vst.msk [vmem:[%s105_s1] sm:$0x3] %vm12_vm0, %v47_v27 }
  0x1d   :  { %v53_v28 = vld [vmem:[%s105_s1] sm:$0x3] }
  0x1e   :  { %v54_v29 = vmul.f32 0.0625, %v53_v28 }
  0x20   :  { %55 = vst.msk [vmem:[%s105_s1] sm:$0x3] %vm12_vm0, %v54_v29 }

</bundles_post_ra>
